<compile_context>
chip_gen: v5e
topology: v5e:2x2
jax: 0.10.0
libtpu: 0.0.40
codegen_flags: <defaults>
</compile_context>

<pallas_src>
import jax
import jax.numpy as jnp
from jax.experimental import pallas as pl
from jax.experimental.pallas import tpu as pltpu

LANES = 128
_TB_MAX = 32                      # samples per grid step (VMEM-safe on v5e/v6e/v7x)
_VMEM_LIMIT = 32 * 1024 * 1024    # safe on all generations (v7x physical = 64 MiB)


def _round_up(x, m):
    return (x + m - 1) // m * m


def _pad_to(x, shape):
    pads = [(0, t - s) for s, t in zip(x.shape, shape)]
    return jnp.pad(x, pads)


# ---------------------------------------------------------------------------
# Kernel 1/2: conv (im2col matmul) + bias + 2x2 max-pool + ReLU
# ---------------------------------------------------------------------------
def _conv_pool_relu_kernel(p_ref, w_ref, b_ref, o_ref):
    # p_ref: (4, R, Fp) bf16   im2col patches, one leading slab per pool member
    # w_ref: (Fp, 128) bf16    conv weight, zero-padded rows/cols
    # b_ref: (1, 128)  f32     zero-padded bias
    # o_ref: (R, 128)  f32     pooled + relu'd activations (lane-dense store)
    r = p_ref.shape[1]
    fp = p_ref.shape[2]
    c = o_ref.shape[1]
    p = p_ref[...].reshape(4 * r, fp)                      # collapse leading dims
    y = jnp.dot(p, w_ref[...], preferred_element_type=jnp.float32)   # (4R, 128)
    y = y.reshape(4, r, c)
    pooled = jnp.maximum(jnp.maximum(y[0], y[1]), jnp.maximum(y[2], y[3]))
    # bias is a per-channel constant -> adding after the max is exact
    o_ref[...] = jnp.maximum(pooled + b_ref[...], 0.0)


def conv_pool_relu(patches, w, b, tb, p_per_sample):
    _, R, Fp = patches.shape
    Bp = R // p_per_sample
    C = w.shape[1]
    return pl.pallas_call(
        _conv_pool_relu_kernel,
        out_shape=jax.ShapeDtypeStruct((R, C), jnp.float32),
        grid_spec=pltpu.PrefetchScalarGridSpec(
            num_scalar_prefetch=0,
            grid=(Bp // tb,),
            in_specs=[
                pl.BlockSpec((4, tb * p_per_sample, Fp), lambda i: (0, i, 0)),
                pl.BlockSpec((Fp, C), lambda i: (0, 0)),
                pl.BlockSpec((1, C), lambda i: (0, 0)),
            ],
            out_specs=pl.BlockSpec((tb * p_per_sample, C), lambda i: (i, 0)),
        ),
        compiler_params=pltpu.CompilerParams(
            dimension_semantics=("parallel",),
            vmem_limit_bytes=_VMEM_LIMIT),
    )(patches, w, b)


# ---------------------------------------------------------------------------
# Kernel 3: fc1 + ReLU + fc2 + log_softmax (dropout = identity, inference)
# ---------------------------------------------------------------------------
def _mlp_logsoftmax_kernel(x_ref, w1_ref, b1_ref, w2_ref, b2_ref, o_ref):
    # x_ref: (TB, 2048) bf16   channel-padded flattened conv2 activations
    # w1:    (2048, 128) bf16  b1: (1, 128) f32
    # w2:    (128, 128)  bf16  b2: (1, 128) f32 (padded lanes = -1e30)
    # o_ref: (TB, 128)   f32   log-probs (only first 10 lanes meaningful)
    h = jnp.maximum(
        jnp.dot(x_ref[...], w1_ref[...], preferred_element_type=jnp.float32)
        + b1_ref[...], 0.0)                                            # (TB,128) f32
    logits = (jnp.dot(h.astype(w2_ref.dtype), w2_ref[...],
                      preferred_element_type=jnp.float32) + b2_ref[...])
    # padded lanes carry -1e30 via the bias -> exp underflows to exactly 0
    m = jnp.max(logits, axis=-1, keepdims=True)
    s = logits - m
    lse = jnp.log(jnp.sum(jnp.exp(s), axis=-1, keepdims=True))
    o_ref[...] = s - lse


def mlp_logsoftmax(x, w1, b1, w2, b2, tb):
    Bp, K = x.shape
    C = w2.shape[1]
    return pl.pallas_call(
        _mlp_logsoftmax_kernel,
        out_shape=jax.ShapeDtypeStruct((Bp, C), jnp.float32),
        grid_spec=pltpu.PrefetchScalarGridSpec(
            num_scalar_prefetch=0,
            grid=(Bp // tb,),
            in_specs=[
                pl.BlockSpec((tb, K), lambda i: (i, 0)),
                pl.BlockSpec((K, C), lambda i: (0, 0)),
                pl.BlockSpec((1, C), lambda i: (0, 0)),
                pl.BlockSpec((C, C), lambda i: (0, 0)),
                pl.BlockSpec((1, C), lambda i: (0, 0)),
            ],
            out_specs=pl.BlockSpec((tb, C), lambda i: (i, 0)),
        ),
        compiler_params=pltpu.CompilerParams(
            dimension_semantics=("parallel",),
            vmem_limit_bytes=_VMEM_LIMIT),
    )(x, w1, b1, w2, b2)


# ---------------------------------------------------------------------------
# JAX glue: im2col / pool-window grouping (pure data movement, jitted with fwd)
# ---------------------------------------------------------------------------
def _im2col(x_nhwc, K):
    # (B,H,W,C) -> (B,Ho,Wo,K*K*C), feature order (di, dj, cin)
    B, H, W, C = x_nhwc.shape
    Ho, Wo = H - K + 1, W - K + 1
    cols = []
    for di in range(K):
        for dj in range(K):
            cols.append(x_nhwc[:, di:di + Ho, dj:dj + Wo, :])
    return jnp.concatenate(cols, axis=-1)


def _pool_group(patches):
    # (B,Ho,Wo,F) -> (4, B*(Ho//2)*(Wo//2), F); slab k = row p*2+q of 2x2 window
    B, Ho, Wo, F = patches.shape
    Po, Qo = Ho // 2, Wo // 2
    t = patches.reshape(B, Po, 2, Qo, 2, F).transpose(2, 4, 0, 1, 3, 5)
    return t.reshape(4, B * Po * Qo, F)


# ---------------------------------------------------------------------------
# One-time weight re-layout / lane padding (call OUTSIDE the jitted forward)
# ---------------------------------------------------------------------------
def prepare_params(params):
    # conv1: (10,1,5,5) -> (F 25->32, C 10->128)
    w1 = params["conv1_w"].transpose(2, 3, 1, 0).reshape(25, 10)
    w1 = _pad_to(w1, (32, LANES)).astype(jnp.bfloat16)
    b1 = _pad_to(params["conv1_b"].reshape(1, 10).astype(jnp.float32), (1, LANES))
    # conv2: (20,10,5,5) -> (F 250->256, C 20->128)
    w2 = params["conv2_w"].transpose(2, 3, 1, 0).reshape(250, 20)
    w2 = _pad_to(w2, (256, LANES)).astype(jnp.bfloat16)
    b2 = _pad_to(params["conv2_b"].reshape(1, 20).astype(jnp.float32), (1, LANES))
    # fc1: torch flatten is (c,h,w) over (20,4,4); ours is (pos=h*4+w, c_padded)
    wf1 = params["fc1_w"].reshape(50, 20, 4, 4).transpose(0, 2, 3, 1)   # (50,4,4,20)
    wf1 = _pad_to(wf1, (50, 4, 4, LANES)).reshape(50, 16 * LANES).T     # (2048,50)
    wf1 = _pad_to(wf1, (16 * LANES, LANES)).astype(jnp.bfloat16)
    bf1 = _pad_to(params["fc1_b"].reshape(1, 50).astype(jnp.float32), (1, LANES))
    # fc2: (10,50) -> (K 50->128, C 10->128); padded logit lanes get -1e30 bias
    wf2 = _pad_to(params["fc2_w"].T, (LANES, LANES)).astype(jnp.bfloat16)
    bf2 = jnp.concatenate(
        [params["fc2_b"].reshape(1, 10).astype(jnp.float32),
         jnp.full((1, LANES - 10), -1e30, jnp.float32)], axis=-1)
    return {"w1": w1, "b1": b1, "w2": w2, "b2": b2,
            "wf1": wf1, "bf1": bf1, "wf2": wf2, "bf2": bf2}


# ---------------------------------------------------------------------------
# Forward
# ---------------------------------------------------------------------------
def net_forward(x_nchw, pp):
    B = x_nchw.shape[0]
    tb = min(_round_up(B, 8), _TB_MAX)          # batch samples per grid step
    Bp = _round_up(B, tb)
    x = jnp.transpose(x_nchw, (0, 2, 3, 1))     # NCHW -> NHWC (B,28,28,1)
    if Bp != B:
        x = jnp.pad(x, ((0, Bp - B), (0, 0), (0, 0), (0, 0)))

    # conv1 (1->10, k=5) + max_pool2d(2) + relu
    p1 = _pool_group(_im2col(x, 5))                        # (4, Bp*144, 25)
    p1 = _pad_to(p1, (4, Bp * 144, 32)).astype(jnp.bfloat16)
    h1 = conv_pool_relu(p1, pp["w1"], pp["b1"], tb, 144)   # (Bp*144, 128) f32
    h1 = h1[:, :10].reshape(Bp, 12, 12, 10)                # real channels only

    # conv2 (10->20, k=5); Dropout2d == identity; max_pool2d(2) + relu
    p2 = _pool_group(_im2col(h1, 5))                       # (4, Bp*16, 250)
    p2 = _pad_to(p2, (4, Bp * 16, 256)).astype(jnp.bfloat16)
    h2 = conv_pool_relu(p2, pp["w2"], pp["b2"], tb, 16)    # (Bp*16, 128) f32

    # flatten with padded channels (zeros); fc1 weight rows are laid out to match
    feats = h2.reshape(Bp, 16 * LANES).astype(jnp.bfloat16)   # (Bp, 2048)
    out = mlp_logsoftmax(feats, pp["wf1"], pp["bf1"],
                         pp["wf2"], pp["bf2"], tb)            # (Bp, 128)
    return out[:B, :10]                                       # (B, 10) log-probs


if __name__ == "__main__":
    key = jax.random.PRNGKey(0)
    ks = jax.random.split(key, 9)
    params = {
        "conv1_w": 0.1 * jax.random.normal(ks[0], (10, 1, 5, 5), jnp.float32),
        "conv1_b": 0.1 * jax.random.normal(ks[1], (10,), jnp.float32),
        "conv2_w": 0.1 * jax.random.normal(ks[2], (20, 10, 5, 5), jnp.float32),
        "conv2_b": 0.1 * jax.random.normal(ks[3], (20,), jnp.float32),
        "fc1_w":   0.1 * jax.random.normal(ks[4], (50, 320), jnp.float32),
        "fc1_b":   0.1 * jax.random.normal(ks[5], (50,), jnp.float32),
        "fc2_w":   0.1 * jax.random.normal(ks[6], (10, 50), jnp.float32),
        "fc2_b":   0.1 * jax.random.normal(ks[7], (10,), jnp.float32),
    }
    # forward implies 1x28x28 inputs (320 = 20*4*4 after two conv+pool stages)
    x = jax.random.normal(ks[8], (2, 1, 28, 28), jnp.float32)

    pp = prepare_params(params)              # one-time weight re-layout, outside jit
    out = jax.jit(net_forward)(x, pp)
    out = jax.block_until_ready(out)

    assert out.shape == (2, 10)
    assert bool(jnp.all(jnp.isfinite(out)))
    # log_softmax rows must exponentiate-sum to 1
    assert bool(jnp.allclose(jnp.exp(out).sum(axis=-1), 1.0, atol=1e-4))
    print("KERNEL_OK")
</pallas_src>

<mosaic_0001>
module attributes {stable_mosaic.version = 11 : i64} {
  func.func @_conv_pool_relu_kernel(%arg0: i32, %arg1: memref<4x1152x32xbf16, #tpu.memory_space<vmem>>, %arg2: memref<32x128xbf16, #tpu.memory_space<vmem>>, %arg3: memref<1x128xf32, #tpu.memory_space<vmem>>, %arg4: memref<1152x128xf32, #tpu.memory_space<vmem>>) attributes {dimension_semantics = [#tpu.dimension_semantics<parallel>], iteration_bounds = array<i64: 1>, scalar_prefetch = 0 : i64, scratch_operands = 0 : i64, tpu.core_type = #tpu.core_type<tc>, window_params = [{transform_indices = @transform_0, window_bounds = array<i64: 4, 1152, 32>}, {pipeline_mode = #tpu.pipeline_mode<synchronous>, transform_indices = @transform_1, window_bounds = array<i64: 32, 128>}, {pipeline_mode = #tpu.pipeline_mode<synchronous>, transform_indices = @transform_2, window_bounds = array<i64: 1, 128>}, {transform_indices = @transform_3, window_bounds = array<i64: 1152, 128>}]} {
    %c0 = arith.constant 0 : index
    %c0_0 = arith.constant 0 : index
    %c0_1 = arith.constant 0 : index
    %0 = vector.load %arg1[%c0, %c0_0, %c0_1] : memref<4x1152x32xbf16, #tpu.memory_space<vmem>>, vector<4x1152x32xbf16>
    %1 = vector.shape_cast %0 : vector<4x1152x32xbf16> to vector<4608x32xbf16>
    %c0_2 = arith.constant 0 : index
    %c0_3 = arith.constant 0 : index
    %2 = vector.load %arg2[%c0_2, %c0_3] : memref<32x128xbf16, #tpu.memory_space<vmem>>, vector<32x128xbf16>
    %cst = arith.constant dense<0.000000e+00> : vector<4608x128xf32>
    %3 = tpu.matmul %1, %2, %cst {dimension_numbers = #tpu.dot_dimension_numbers<[1], [0], [0], [1], [0, 0, 1, 1], [], []>} : vector<4608x32xbf16>, vector<32x128xbf16>, vector<4608x128xf32> -> vector<4608x128xf32>
    %4 = vector.shape_cast %3 : vector<4608x128xf32> to vector<4x1152x128xf32>
    %5 = vector.extract_strided_slice %4 {offsets = [0, 0, 0], sizes = [1, 1152, 128], strides = [1, 1, 1]} : vector<4x1152x128xf32> to vector<1x1152x128xf32>
    %6 = vector.shape_cast %5 : vector<1x1152x128xf32> to vector<1152x128xf32>
    %7 = vector.extract_strided_slice %4 {offsets = [1, 0, 0], sizes = [1, 1152, 128], strides = [1, 1, 1]} : vector<4x1152x128xf32> to vector<1x1152x128xf32>
    %8 = vector.shape_cast %7 : vector<1x1152x128xf32> to vector<1152x128xf32>
    %9 = arith.maximumf %6, %8 : vector<1152x128xf32>
    %10 = vector.extract_strided_slice %4 {offsets = [2, 0, 0], sizes = [1, 1152, 128], strides = [1, 1, 1]} : vector<4x1152x128xf32> to vector<1x1152x128xf32>
    %11 = vector.shape_cast %10 : vector<1x1152x128xf32> to vector<1152x128xf32>
    %12 = vector.extract_strided_slice %4 {offsets = [3, 0, 0], sizes = [1, 1152, 128], strides = [1, 1, 1]} : vector<4x1152x128xf32> to vector<1x1152x128xf32>
    %13 = vector.shape_cast %12 : vector<1x1152x128xf32> to vector<1152x128xf32>
    %14 = arith.maximumf %11, %13 : vector<1152x128xf32>
    %15 = arith.maximumf %9, %14 : vector<1152x128xf32>
    %c0_4 = arith.constant 0 : index
    %c0_5 = arith.constant 0 : index
    %16 = vector.load %arg3[%c0_4, %c0_5] : memref<1x128xf32, #tpu.memory_space<vmem>>, vector<1x128xf32>
    %17 = vector.broadcast %16 : vector<1x128xf32> to vector<1152x128xf32>
    %18 = arith.addf %15, %17 : vector<1152x128xf32>
    %cst_6 = arith.constant 0.000000e+00 : f32
    %19 = vector.broadcast %cst_6 : f32 to vector<1152x128xf32>
    %20 = arith.maximumf %18, %19 : vector<1152x128xf32>
    %c0_7 = arith.constant 0 : index
    %c0_8 = arith.constant 0 : index
    %21 = vector.load %arg4[%c0_7, %c0_8] : memref<1152x128xf32, #tpu.memory_space<vmem>>, vector<1152x128xf32>
    tpu.vector_store %arg4[%c0_7, %c0_8], %20 {strides = array<i32>} : memref<1152x128xf32, #tpu.memory_space<vmem>>, vector<1152x128xf32>,
    return
  }
  func.func @transform_0(%arg0: i32) -> (i32, i32, i32) {
    %c0_i32 = arith.constant 0 : i32
    %c0_i32_0 = arith.constant 0 : i32
    %c0_i32_1 = arith.constant 0 : i32
    return %c0_i32, %arg0, %c0_i32_0 : i32, i32, i32
  }
  func.func @transform_1(%arg0: i32) -> (i32, i32) {
    %c0_i32 = arith.constant 0 : i32
    %c0_i32_0 = arith.constant 0 : i32
    %c0_i32_1 = arith.constant 0 : i32
    return %c0_i32, %c0_i32_0 : i32, i32
  }
  func.func @transform_2(%arg0: i32) -> (i32, i32) {
    %c0_i32 = arith.constant 0 : i32
    %c0_i32_0 = arith.constant 0 : i32
    %c0_i32_1 = arith.constant 0 : i32
    return %c0_i32, %c0_i32_0 : i32, i32
  }
  func.func @transform_3(%arg0: i32) -> (i32, i32) {
    %c0_i32 = arith.constant 0 : i32
    %c0_i32_0 = arith.constant 0 : i32
    return %arg0, %c0_i32 : i32, i32
  }
}

module attributes {stable_mosaic.version = 11 : i64} {
  func.func @_conv_pool_relu_kernel(%arg0: i32, %arg1: memref<4x128x256xbf16, #tpu.memory_space<vmem>>, %arg2: memref<256x128xbf16, #tpu.memory_space<vmem>>, %arg3: memref<1x128xf32, #tpu.memory_space<vmem>>, %arg4: memref<128x128xf32, #tpu.memory_space<vmem>>) attributes {dimension_semantics = [#tpu.dimension_semantics<parallel>], iteration_bounds = array<i64: 1>, scalar_prefetch = 0 : i64, scratch_operands = 0 : i64, tpu.core_type = #tpu.core_type<tc>, window_params = [{transform_indices = @transform_0, window_bounds = array<i64: 4, 128, 256>}, {pipeline_mode = #tpu.pipeline_mode<synchronous>, transform_indices = @transform_1, window_bounds = array<i64: 256, 128>}, {pipeline_mode = #tpu.pipeline_mode<synchronous>, transform_indices = @transform_2, window_bounds = array<i64: 1, 128>}, {transform_indices = @transform_3, window_bounds = array<i64: 128, 128>}]} {
    %c0 = arith.constant 0 : index
    %c0_0 = arith.constant 0 : index
    %c0_1 = arith.constant 0 : index
    %0 = vector.load %arg1[%c0, %c0_0, %c0_1] : memref<4x128x256xbf16, #tpu.memory_space<vmem>>, vector<4x128x256xbf16>
    %1 = vector.shape_cast %0 : vector<4x128x256xbf16> to vector<512x256xbf16>
    %c0_2 = arith.constant 0 : index
    %c0_3 = arith.constant 0 : index
    %2 = vector.load %arg2[%c0_2, %c0_3] : memref<256x128xbf16, #tpu.memory_space<vmem>>, vector<256x128xbf16>
    %cst = arith.constant dense<0.000000e+00> : vector<512x128xf32>
    %3 = tpu.matmul %1, %2, %cst {dimension_numbers = #tpu.dot_dimension_numbers<[1], [0], [0], [1], [0, 0, 1, 1], [], []>} : vector<512x256xbf16>, vector<256x128xbf16>, vector<512x128xf32> -> vector<512x128xf32>
    %4 = vector.shape_cast %3 : vector<512x128xf32> to vector<4x128x128xf32>
    %5 = vector.extract_strided_slice %4 {offsets = [0, 0, 0], sizes = [1, 128, 128], strides = [1, 1, 1]} : vector<4x128x128xf32> to vector<1x128x128xf32>
    %6 = vector.shape_cast %5 : vector<1x128x128xf32> to vector<128x128xf32>
    %7 = vector.extract_strided_slice %4 {offsets = [1, 0, 0], sizes = [1, 128, 128], strides = [1, 1, 1]} : vector<4x128x128xf32> to vector<1x128x128xf32>
    %8 = vector.shape_cast %7 : vector<1x128x128xf32> to vector<128x128xf32>
    %9 = arith.maximumf %6, %8 : vector<128x128xf32>
    %10 = vector.extract_strided_slice %4 {offsets = [2, 0, 0], sizes = [1, 128, 128], strides = [1, 1, 1]} : vector<4x128x128xf32> to vector<1x128x128xf32>
    %11 = vector.shape_cast %10 : vector<1x128x128xf32> to vector<128x128xf32>
    %12 = vector.extract_strided_slice %4 {offsets = [3, 0, 0], sizes = [1, 128, 128], strides = [1, 1, 1]} : vector<4x128x128xf32> to vector<1x128x128xf32>
    %13 = vector.shape_cast %12 : vector<1x128x128xf32> to vector<128x128xf32>
    %14 = arith.maximumf %11, %13 : vector<128x128xf32>
    %15 = arith.maximumf %9, %14 : vector<128x128xf32>
    %c0_4 = arith.constant 0 : index
    %c0_5 = arith.constant 0 : index
    %16 = vector.load %arg3[%c0_4, %c0_5] : memref<1x128xf32, #tpu.memory_space<vmem>>, vector<1x128xf32>
    %17 = vector.broadcast %16 : vector<1x128xf32> to vector<128x128xf32>
    %18 = arith.addf %15, %17 : vector<128x128xf32>
    %cst_6 = arith.constant 0.000000e+00 : f32
    %19 = vector.broadcast %cst_6 : f32 to vector<128x128xf32>
    %20 = arith.maximumf %18, %19 : vector<128x128xf32>
    %c0_7 = arith.constant 0 : index
    %c0_8 = arith.constant 0 : index
    %21 = vector.load %arg4[%c0_7, %c0_8] : memref<128x128xf32, #tpu.memory_space<vmem>>, vector<128x128xf32>
    tpu.vector_store %arg4[%c0_7, %c0_8], %20 {strides = array<i32>} : memref<128x128xf32, #tpu.memory_space<vmem>>, vector<128x128xf32>,
    return
  }
  func.func @transform_0(%arg0: i32) -> (i32, i32, i32) {
    %c0_i32 = arith.constant 0 : i32
    %c0_i32_0 = arith.constant 0 : i32
    %c0_i32_1 = arith.constant 0 : i32
    return %c0_i32, %arg0, %c0_i32_0 : i32, i32, i32
  }
  func.func @transform_1(%arg0: i32) -> (i32, i32) {
    %c0_i32 = arith.constant 0 : i32
    %c0_i32_0 = arith.constant 0 : i32
    %c0_i32_1 = arith.constant 0 : i32
    return %c0_i32, %c0_i32_0 : i32, i32
  }
  func.func @transform_2(%arg0: i32) -> (i32, i32) {
    %c0_i32 = arith.constant 0 : i32
    %c0_i32_0 = arith.constant 0 : i32
    %c0_i32_1 = arith.constant 0 : i32
    return %c0_i32, %c0_i32_0 : i32, i32
  }
  func.func @transform_3(%arg0: i32) -> (i32, i32) {
    %c0_i32 = arith.constant 0 : i32
    %c0_i32_0 = arith.constant 0 : i32
    return %arg0, %c0_i32 : i32, i32
  }
}

module attributes {stable_mosaic.version = 11 : i64} {
  func.func @_mlp_logsoftmax_kernel(%arg0: i32, %arg1: memref<8x2048xbf16, #tpu.memory_space<vmem>>, %arg2: memref<2048x128xbf16, #tpu.memory_space<vmem>>, %arg3: memref<1x128xf32, #tpu.memory_space<vmem>>, %arg4: memref<128x128xbf16, #tpu.memory_space<vmem>>, %arg5: memref<1x128xf32, #tpu.memory_space<vmem>>, %arg6: memref<8x128xf32, #tpu.memory_space<vmem>>) attributes {dimension_semantics = [#tpu.dimension_semantics<parallel>], iteration_bounds = array<i64: 1>, scalar_prefetch = 0 : i64, scratch_operands = 0 : i64, tpu.core_type = #tpu.core_type<tc>, window_params = [{transform_indices = @transform_0, window_bounds = array<i64: 8, 2048>}, {pipeline_mode = #tpu.pipeline_mode<synchronous>, transform_indices = @transform_1, window_bounds = array<i64: 2048, 128>}, {pipeline_mode = #tpu.pipeline_mode<synchronous>, transform_indices = @transform_2, window_bounds = array<i64: 1, 128>}, {pipeline_mode = #tpu.pipeline_mode<synchronous>, transform_indices = @transform_3, window_bounds = array<i64: 128, 128>}, {pipeline_mode = #tpu.pipeline_mode<synchronous>, transform_indices = @transform_4, window_bounds = array<i64: 1, 128>}, {transform_indices = @transform_5, window_bounds = array<i64: 8, 128>}]} {
    %c0 = arith.constant 0 : index
    %c0_0 = arith.constant 0 : index
    %0 = vector.load %arg1[%c0, %c0_0] : memref<8x2048xbf16, #tpu.memory_space<vmem>>, vector<8x2048xbf16>
    %c0_1 = arith.constant 0 : index
    %c0_2 = arith.constant 0 : index
    %1 = vector.load %arg2[%c0_1, %c0_2] : memref<2048x128xbf16, #tpu.memory_space<vmem>>, vector<2048x128xbf16>
    %cst = arith.constant dense<0.000000e+00> : vector<8x128xf32>
    %2 = tpu.matmul %0, %1, %cst {dimension_numbers = #tpu.dot_dimension_numbers<[1], [0], [0], [1], [0, 0, 1, 1], [], []>} : vector<8x2048xbf16>, vector<2048x128xbf16>, vector<8x128xf32> -> vector<8x128xf32>
    %c0_3 = arith.constant 0 : index
    %c0_4 = arith.constant 0 : index
    %3 = vector.load %arg3[%c0_3, %c0_4] : memref<1x128xf32, #tpu.memory_space<vmem>>, vector<1x128xf32>
    %4 = vector.broadcast %3 : vector<1x128xf32> to vector<8x128xf32>
    %5 = arith.addf %2, %4 : vector<8x128xf32>
    %cst_5 = arith.constant 0.000000e+00 : f32
    %6 = vector.broadcast %cst_5 : f32 to vector<8x128xf32>
    %7 = arith.maximumf %5, %6 : vector<8x128xf32>
    %8 = arith.truncf %7 : vector<8x128xf32> to vector<8x128xbf16>
    %c0_6 = arith.constant 0 : index
    %c0_7 = arith.constant 0 : index
    %9 = vector.load %arg4[%c0_6, %c0_7] : memref<128x128xbf16, #tpu.memory_space<vmem>>, vector<128x128xbf16>
    %cst_8 = arith.constant dense<0.000000e+00> : vector<8x128xf32>
    %10 = tpu.matmul %8, %9, %cst_8 {dimension_numbers = #tpu.dot_dimension_numbers<[1], [0], [0], [1], [0, 0, 1, 1], [], []>} : vector<8x128xbf16>, vector<128x128xbf16>, vector<8x128xf32> -> vector<8x128xf32>
    %c0_9 = arith.constant 0 : index
    %c0_10 = arith.constant 0 : index
    %11 = vector.load %arg5[%c0_9, %c0_10] : memref<1x128xf32, #tpu.memory_space<vmem>>, vector<1x128xf32>
    %12 = vector.broadcast %11 : vector<1x128xf32> to vector<8x128xf32>
    %13 = arith.addf %10, %12 : vector<8x128xf32>
    %cst_11 = arith.constant dense<0xFF800000> : vector<8xf32>
    %14 = vector.multi_reduction <maximumf>, %13, %cst_11 [1] : vector<8x128xf32> to vector<8xf32>
    %15 = vector.shape_cast %14 : vector<8xf32> to vector<8x1xf32>
    %16 = vector.broadcast %15 : vector<8x1xf32> to vector<8x128xf32>
    %17 = arith.subf %13, %16 : vector<8x128xf32>
    %18 = math.exp %17 : vector<8x128xf32>
    %cst_12 = arith.constant dense<0.000000e+00> : vector<8xf32>
    %19 = vector.multi_reduction <add>, %18, %cst_12 [1] : vector<8x128xf32> to vector<8xf32>
    %20 = vector.shape_cast %19 : vector<8xf32> to vector<8x1xf32>
    %21 = math.log %20 : vector<8x1xf32>
    %22 = vector.broadcast %21 : vector<8x1xf32> to vector<8x128xf32>
    %23 = arith.subf %17, %22 : vector<8x128xf32>
    %c0_13 = arith.constant 0 : index
    %c0_14 = arith.constant 0 : index
    %24 = vector.load %arg6[%c0_13, %c0_14] : memref<8x128xf32, #tpu.memory_space<vmem>>, vector<8x128xf32>
    tpu.vector_store %arg6[%c0_13, %c0_14], %23 {strides = array<i32>} : memref<8x128xf32, #tpu.memory_space<vmem>>, vector<8x128xf32>,
    return
  }
  func.func @transform_0(%arg0: i32) -> (i32, i32) {
    %c0_i32 = arith.constant 0 : i32
    %c0_i32_0 = arith.constant 0 : i32
    return %arg0, %c0_i32 : i32, i32
  }
  func.func @transform_1(%arg0: i32) -> (i32, i32) {
    %c0_i32 = arith.constant 0 : i32
    %c0_i32_0 = arith.constant 0 : i32
    %c0_i32_1 = arith.constant 0 : i32
    return %c0_i32, %c0_i32_0 : i32, i32
  }
  func.func @transform_2(%arg0: i32) -> (i32, i32) {
    %c0_i32 = arith.constant 0 : i32
    %c0_i32_0 = arith.constant 0 : i32
    %c0_i32_1 = arith.constant 0 : i32
    return %c0_i32, %c0_i32_0 : i32, i32
  }
  func.func @transform_3(%arg0: i32) -> (i32, i32) {
    %c0_i32 = arith.constant 0 : i32
    %c0_i32_0 = arith.constant 0 : i32
    %c0_i32_1 = arith.constant 0 : i32
    return %c0_i32, %c0_i32_0 : i32, i32
  }
  func.func @transform_4(%arg0: i32) -> (i32, i32) {
    %c0_i32 = arith.constant 0 : i32
    %c0_i32_0 = arith.constant 0 : i32
    %c0_i32_1 = arith.constant 0 : i32
    return %c0_i32, %c0_i32_0 : i32, i32
  }
  func.func @transform_5(%arg0: i32) -> (i32, i32) {
    %c0_i32 = arith.constant 0 : i32
    %c0_i32_0 = arith.constant 0 : i32
    return %arg0, %c0_i32 : i32, i32
  }
}

</mosaic_0001>

<bundles_post_ra>
// kernel: net_forward.3
= control target key start
LH: loop header
LB: loop body
LE: loop exit
PB: predicated region body
PF: predicated region fallthrough
CT: control target
= control target key end

     0   :  { %vm2047_vm0 = vcmask 261120   ;;  %s8755_s1 = inlined_call_operand.vmem [shape: bf16[32,128], index: 1, kind: input, shape index: {}]   ;;  %s8756_s0 = inlined_call_operand.vmem [shape: bf16[4,1152,32], index: 0, kind: input, shape index: {}]   ;;  %s8757_s2 = inlined_call_operand.vmem [shape: f32[1,128], index: 2, kind: input, shape index: {}]   ;;  %s8758_s3 = inlined_call_operand.vmem [shape: f32[1152,128], index: 3, kind: output, shape index: {}]  }
   0x1   :  { %v6970_v0 = vld [vmem:[%s8755_s1 + $0x8] sm:$0xff]  ;;  %v6969_v1 = vld [vmem:[%s8755_s1] sm:$0xff]  ;;  %v6683_v10 = vld [vmem:[%s8756_s0 + $0x10] sm:$0xff] }
   0x2   :  { %2918 = vmatpush.bf16.msra.mxu0 %v6970_v0  ;;  %6971 = vmatpush.bf16.msra.mxu1 %v6970_v0  ;;  %v6681_v2 = vld [vmem:[%s8756_s0] sm:$0xff]  ;;  %v6682_v6 = vld [vmem:[%s8756_s0 + $0x8] sm:$0xff]  ;;  %v6755_v11 = vld [vmem:[%s8756_s0 + $0x250] sm:$0xff] }
   0x3   :  { %6972 = vmatpush.bf16.msra.mxu2 %v6970_v0  ;;  %6973 = vmatpush.bf16.msra.mxu3 %v6970_v0  ;;  %v6753_v3 = vld [vmem:[%s8756_s0 + $0x240] sm:$0xff]  ;;  %v6754_v7 = vld [vmem:[%s8756_s0 + $0x248] sm:$0xff]  ;;  %v6827_v12 = vld [vmem:[%s8756_s0 + $0x490] sm:$0xff] }
   0x4   :  { %v6825_v4 = vld [vmem:[%s8756_s0 + $0x480] sm:$0xff]  ;;  %v6826_v8 = vld [vmem:[%s8756_s0 + $0x488] sm:$0xff]  ;;  %v6899_v13 = vld [vmem:[%s8756_s0 + $0x6d0] sm:$0xff] }
   0x5   :  { %v6897_v5 = vld [vmem:[%s8756_s0 + $0x6c0] sm:$0xff]  ;;  %v6898_v9 = vld [vmem:[%s8756_s0 + $0x6c8] sm:$0xff]  ;;  %v6684_v14 = vld [vmem:[%s8756_s0 + $0x18] sm:$0xff] }
   0x6   :  { %2919 = vmatpush.bf16.msra.mxu0 %v6969_v1  ;;  %6974 = vmatpush.bf16.msra.mxu1 %v6969_v1  ;;  %v6756_v15 = vld [vmem:[%s8756_s0 + $0x258] sm:$0xff]  ;;  %v6685_v18 = vld [vmem:[%s8756_s0 + $0x20] sm:$0xff]  ;;  %v6686_v22 = vld [vmem:[%s8756_s0 + $0x28] sm:$0xff] }
   0x7   :  { %6975 = vmatpush.bf16.msra.mxu2 %v6969_v1  ;;  %6976 = vmatpush.bf16.msra.mxu3 %v6969_v1  ;;  %v6828_v16 = vld [vmem:[%s8756_s0 + $0x498] sm:$0xff]  ;;  %v6757_v19 = vld [vmem:[%s8756_s0 + $0x260] sm:$0xff]  ;;  %v6758_v23 = vld [vmem:[%s8756_s0 + $0x268] sm:$0xff] }
   0x8   :  { %v6900_v17 = vld [vmem:[%s8756_s0 + $0x6d8] sm:$0xff]  ;;  %v6829_v20 = vld [vmem:[%s8756_s0 + $0x4a0] sm:$0xff]  ;;  %v6830_v24 = vld [vmem:[%s8756_s0 + $0x4a8] sm:$0xff] }
   0x9   :  { %6393 = vmatmul.msk.bf16.vlgmr.msra.gmra.mxu0 %vm2047_vm0, %v6681_v2  ;;  %6465 = vmatmul.msk.bf16.vlgmr.msra.gmra.mxu1 %vm2047_vm0, %v6753_v3  ;;  %v6901_v21 = vld [vmem:[%s8756_s0 + $0x6e0] sm:$0xff]  ;;  %v6902_v25 = vld [vmem:[%s8756_s0 + $0x6e8] sm:$0xff]  ;;  %v6687_v26 = vld [vmem:[%s8756_s0 + $0x30] sm:$0xff] }
   0xa   :  { %6537 = vmatmul.msk.bf16.vlgmr.msra.gmra.mxu2 %vm2047_vm0, %v6825_v4  ;;  %6609 = vmatmul.msk.bf16.vlgmr.msra.gmra.mxu3 %vm2047_vm0, %v6897_v5  ;;  %v6759_v27 = vld [vmem:[%s8756_s0 + $0x270] sm:$0xff]  ;;  %v6688_v30 = vld [vmem:[%s8756_s0 + $0x38] sm:$0xff]  ;;  %v6689_v34 = vld [vmem:[%s8756_s0 + $0x40] sm:$0xff] }
   0xb   :  { %v6831_v28 = vld [vmem:[%s8756_s0 + $0x4b0] sm:$0xff]  ;;  %v6760_v31 = vld [vmem:[%s8756_s0 + $0x278] sm:$0xff]  ;;  %v6761_v35 = vld [vmem:[%s8756_s0 + $0x280] sm:$0xff] }
   0xc   :  { %v6903_v29 = vld [vmem:[%s8756_s0 + $0x6f0] sm:$0xff]  ;;  %v6832_v32 = vld [vmem:[%s8756_s0 + $0x4b8] sm:$0xff]  ;;  %v6833_v38 = vld [vmem:[%s8756_s0 + $0x4c0] sm:$0xff] }
   0xd   :  { %v6904_v33 = vld [vmem:[%s8756_s0 + $0x6f8] sm:$0xff]  ;;  %v6905_v39 = vld [vmem:[%s8756_s0 + $0x700] sm:$0xff]  ;;  %v6690_v52 = vld [vmem:[%s8756_s0 + $0x48] sm:$0xff] }
   0xe   :  { %v7154_v44 = vld [vmem:[%s8757_s2] ss:$0 sm:$0xff]  ;;  %v6762_v53 = vld [vmem:[%s8756_s0 + $0x288] sm:$0xff] }
   0xf   :  { %v6834_v58 = vld [vmem:[%s8756_s0 + $0x4c8] sm:$0xff] }
  0x10   :  { %v6906_v59 = vld [vmem:[%s8756_s0 + $0x708] sm:$0xff] }
  0x19   :  { %6394 = vmatmul.msk.bf16.gmra.mxu0 %vm2047_vm0, %v6682_v6  ;;  %6466 = vmatmul.msk.bf16.gmra.mxu1 %vm2047_vm0, %v6754_v7 }
  0x1a   :  { %6538 = vmatmul.msk.bf16.gmra.mxu2 %vm2047_vm0, %v6826_v8  ;;  %6610 = vmatmul.msk.bf16.gmra.mxu3 %vm2047_vm0, %v6898_v9 }
  0x29   :  { %6395 = vmatmul.msk.bf16.gmra.mxu0 %vm2047_vm0, %v6683_v10  ;;  %6467 = vmatmul.msk.bf16.gmra.mxu1 %vm2047_vm0, %v6755_v11  ;;  %v6691_v10 = vld [vmem:[%s8756_s0 + $0x50] sm:$0xff] }
  0x2a   :  { %6539 = vmatmul.msk.bf16.gmra.mxu2 %vm2047_vm0, %v6827_v12  ;;  %6611 = vmatmul.msk.bf16.gmra.mxu3 %vm2047_vm0, %v6899_v13  ;;  %v6763_v11 = vld [vmem:[%s8756_s0 + $0x290] sm:$0xff] }
  0x39   :  { %6396 = vmatmul.msk.bf16.gmra.mxu0 %vm2047_vm0, %v6684_v14  ;;  %6468 = vmatmul.msk.bf16.gmra.mxu1 %vm2047_vm0, %v6756_v15 }
  0x3a   :  { %6540 = vmatmul.msk.bf16.gmra.mxu2 %vm2047_vm0, %v6828_v16  ;;  %6612 = vmatmul.msk.bf16.gmra.mxu3 %vm2047_vm0, %v6900_v17  ;;  %v6835_v16 = vld [vmem:[%s8756_s0 + $0x4d0] sm:$0xff] }
  0x3b   :  { %v6907_v17 = vld [vmem:[%s8756_s0 + $0x710] sm:$0xff] }
  0x49   :  { %6397 = vmatmul.msk.bf16.gmra.mxu0 %vm2047_vm0, %v6685_v18  ;;  %6469 = vmatmul.msk.bf16.gmra.mxu1 %vm2047_vm0, %v6757_v19 }
  0x4a   :  { %6541 = vmatmul.msk.bf16.gmra.mxu2 %vm2047_vm0, %v6829_v20  ;;  %6613 = vmatmul.msk.bf16.gmra.mxu3 %vm2047_vm0, %v6901_v21 }
  0x59   :  { %6398 = vmatmul.msk.bf16.gmra.mxu0 %vm2047_vm0, %v6686_v22  ;;  %6470 = vmatmul.msk.bf16.gmra.mxu1 %vm2047_vm0, %v6758_v23 }
  0x5a   :  { %6542 = vmatmul.msk.bf16.gmra.mxu2 %vm2047_vm0, %v6830_v24  ;;  %6614 = vmatmul.msk.bf16.gmra.mxu3 %vm2047_vm0, %v6902_v25 }
  0x69   :  { %6399 = vmatmul.msk.bf16.gmra.mxu0 %vm2047_vm0, %v6687_v26  ;;  %6471 = vmatmul.msk.bf16.gmra.mxu1 %vm2047_vm0, %v6759_v27 }
  0x6a   :  { %6543 = vmatmul.msk.bf16.gmra.mxu2 %vm2047_vm0, %v6831_v28  ;;  %6615 = vmatmul.msk.bf16.gmra.mxu3 %vm2047_vm0, %v6903_v29 }
  0x79   :  { %6400 = vmatmul.msk.bf16.gmra.mxu0 %vm2047_vm0, %v6688_v30  ;;  %6472 = vmatmul.msk.bf16.gmra.mxu1 %vm2047_vm0, %v6760_v31 }
  0x7a   :  { %6544 = vmatmul.msk.bf16.gmra.mxu2 %vm2047_vm0, %v6832_v32  ;;  %6616 = vmatmul.msk.bf16.gmra.mxu3 %vm2047_vm0, %v6904_v33  ;;  %v6692_v32 = vld [vmem:[%s8756_s0 + $0x58] sm:$0xff] }
  0x7b   :  { %v6764_v33 = vld [vmem:[%s8756_s0 + $0x298] sm:$0xff] }
  0x86   :  { %v2921_v36 = vpop.f32.mrf.mxu0  ;;  %v3281_v37 = vpop.f32.mrf.mxu1 }
  0x87   :  { %v4361_v40 = vmax.f32 %v2921_v36, %v3281_v37 }
  0x89   :  { %6401 = vmatmul.msk.bf16.gmra.mxu0 %vm2047_vm0, %v6689_v34  ;;  %6473 = vmatmul.msk.bf16.gmra.mxu1 %vm2047_vm0, %v6761_v35 }
  0x8a   :  { %6545 = vmatmul.msk.bf16.gmra.mxu2 %vm2047_vm0, %v6833_v38  ;;  %6617 = vmatmul.msk.bf16.gmra.mxu3 %vm2047_vm0, %v6905_v39  ;;  %v6836_v38 = vld [vmem:[%s8756_s0 + $0x4d8] sm:$0xff] }
  0x8b   :  { %v6908_v39 = vld [vmem:[%s8756_s0 + $0x718] sm:$0xff] }
  0x8d   :  { %v3641_v41 = vpop.f32.mrf.mxu2  ;;  %v4001_v42 = vpop.f32.mrf.mxu3 }
  0x8e   :  { %v4505_v43 = vmax.f32 %v3641_v41, %v4001_v42  ;;  %v2923_v45 = vpop.f32.mrf.mxu0  ;;  %v3283_v46 = vpop.f32.mrf.mxu1 }
  0x8f   :  { %v4362_v54 = vmax.f32 %v2923_v45, %v3283_v46 }
  0x90   :  { %v4649_v47 = vmax.f32 %v4361_v40, %v4505_v43 }
  0x92   :  { %v4797_v48 = vadd.f32 %v7154_v44, %v4649_v47 }
  0x94   :  { %v4941_v49 = vmax.f32 %v4797_v48, 0.0 }
  0x95   :  { %v3643_v50 = vpop.f32.mrf.mxu2  ;;  %v4003_v51 = vpop.f32.mrf.mxu3 }
  0x96   :  { %5085 = vst [vmem:[%s8758_s3] sm:$0xff] %v4941_v49  ;;  %v4506_v55 = vmax.f32 %v3643_v50, %v4003_v51  ;;  %v2926_v56 = vpop.f32.mrf.mxu0  ;;  %v3286_v57 = vpop.f32.mrf.mxu1 }
  0x97   :  { %v4363_v63 = vmax.f32 %v2926_v56, %v3286_v57  ;;  %v6765_v56 = vld [vmem:[%s8756_s0 + $0x2a0] sm:$0xff] }
  0x98   :  { %v4650_v60 = vmax.f32 %v4362_v54, %v4506_v55  ;;  %v6693_v55 = vld [vmem:[%s8756_s0 + $0x60] sm:$0xff] }
  0x99   :  { %6402 = vmatmul.msk.bf16.gmra.mxu0 %vm2047_vm0, %v6690_v52  ;;  %6474 = vmatmul.msk.bf16.gmra.mxu1 %vm2047_vm0, %v6762_v53 }
  0x9a   :  { %v4798_v61 = vadd.f32 %v7154_v44, %v4650_v60  ;;  %6546 = vmatmul.msk.bf16.gmra.mxu2 %vm2047_vm0, %v6834_v58  ;;  %6618 = vmatmul.msk.bf16.gmra.mxu3 %vm2047_vm0, %v6906_v59 }
  0x9c   :  { %v4942_v62 = vmax.f32 %v4798_v61, 0.0  ;;  %v6837_v61 = vld [vmem:[%s8756_s0 + $0x4e0] sm:$0xff] }
  0x9d   :  { %v3646_v0 = vpop.f32.mrf.mxu2  ;;  %v4006_v1 = vpop.f32.mrf.mxu3 }
  0x9e   :  { %5086 = vst [vmem:[%s8758_s3 + $0x8] sm:$0xff] %v4942_v62  ;;  %v4507_v2 = vmax.f32 %v3646_v0, %v4006_v1  ;;  %v2928_v3 = vpop.f32.mrf.mxu0  ;;  %v3288_v4 = vpop.f32.mrf.mxu1  ;;  %v6909_v62 = vld [vmem:[%s8756_s0 + $0x720] sm:$0xff] }
  0x9f   :  { %v4364_v12 = vmax.f32 %v2928_v3, %v3288_v4 }
  0xa0   :  { %v4651_v5 = vmax.f32 %v4363_v63, %v4507_v2 }
  0xa2   :  { %v4799_v6 = vadd.f32 %v7154_v44, %v4651_v5 }
  0xa4   :  { %v4943_v7 = vmax.f32 %v4799_v6, 0.0 }
  0xa5   :  { %v3648_v8 = vpop.f32.mrf.mxu2  ;;  %v4008_v9 = vpop.f32.mrf.mxu3 }
  0xa6   :  { %5087 = vst [vmem:[%s8758_s3 + $0x10] sm:$0xff] %v4943_v7  ;;  %v4508_v13 = vmax.f32 %v3648_v8, %v4008_v9  ;;  %v2931_v14 = vpop.f32.mrf.mxu0  ;;  %v3291_v15 = vpop.f32.mrf.mxu1 }
  0xa7   :  { %v4365_v21 = vmax.f32 %v2931_v14, %v3291_v15  ;;  %v6766_v14 = vld [vmem:[%s8756_s0 + $0x2a8] sm:$0xff] }
  0xa8   :  { %v4652_v18 = vmax.f32 %v4364_v12, %v4508_v13  ;;  %v6694_v13 = vld [vmem:[%s8756_s0 + $0x68] sm:$0xff] }
  0xa9   :  { %6403 = vmatmul.msk.bf16.gmra.mxu0 %vm2047_vm0, %v6691_v10  ;;  %6475 = vmatmul.msk.bf16.gmra.mxu1 %vm2047_vm0, %v6763_v11 }
  0xaa   :  { %v4800_v19 = vadd.f32 %v7154_v44, %v4652_v18  ;;  %6547 = vmatmul.msk.bf16.gmra.mxu2 %vm2047_vm0, %v6835_v16  ;;  %6619 = vmatmul.msk.bf16.gmra.mxu3 %vm2047_vm0, %v6907_v17 }
  0xac   :  { %v4944_v20 = vmax.f32 %v4800_v19, 0.0  ;;  %v6838_v19 = vld [vmem:[%s8756_s0 + $0x4e8] sm:$0xff] }
  0xad   :  { %v3651_v22 = vpop.f32.mrf.mxu2  ;;  %v4011_v23 = vpop.f32.mrf.mxu3 }
  0xae   :  { %5088 = vst [vmem:[%s8758_s3 + $0x18] sm:$0xff] %v4944_v20  ;;  %v4509_v24 = vmax.f32 %v3651_v22, %v4011_v23  ;;  %v2933_v25 = vpop.f32.mrf.mxu0  ;;  %v3293_v26 = vpop.f32.mrf.mxu1  ;;  %v6910_v20 = vld [vmem:[%s8756_s0 + $0x728] sm:$0xff] }
  0xaf   :  { %v4366_v34 = vmax.f32 %v2933_v25, %v3293_v26 }
  0xb0   :  { %v4653_v27 = vmax.f32 %v4365_v21, %v4509_v24 }
  0xb2   :  { %v4801_v28 = vadd.f32 %v7154_v44, %v4653_v27 }
  0xb4   :  { %v4945_v29 = vmax.f32 %v4801_v28, 0.0 }
  0xb5   :  { %v3653_v30 = vpop.f32.mrf.mxu2  ;;  %v4013_v31 = vpop.f32.mrf.mxu3 }
  0xb6   :  { %5089 = vst [vmem:[%s8758_s3 + $0x20] sm:$0xff] %v4945_v29  ;;  %v4510_v35 = vmax.f32 %v3653_v30, %v4013_v31  ;;  %v2936_v36 = vpop.f32.mrf.mxu0  ;;  %v3296_v37 = vpop.f32.mrf.mxu1 }
  0xb7   :  { %v4367_v43 = vmax.f32 %v2936_v36, %v3296_v37  ;;  %v6767_v36 = vld [vmem:[%s8756_s0 + $0x2b0] sm:$0xff] }
  0xb8   :  { %v4654_v40 = vmax.f32 %v4366_v34, %v4510_v35  ;;  %v6695_v35 = vld [vmem:[%s8756_s0 + $0x70] sm:$0xff] }
  0xb9   :  { %6404 = vmatmul.msk.bf16.gmra.mxu0 %vm2047_vm0, %v6692_v32  ;;  %6476 = vmatmul.msk.bf16.gmra.mxu1 %vm2047_vm0, %v6764_v33 }
  0xba   :  { %v4802_v41 = vadd.f32 %v7154_v44, %v4654_v40  ;;  %6548 = vmatmul.msk.bf16.gmra.mxu2 %vm2047_vm0, %v6836_v38  ;;  %6620 = vmatmul.msk.bf16.gmra.mxu3 %vm2047_vm0, %v6908_v39 }
  0xbc   :  { %v4946_v42 = vmax.f32 %v4802_v41, 0.0  ;;  %v6839_v41 = vld [vmem:[%s8756_s0 + $0x4f0] sm:$0xff] }
  0xbd   :  { %v3656_v45 = vpop.f32.mrf.mxu2  ;;  %v4016_v46 = vpop.f32.mrf.mxu3 }
  0xbe   :  { %5090 = vst [vmem:[%s8758_s3 + $0x28] sm:$0xff] %v4946_v42  ;;  %v4511_v47 = vmax.f32 %v3656_v45, %v4016_v46  ;;  %v2938_v48 = vpop.f32.mrf.mxu0  ;;  %v3298_v49 = vpop.f32.mrf.mxu1  ;;  %v6911_v42 = vld [vmem:[%s8756_s0 + $0x730] sm:$0xff] }
  0xbf   :  { %v4368_v57 = vmax.f32 %v2938_v48, %v3298_v49 }
  0xc0   :  { %v4655_v50 = vmax.f32 %v4367_v43, %v4511_v47 }
  0xc2   :  { %v4803_v51 = vadd.f32 %v7154_v44, %v4655_v50 }
  0xc4   :  { %v4947_v52 = vmax.f32 %v4803_v51, 0.0 }
  0xc5   :  { %v3658_v53 = vpop.f32.mrf.mxu2  ;;  %v4018_v54 = vpop.f32.mrf.mxu3 }
  0xc6   :  { %5091 = vst [vmem:[%s8758_s3 + $0x30] sm:$0xff] %v4947_v52  ;;  %v4512_v58 = vmax.f32 %v3658_v53, %v4018_v54  ;;  %v2941_v59 = vpop.f32.mrf.mxu0  ;;  %v3301_v60 = vpop.f32.mrf.mxu1 }
  0xc7   :  { %v4369_v2 = vmax.f32 %v2941_v59, %v3301_v60  ;;  %v6768_v59 = vld [vmem:[%s8756_s0 + $0x2b8] sm:$0xff] }
  0xc8   :  { %v4656_v63 = vmax.f32 %v4368_v57, %v4512_v58  ;;  %v6696_v58 = vld [vmem:[%s8756_s0 + $0x78] sm:$0xff] }
  0xc9   :  { %6405 = vmatmul.msk.bf16.gmra.mxu0 %vm2047_vm0, %v6693_v55  ;;  %6477 = vmatmul.msk.bf16.gmra.mxu1 %vm2047_vm0, %v6765_v56 }
  0xca   :  { %v4804_v0 = vadd.f32 %v7154_v44, %v4656_v63  ;;  %6549 = vmatmul.msk.bf16.gmra.mxu2 %vm2047_vm0, %v6837_v61  ;;  %6621 = vmatmul.msk.bf16.gmra.mxu3 %vm2047_vm0, %v6909_v62 }
  0xcc   :  { %v4948_v1 = vmax.f32 %v4804_v0, 0.0  ;;  %v6840_v0 = vld [vmem:[%s8756_s0 + $0x4f8] sm:$0xff] }
  0xcd   :  { %v3661_v3 = vpop.f32.mrf.mxu2  ;;  %v4021_v4 = vpop.f32.mrf.mxu3 }
  0xce   :  { %5092 = vst [vmem:[%s8758_s3 + $0x38] sm:$0xff] %v4948_v1  ;;  %v4513_v5 = vmax.f32 %v3661_v3, %v4021_v4  ;;  %v2943_v6 = vpop.f32.mrf.mxu0  ;;  %v3303_v7 = vpop.f32.mrf.mxu1  ;;  %v6912_v1 = vld [vmem:[%s8756_s0 + $0x738] sm:$0xff] }
  0xcf   :  { %v4370_v15 = vmax.f32 %v2943_v6, %v3303_v7 }
  0xd0   :  { %v4657_v8 = vmax.f32 %v4369_v2, %v4513_v5 }
  0xd2   :  { %v4805_v9 = vadd.f32 %v7154_v44, %v4657_v8 }
  0xd4   :  { %v4949_v10 = vmax.f32 %v4805_v9, 0.0 }
  0xd5   :  { %v3663_v11 = vpop.f32.mrf.mxu2  ;;  %v4023_v12 = vpop.f32.mrf.mxu3 }
  0xd6   :  { %5093 = vst [vmem:[%s8758_s3 + $0x40] sm:$0xff] %v4949_v10  ;;  %v4514_v16 = vmax.f32 %v3663_v11, %v4023_v12  ;;  %v2946_v17 = vpop.f32.mrf.mxu0  ;;  %v3306_v18 = vpop.f32.mrf.mxu1 }
  0xd7   :  { %v4371_v24 = vmax.f32 %v2946_v17, %v3306_v18  ;;  %v6769_v17 = vld [vmem:[%s8756_s0 + $0x2c0] sm:$0xff] }
  0xd8   :  { %v4658_v21 = vmax.f32 %v4370_v15, %v4514_v16  ;;  %v6697_v16 = vld [vmem:[%s8756_s0 + $0x80] sm:$0xff] }
  0xd9   :  { %6406 = vmatmul.msk.bf16.gmra.mxu0 %vm2047_vm0, %v6694_v13  ;;  %6478 = vmatmul.msk.bf16.gmra.mxu1 %vm2047_vm0, %v6766_v14 }
  0xda   :  { %v4806_v22 = vadd.f32 %v7154_v44, %v4658_v21  ;;  %6550 = vmatmul.msk.bf16.gmra.mxu2 %vm2047_vm0, %v6838_v19  ;;  %6622 = vmatmul.msk.bf16.gmra.mxu3 %vm2047_vm0, %v6910_v20 }
  0xdc   :  { %v4950_v23 = vmax.f32 %v4806_v22, 0.0  ;;  %v6841_v22 = vld [vmem:[%s8756_s0 + $0x500] sm:$0xff] }
  0xdd   :  { %v3666_v25 = vpop.f32.mrf.mxu2  ;;  %v4026_v26 = vpop.f32.mrf.mxu3 }
  0xde   :  { %5094 = vst [vmem:[%s8758_s3 + $0x48] sm:$0xff] %v4950_v23  ;;  %v4515_v27 = vmax.f32 %v3666_v25, %v4026_v26  ;;  %v2948_v28 = vpop.f32.mrf.mxu0  ;;  %v3308_v29 = vpop.f32.mrf.mxu1  ;;  %v6913_v23 = vld [vmem:[%s8756_s0 + $0x740] sm:$0xff] }
  0xdf   :  { %v4372_v37 = vmax.f32 %v2948_v28, %v3308_v29 }
  0xe0   :  { %v4659_v30 = vmax.f32 %v4371_v24, %v4515_v27 }
  0xe2   :  { %v4807_v31 = vadd.f32 %v7154_v44, %v4659_v30 }
  0xe4   :  { %v4951_v32 = vmax.f32 %v4807_v31, 0.0 }
  0xe5   :  { %v3668_v33 = vpop.f32.mrf.mxu2  ;;  %v4028_v34 = vpop.f32.mrf.mxu3 }
  0xe6   :  { %5095 = vst [vmem:[%s8758_s3 + $0x50] sm:$0xff] %v4951_v32  ;;  %v4516_v38 = vmax.f32 %v3668_v33, %v4028_v34  ;;  %v2951_v39 = vpop.f32.mrf.mxu0  ;;  %v3311_v40 = vpop.f32.mrf.mxu1 }
  0xe7   :  { %v4373_v47 = vmax.f32 %v2951_v39, %v3311_v40  ;;  %v6770_v39 = vld [vmem:[%s8756_s0 + $0x2c8] sm:$0xff] }
  0xe8   :  { %v4660_v43 = vmax.f32 %v4372_v37, %v4516_v38  ;;  %v6698_v38 = vld [vmem:[%s8756_s0 + $0x88] sm:$0xff] }
  0xe9   :  { %6407 = vmatmul.msk.bf16.gmra.mxu0 %vm2047_vm0, %v6695_v35  ;;  %6479 = vmatmul.msk.bf16.gmra.mxu1 %vm2047_vm0, %v6767_v36 }
  0xea   :  { %v4808_v45 = vadd.f32 %v7154_v44, %v4660_v43  ;;  %6551 = vmatmul.msk.bf16.gmra.mxu2 %vm2047_vm0, %v6839_v41  ;;  %6623 = vmatmul.msk.bf16.gmra.mxu3 %vm2047_vm0, %v6911_v42 }
  0xec   :  { %v4952_v46 = vmax.f32 %v4808_v45, 0.0  ;;  %v6842_v45 = vld [vmem:[%s8756_s0 + $0x508] sm:$0xff] }
  0xed   :  { %v3671_v48 = vpop.f32.mrf.mxu2  ;;  %v4031_v49 = vpop.f32.mrf.mxu3 }
  0xee   :  { %5096 = vst [vmem:[%s8758_s3 + $0x58] sm:$0xff] %v4952_v46  ;;  %v4517_v50 = vmax.f32 %v3671_v48, %v4031_v49  ;;  %v2953_v51 = vpop.f32.mrf.mxu0  ;;  %v3313_v52 = vpop.f32.mrf.mxu1  ;;  %v6914_v46 = vld [vmem:[%s8756_s0 + $0x748] sm:$0xff] }
  0xef   :  { %v4374_v60 = vmax.f32 %v2953_v51, %v3313_v52 }
  0xf0   :  { %v4661_v53 = vmax.f32 %v4373_v47, %v4517_v50 }
  0xf2   :  { %v4809_v54 = vadd.f32 %v7154_v44, %v4661_v53 }
  0xf4   :  { %v4953_v55 = vmax.f32 %v4809_v54, 0.0 }
  0xf5   :  { %v3673_v56 = vpop.f32.mrf.mxu2  ;;  %v4033_v57 = vpop.f32.mrf.mxu3 }
  0xf6   :  { %5097 = vst [vmem:[%s8758_s3 + $0x60] sm:$0xff] %v4953_v55  ;;  %v4518_v61 = vmax.f32 %v3673_v56, %v4033_v57  ;;  %v2956_v62 = vpop.f32.mrf.mxu0  ;;  %v3316_v63 = vpop.f32.mrf.mxu1 }
  0xf7   :  { %v4375_v5 = vmax.f32 %v2956_v62, %v3316_v63  ;;  %v6771_v62 = vld [vmem:[%s8756_s0 + $0x2d0] sm:$0xff] }
  0xf8   :  { %v4662_v2 = vmax.f32 %v4374_v60, %v4518_v61  ;;  %v6699_v61 = vld [vmem:[%s8756_s0 + $0x90] sm:$0xff] }
  0xf9   :  { %6408 = vmatmul.msk.bf16.gmra.mxu0 %vm2047_vm0, %v6696_v58  ;;  %6480 = vmatmul.msk.bf16.gmra.mxu1 %vm2047_vm0, %v6768_v59 }
  0xfa   :  { %v4810_v3 = vadd.f32 %v7154_v44, %v4662_v2  ;;  %6552 = vmatmul.msk.bf16.gmra.mxu2 %vm2047_vm0, %v6840_v0  ;;  %6624 = vmatmul.msk.bf16.gmra.mxu3 %vm2047_vm0, %v6912_v1 }
  0xfc   :  { %v4954_v4 = vmax.f32 %v4810_v3, 0.0  ;;  %v6843_v3 = vld [vmem:[%s8756_s0 + $0x510] sm:$0xff] }
  0xfd   :  { %v3676_v6 = vpop.f32.mrf.mxu2  ;;  %v4036_v7 = vpop.f32.mrf.mxu3 }
  0xfe   :  { %5098 = vst [vmem:[%s8758_s3 + $0x68] sm:$0xff] %v4954_v4  ;;  %v4519_v8 = vmax.f32 %v3676_v6, %v4036_v7  ;;  %v2958_v9 = vpop.f32.mrf.mxu0  ;;  %v3318_v10 = vpop.f32.mrf.mxu1  ;;  %v6915_v4 = vld [vmem:[%s8756_s0 + $0x750] sm:$0xff] }
  0xff   :  { %v4376_v18 = vmax.f32 %v2958_v9, %v3318_v10 }
 0x100   :  { %v4663_v11 = vmax.f32 %v4375_v5, %v4519_v8 }
 0x102   :  { %v4811_v12 = vadd.f32 %v7154_v44, %v4663_v11 }
 0x104   :  { %v4955_v13 = vmax.f32 %v4811_v12, 0.0 }
 0x105   :  { %v3678_v14 = vpop.f32.mrf.mxu2  ;;  %v4038_v15 = vpop.f32.mrf.mxu3 }
 0x106   :  { %5099 = vst [vmem:[%s8758_s3 + $0x70] sm:$0xff] %v4955_v13  ;;  %v4520_v19 = vmax.f32 %v3678_v14, %v4038_v15  ;;  %v2961_v20 = vpop.f32.mrf.mxu0  ;;  %v3321_v21 = vpop.f32.mrf.mxu1 }
 0x107   :  { %v4377_v27 = vmax.f32 %v2961_v20, %v3321_v21  ;;  %v6772_v20 = vld [vmem:[%s8756_s0 + $0x2d8] sm:$0xff] }
 0x108   :  { %v4664_v24 = vmax.f32 %v4376_v18, %v4520_v19  ;;  %v6700_v19 = vld [vmem:[%s8756_s0 + $0x98] sm:$0xff] }
 0x109   :  { %6409 = vmatmul.msk.bf16.gmra.mxu0 %vm2047_vm0, %v6697_v16  ;;  %6481 = vmatmul.msk.bf16.gmra.mxu1 %vm2047_vm0, %v6769_v17 }
 0x10a   :  { %v4812_v25 = vadd.f32 %v7154_v44, %v4664_v24  ;;  %6553 = vmatmul.msk.bf16.gmra.mxu2 %vm2047_vm0, %v6841_v22  ;;  %6625 = vmatmul.msk.bf16.gmra.mxu3 %vm2047_vm0, %v6913_v23 }
 0x10c   :  { %v4956_v26 = vmax.f32 %v4812_v25, 0.0  ;;  %v6844_v25 = vld [vmem:[%s8756_s0 + $0x518] sm:$0xff] }
 0x10d   :  { %v3681_v28 = vpop.f32.mrf.mxu2  ;;  %v4041_v29 = vpop.f32.mrf.mxu3 }
 0x10e   :  { %5100 = vst [vmem:[%s8758_s3 + $0x78] sm:$0xff] %v4956_v26  ;;  %v4521_v30 = vmax.f32 %v3681_v28, %v4041_v29  ;;  %v2963_v31 = vpop.f32.mrf.mxu0  ;;  %v3323_v32 = vpop.f32.mrf.mxu1  ;;  %v6916_v26 = vld [vmem:[%s8756_s0 + $0x758] sm:$0xff] }
 0x10f   :  { %v4378_v40 = vmax.f32 %v2963_v31, %v3323_v32 }
 0x110   :  { %v4665_v33 = vmax.f32 %v4377_v27, %v4521_v30 }
 0x112   :  { %v4813_v34 = vadd.f32 %v7154_v44, %v4665_v33 }
 0x114   :  { %v4957_v35 = vmax.f32 %v4813_v34, 0.0 }
 0x115   :  { %v3683_v36 = vpop.f32.mrf.mxu2  ;;  %v4043_v37 = vpop.f32.mrf.mxu3 }
 0x116   :  { %5101 = vst [vmem:[%s8758_s3 + $0x80] sm:$0xff] %v4957_v35  ;;  %v4522_v41 = vmax.f32 %v3683_v36, %v4043_v37  ;;  %v2966_v42 = vpop.f32.mrf.mxu0  ;;  %v3326_v43 = vpop.f32.mrf.mxu1 }
 0x117   :  { %v4379_v50 = vmax.f32 %v2966_v42, %v3326_v43  ;;  %v6773_v42 = vld [vmem:[%s8756_s0 + $0x2e0] sm:$0xff] }
 0x118   :  { %v4666_v47 = vmax.f32 %v4378_v40, %v4522_v41  ;;  %v6701_v41 = vld [vmem:[%s8756_s0 + $0xa0] sm:$0xff] }
 0x119   :  { %6410 = vmatmul.msk.bf16.gmra.mxu0 %vm2047_vm0, %v6698_v38  ;;  %6482 = vmatmul.msk.bf16.gmra.mxu1 %vm2047_vm0, %v6770_v39 }
 0x11a   :  { %v4814_v48 = vadd.f32 %v7154_v44, %v4666_v47  ;;  %6554 = vmatmul.msk.bf16.gmra.mxu2 %vm2047_vm0, %v6842_v45  ;;  %6626 = vmatmul.msk.bf16.gmra.mxu3 %vm2047_vm0, %v6914_v46 }
 0x11c   :  { %v4958_v49 = vmax.f32 %v4814_v48, 0.0  ;;  %v6845_v48 = vld [vmem:[%s8756_s0 + $0x520] sm:$0xff] }
 0x11d   :  { %v3686_v51 = vpop.f32.mrf.mxu2  ;;  %v4046_v52 = vpop.f32.mrf.mxu3 }
 0x11e   :  { %5102 = vst [vmem:[%s8758_s3 + $0x88] sm:$0xff] %v4958_v49  ;;  %v4523_v53 = vmax.f32 %v3686_v51, %v4046_v52  ;;  %v2968_v54 = vpop.f32.mrf.mxu0  ;;  %v3328_v55 = vpop.f32.mrf.mxu1  ;;  %v6917_v49 = vld [vmem:[%s8756_s0 + $0x760] sm:$0xff] }
 0x11f   :  { %v4380_v63 = vmax.f32 %v2968_v54, %v3328_v55 }
 0x120   :  { %v4667_v56 = vmax.f32 %v4379_v50, %v4523_v53 }
 0x122   :  { %v4815_v57 = vadd.f32 %v7154_v44, %v4667_v56 }
 0x124   :  { %v4959_v58 = vmax.f32 %v4815_v57, 0.0 }
 0x125   :  { %v3688_v59 = vpop.f32.mrf.mxu2  ;;  %v4048_v60 = vpop.f32.mrf.mxu3 }
 0x126   :  { %5103 = vst [vmem:[%s8758_s3 + $0x90] sm:$0xff] %v4959_v58  ;;  %v4524_v0 = vmax.f32 %v3688_v59, %v4048_v60  ;;  %v2971_v1 = vpop.f32.mrf.mxu0  ;;  %v3331_v2 = vpop.f32.mrf.mxu1 }
 0x127   :  { %v4381_v8 = vmax.f32 %v2971_v1, %v3331_v2  ;;  %v6774_v1 = vld [vmem:[%s8756_s0 + $0x2e8] sm:$0xff] }
 0x128   :  { %v4668_v5 = vmax.f32 %v4380_v63, %v4524_v0  ;;  %v6702_v0 = vld [vmem:[%s8756_s0 + $0xa8] sm:$0xff] }
 0x129   :  { %6411 = vmatmul.msk.bf16.gmra.mxu0 %vm2047_vm0, %v6699_v61  ;;  %6483 = vmatmul.msk.bf16.gmra.mxu1 %vm2047_vm0, %v6771_v62 }
 0x12a   :  { %v4816_v6 = vadd.f32 %v7154_v44, %v4668_v5  ;;  %6555 = vmatmul.msk.bf16.gmra.mxu2 %vm2047_vm0, %v6843_v3  ;;  %6627 = vmatmul.msk.bf16.gmra.mxu3 %vm2047_vm0, %v6915_v4 }
 0x12c   :  { %v4960_v7 = vmax.f32 %v4816_v6, 0.0  ;;  %v6846_v6 = vld [vmem:[%s8756_s0 + $0x528] sm:$0xff] }
 0x12d   :  { %v3691_v9 = vpop.f32.mrf.mxu2  ;;  %v4051_v10 = vpop.f32.mrf.mxu3 }
 0x12e   :  { %5104 = vst [vmem:[%s8758_s3 + $0x98] sm:$0xff] %v4960_v7  ;;  %v4525_v11 = vmax.f32 %v3691_v9, %v4051_v10  ;;  %v2973_v12 = vpop.f32.mrf.mxu0  ;;  %v3333_v13 = vpop.f32.mrf.mxu1  ;;  %v6918_v7 = vld [vmem:[%s8756_s0 + $0x768] sm:$0xff] }
 0x12f   :  { %v4382_v21 = vmax.f32 %v2973_v12, %v3333_v13 }
 0x130   :  { %v4669_v14 = vmax.f32 %v4381_v8, %v4525_v11 }
 0x132   :  { %v4817_v15 = vadd.f32 %v7154_v44, %v4669_v14 }
 0x134   :  { %v4961_v16 = vmax.f32 %v4817_v15, 0.0 }
 0x135   :  { %v3693_v17 = vpop.f32.mrf.mxu2  ;;  %v4053_v18 = vpop.f32.mrf.mxu3 }
 0x136   :  { %5105 = vst [vmem:[%s8758_s3 + $0xa0] sm:$0xff] %v4961_v16  ;;  %v4526_v22 = vmax.f32 %v3693_v17, %v4053_v18  ;;  %v2976_v23 = vpop.f32.mrf.mxu0  ;;  %v3336_v24 = vpop.f32.mrf.mxu1 }
 0x137   :  { %v4383_v30 = vmax.f32 %v2976_v23, %v3336_v24  ;;  %v6775_v23 = vld [vmem:[%s8756_s0 + $0x2f0] sm:$0xff] }
 0x138   :  { %v4670_v27 = vmax.f32 %v4382_v21, %v4526_v22  ;;  %v6703_v22 = vld [vmem:[%s8756_s0 + $0xb0] sm:$0xff] }
 0x139   :  { %6412 = vmatmul.msk.bf16.gmra.mxu0 %vm2047_vm0, %v6700_v19  ;;  %6484 = vmatmul.msk.bf16.gmra.mxu1 %vm2047_vm0, %v6772_v20 }
 0x13a   :  { %v4818_v28 = vadd.f32 %v7154_v44, %v4670_v27  ;;  %6556 = vmatmul.msk.bf16.gmra.mxu2 %vm2047_vm0, %v6844_v25  ;;  %6628 = vmatmul.msk.bf16.gmra.mxu3 %vm2047_vm0, %v6916_v26 }
 0x13c   :  { %v4962_v29 = vmax.f32 %v4818_v28, 0.0  ;;  %v6847_v28 = vld [vmem:[%s8756_s0 + $0x530] sm:$0xff] }
 0x13d   :  { %v3696_v31 = vpop.f32.mrf.mxu2  ;;  %v4056_v32 = vpop.f32.mrf.mxu3 }
 0x13e   :  { %5106 = vst [vmem:[%s8758_s3 + $0xa8] sm:$0xff] %v4962_v29  ;;  %v4527_v33 = vmax.f32 %v3696_v31, %v4056_v32  ;;  %v2978_v34 = vpop.f32.mrf.mxu0  ;;  %v3338_v35 = vpop.f32.mrf.mxu1  ;;  %v6919_v29 = vld [vmem:[%s8756_s0 + $0x770] sm:$0xff] }
 0x13f   :  { %v4384_v43 = vmax.f32 %v2978_v34, %v3338_v35 }
 0x140   :  { %v4671_v36 = vmax.f32 %v4383_v30, %v4527_v33 }
 0x142   :  { %v4819_v37 = vadd.f32 %v7154_v44, %v4671_v36 }
 0x144   :  { %v4963_v38 = vmax.f32 %v4819_v37, 0.0 }
 0x145   :  { %v3698_v39 = vpop.f32.mrf.mxu2  ;;  %v4058_v40 = vpop.f32.mrf.mxu3 }
 0x146   :  { %5107 = vst [vmem:[%s8758_s3 + $0xb0] sm:$0xff] %v4963_v38  ;;  %v4528_v45 = vmax.f32 %v3698_v39, %v4058_v40  ;;  %v2981_v46 = vpop.f32.mrf.mxu0  ;;  %v3341_v47 = vpop.f32.mrf.mxu1 }
 0x147   :  { %v4385_v53 = vmax.f32 %v2981_v46, %v3341_v47  ;;  %v6776_v46 = vld [vmem:[%s8756_s0 + $0x2f8] sm:$0xff] }
 0x148   :  { %v4672_v50 = vmax.f32 %v4384_v43, %v4528_v45  ;;  %v6704_v45 = vld [vmem:[%s8756_s0 + $0xb8] sm:$0xff] }
 0x149   :  { %6413 = vmatmul.msk.bf16.gmra.mxu0 %vm2047_vm0, %v6701_v41  ;;  %6485 = vmatmul.msk.bf16.gmra.mxu1 %vm2047_vm0, %v6773_v42 }
 0x14a   :  { %v4820_v51 = vadd.f32 %v7154_v44, %v4672_v50  ;;  %6557 = vmatmul.msk.bf16.gmra.mxu2 %vm2047_vm0, %v6845_v48  ;;  %6629 = vmatmul.msk.bf16.gmra.mxu3 %vm2047_vm0, %v6917_v49 }
 0x14c   :  { %v4964_v52 = vmax.f32 %v4820_v51, 0.0  ;;  %v6848_v51 = vld [vmem:[%s8756_s0 + $0x538] sm:$0xff] }
 0x14d   :  { %v3701_v54 = vpop.f32.mrf.mxu2  ;;  %v4061_v55 = vpop.f32.mrf.mxu3 }
 0x14e   :  { %5108 = vst [vmem:[%s8758_s3 + $0xb8] sm:$0xff] %v4964_v52  ;;  %v4529_v56 = vmax.f32 %v3701_v54, %v4061_v55  ;;  %v2983_v57 = vpop.f32.mrf.mxu0  ;;  %v3343_v58 = vpop.f32.mrf.mxu1  ;;  %v6920_v52 = vld [vmem:[%s8756_s0 + $0x778] sm:$0xff] }
 0x14f   :  { %v4386_v2 = vmax.f32 %v2983_v57, %v3343_v58 }
 0x150   :  { %v4673_v59 = vmax.f32 %v4385_v53, %v4529_v56 }
 0x152   :  { %v4821_v60 = vadd.f32 %v7154_v44, %v4673_v59 }
 0x154   :  { %v4965_v61 = vmax.f32 %v4821_v60, 0.0 }
 0x155   :  { %v3703_v62 = vpop.f32.mrf.mxu2  ;;  %v4063_v63 = vpop.f32.mrf.mxu3 }
 0x156   :  { %5109 = vst [vmem:[%s8758_s3 + $0xc0] sm:$0xff] %v4965_v61  ;;  %v4530_v3 = vmax.f32 %v3703_v62, %v4063_v63  ;;  %v2986_v4 = vpop.f32.mrf.mxu0  ;;  %v3346_v5 = vpop.f32.mrf.mxu1 }
 0x157   :  { %v4387_v11 = vmax.f32 %v2986_v4, %v3346_v5  ;;  %v6777_v4 = vld [vmem:[%s8756_s0 + $0x300] sm:$0xff] }
 0x158   :  { %v4674_v8 = vmax.f32 %v4386_v2, %v4530_v3  ;;  %v6705_v3 = vld [vmem:[%s8756_s0 + $0xc0] sm:$0xff] }
 0x159   :  { %6414 = vmatmul.msk.bf16.gmra.mxu0 %vm2047_vm0, %v6702_v0  ;;  %6486 = vmatmul.msk.bf16.gmra.mxu1 %vm2047_vm0, %v6774_v1 }
 0x15a   :  { %v4822_v9 = vadd.f32 %v7154_v44, %v4674_v8  ;;  %6558 = vmatmul.msk.bf16.gmra.mxu2 %vm2047_vm0, %v6846_v6  ;;  %6630 = vmatmul.msk.bf16.gmra.mxu3 %vm2047_vm0, %v6918_v7 }
 0x15c   :  { %v4966_v10 = vmax.f32 %v4822_v9, 0.0  ;;  %v6849_v9 = vld [vmem:[%s8756_s0 + $0x540] sm:$0xff] }
 0x15d   :  { %v3706_v12 = vpop.f32.mrf.mxu2  ;;  %v4066_v13 = vpop.f32.mrf.mxu3 }
 0x15e   :  { %5110 = vst [vmem:[%s8758_s3 + $0xc8] sm:$0xff] %v4966_v10  ;;  %v4531_v14 = vmax.f32 %v3706_v12, %v4066_v13  ;;  %v2988_v15 = vpop.f32.mrf.mxu0  ;;  %v3348_v16 = vpop.f32.mrf.mxu1  ;;  %v6921_v10 = vld [vmem:[%s8756_s0 + $0x780] sm:$0xff] }
 0x15f   :  { %v4388_v24 = vmax.f32 %v2988_v15, %v3348_v16 }
 0x160   :  { %v4675_v17 = vmax.f32 %v4387_v11, %v4531_v14 }
 0x162   :  { %v4823_v18 = vadd.f32 %v7154_v44, %v4675_v17 }
 0x164   :  { %v4967_v19 = vmax.f32 %v4823_v18, 0.0 }
 0x165   :  { %v3708_v20 = vpop.f32.mrf.mxu2  ;;  %v4068_v21 = vpop.f32.mrf.mxu3 }
 0x166   :  { %5111 = vst [vmem:[%s8758_s3 + $0xd0] sm:$0xff] %v4967_v19  ;;  %v4532_v25 = vmax.f32 %v3708_v20, %v4068_v21  ;;  %v2991_v26 = vpop.f32.mrf.mxu0  ;;  %v3351_v27 = vpop.f32.mrf.mxu1 }
 0x167   :  { %v4389_v33 = vmax.f32 %v2991_v26, %v3351_v27  ;;  %v6778_v26 = vld [vmem:[%s8756_s0 + $0x308] sm:$0xff] }
 0x168   :  { %v4676_v30 = vmax.f32 %v4388_v24, %v4532_v25  ;;  %v6706_v25 = vld [vmem:[%s8756_s0 + $0xc8] sm:$0xff] }
 0x169   :  { %6415 = vmatmul.msk.bf16.gmra.mxu0 %vm2047_vm0, %v6703_v22  ;;  %6487 = vmatmul.msk.bf16.gmra.mxu1 %vm2047_vm0, %v6775_v23 }
 0x16a   :  { %v4824_v31 = vadd.f32 %v7154_v44, %v4676_v30  ;;  %6559 = vmatmul.msk.bf16.gmra.mxu2 %vm2047_vm0, %v6847_v28  ;;  %6631 = vmatmul.msk.bf16.gmra.mxu3 %vm2047_vm0, %v6919_v29 }
 0x16c   :  { %v4968_v32 = vmax.f32 %v4824_v31, 0.0  ;;  %v6850_v31 = vld [vmem:[%s8756_s0 + $0x548] sm:$0xff] }
 0x16d   :  { %v3711_v34 = vpop.f32.mrf.mxu2  ;;  %v4071_v35 = vpop.f32.mrf.mxu3 }
 0x16e   :  { %5112 = vst [vmem:[%s8758_s3 + $0xd8] sm:$0xff] %v4968_v32  ;;  %v4533_v36 = vmax.f32 %v3711_v34, %v4071_v35  ;;  %v2993_v37 = vpop.f32.mrf.mxu0  ;;  %v3353_v38 = vpop.f32.mrf.mxu1  ;;  %v6922_v32 = vld [vmem:[%s8756_s0 + $0x788] sm:$0xff] }
 0x16f   :  { %v4390_v47 = vmax.f32 %v2993_v37, %v3353_v38 }
 0x170   :  { %v4677_v39 = vmax.f32 %v4389_v33, %v4533_v36 }
 0x172   :  { %v4825_v40 = vadd.f32 %v7154_v44, %v4677_v39 }
 0x174   :  { %v4969_v41 = vmax.f32 %v4825_v40, 0.0 }
 0x175   :  { %v3713_v42 = vpop.f32.mrf.mxu2  ;;  %v4073_v43 = vpop.f32.mrf.mxu3 }
 0x176   :  { %5113 = vst [vmem:[%s8758_s3 + $0xe0] sm:$0xff] %v4969_v41  ;;  %v4534_v48 = vmax.f32 %v3713_v42, %v4073_v43  ;;  %v2996_v49 = vpop.f32.mrf.mxu0  ;;  %v3356_v50 = vpop.f32.mrf.mxu1 }
 0x177   :  { %v4391_v56 = vmax.f32 %v2996_v49, %v3356_v50  ;;  %v6779_v49 = vld [vmem:[%s8756_s0 + $0x310] sm:$0xff] }
 0x178   :  { %v4678_v53 = vmax.f32 %v4390_v47, %v4534_v48  ;;  %v6707_v48 = vld [vmem:[%s8756_s0 + $0xd0] sm:$0xff] }
 0x179   :  { %6416 = vmatmul.msk.bf16.gmra.mxu0 %vm2047_vm0, %v6704_v45  ;;  %6488 = vmatmul.msk.bf16.gmra.mxu1 %vm2047_vm0, %v6776_v46 }
 0x17a   :  { %v4826_v54 = vadd.f32 %v7154_v44, %v4678_v53  ;;  %6560 = vmatmul.msk.bf16.gmra.mxu2 %vm2047_vm0, %v6848_v51  ;;  %6632 = vmatmul.msk.bf16.gmra.mxu3 %vm2047_vm0, %v6920_v52 }
 0x17c   :  { %v4970_v55 = vmax.f32 %v4826_v54, 0.0  ;;  %v6851_v54 = vld [vmem:[%s8756_s0 + $0x550] sm:$0xff] }
 0x17d   :  { %v3716_v57 = vpop.f32.mrf.mxu2  ;;  %v4076_v58 = vpop.f32.mrf.mxu3 }
 0x17e   :  { %5114 = vst [vmem:[%s8758_s3 + $0xe8] sm:$0xff] %v4970_v55  ;;  %v4535_v59 = vmax.f32 %v3716_v57, %v4076_v58  ;;  %v2998_v60 = vpop.f32.mrf.mxu0  ;;  %v3358_v61 = vpop.f32.mrf.mxu1  ;;  %v6923_v55 = vld [vmem:[%s8756_s0 + $0x790] sm:$0xff] }
 0x17f   :  { %v4392_v5 = vmax.f32 %v2998_v60, %v3358_v61 }
 0x180   :  { %v4679_v62 = vmax.f32 %v4391_v56, %v4535_v59 }
 0x182   :  { %v4827_v63 = vadd.f32 %v7154_v44, %v4679_v62 }
 0x184   :  { %v4971_v0 = vmax.f32 %v4827_v63, 0.0 }
 0x185   :  { %v3718_v1 = vpop.f32.mrf.mxu2  ;;  %v4078_v2 = vpop.f32.mrf.mxu3 }
 0x186   :  { %5115 = vst [vmem:[%s8758_s3 + $0xf0] sm:$0xff] %v4971_v0  ;;  %v4536_v6 = vmax.f32 %v3718_v1, %v4078_v2  ;;  %v3001_v7 = vpop.f32.mrf.mxu0  ;;  %v3361_v8 = vpop.f32.mrf.mxu1 }
 0x187   :  { %v4393_v14 = vmax.f32 %v3001_v7, %v3361_v8  ;;  %v6780_v7 = vld [vmem:[%s8756_s0 + $0x318] sm:$0xff] }
 0x188   :  { %v4680_v11 = vmax.f32 %v4392_v5, %v4536_v6  ;;  %v6708_v6 = vld [vmem:[%s8756_s0 + $0xd8] sm:$0xff] }
 0x189   :  { %6417 = vmatmul.msk.bf16.gmra.mxu0 %vm2047_vm0, %v6705_v3  ;;  %6489 = vmatmul.msk.bf16.gmra.mxu1 %vm2047_vm0, %v6777_v4 }
 0x18a   :  { %v4828_v12 = vadd.f32 %v7154_v44, %v4680_v11  ;;  %6561 = vmatmul.msk.bf16.gmra.mxu2 %vm2047_vm0, %v6849_v9  ;;  %6633 = vmatmul.msk.bf16.gmra.mxu3 %vm2047_vm0, %v6921_v10 }
 0x18c   :  { %v4972_v13 = vmax.f32 %v4828_v12, 0.0  ;;  %v6924_v12 = vld [vmem:[%s8756_s0 + $0x798] sm:$0xff] }
 0x18d   :  { %v3721_v15 = vpop.f32.mrf.mxu2  ;;  %v4081_v16 = vpop.f32.mrf.mxu3 }
 0x18e   :  { %5116 = vst [vmem:[%s8758_s3 + $0xf8] sm:$0xff] %v4972_v13  ;;  %v4537_v17 = vmax.f32 %v3721_v15, %v4081_v16  ;;  %v3003_v18 = vpop.f32.mrf.mxu0  ;;  %v3363_v19 = vpop.f32.mrf.mxu1 }
 0x18f   :  { %v4394_v27 = vmax.f32 %v3003_v18, %v3363_v19 }
 0x190   :  { %v4681_v20 = vmax.f32 %v4393_v14, %v4537_v17  ;;  %v7609_v14 = vld [vmem:[%s8757_s2] ss:$0 sm:$0xff] }
 0x192   :  { %v4829_v21 = vadd.f32 %v7154_v44, %v4681_v20 }
 0x194   :  { %v4973_v22 = vmax.f32 %v4829_v21, 0.0 }
 0x195   :  { %v3723_v23 = vpop.f32.mrf.mxu2  ;;  %v4083_v24 = vpop.f32.mrf.mxu3 }
 0x196   :  { %5117 = vst [vmem:[%s8758_s3 + $0x100] sm:$0xff] %v4973_v22  ;;  %v4538_v28 = vmax.f32 %v3723_v23, %v4083_v24  ;;  %v3006_v29 = vpop.f32.mrf.mxu0  ;;  %v3366_v30 = vpop.f32.mrf.mxu1 }
 0x197   :  { %v4395_v36 = vmax.f32 %v3006_v29, %v3366_v30  ;;  %v6781_v29 = vld [vmem:[%s8756_s0 + $0x320] sm:$0xff] }
 0x198   :  { %v4682_v33 = vmax.f32 %v4394_v27, %v4538_v28  ;;  %v6709_v28 = vld [vmem:[%s8756_s0 + $0xe0] sm:$0xff] }
 0x199   :  { %6418 = vmatmul.msk.bf16.gmra.mxu0 %vm2047_vm0, %v6706_v25  ;;  %6490 = vmatmul.msk.bf16.gmra.mxu1 %vm2047_vm0, %v6778_v26 }
 0x19a   :  { %v4830_v34 = vadd.f32 %v7154_v44, %v4682_v33  ;;  %6562 = vmatmul.msk.bf16.gmra.mxu2 %vm2047_vm0, %v6850_v31  ;;  %6634 = vmatmul.msk.bf16.gmra.mxu3 %vm2047_vm0, %v6922_v32 }
 0x19c   :  { %v4974_v35 = vmax.f32 %v4830_v34, 0.0  ;;  %v6853_v34 = vld [vmem:[%s8756_s0 + $0x560] sm:$0xff] }
 0x19d   :  { %v3726_v37 = vpop.f32.mrf.mxu2  ;;  %v4086_v38 = vpop.f32.mrf.mxu3 }
 0x19e   :  { %5118 = vst [vmem:[%s8758_s3 + $0x108] sm:$0xff] %v4974_v35  ;;  %v4539_v39 = vmax.f32 %v3726_v37, %v4086_v38  ;;  %v3008_v40 = vpop.f32.mrf.mxu0  ;;  %v3368_v41 = vpop.f32.mrf.mxu1  ;;  %v6925_v35 = vld [vmem:[%s8756_s0 + $0x7a0] sm:$0xff] }
 0x19f   :  { %v4396_v50 = vmax.f32 %v3008_v40, %v3368_v41 }
 0x1a0   :  { %v4683_v42 = vmax.f32 %v4395_v36, %v4539_v39 }
 0x1a2   :  { %v4831_v43 = vadd.f32 %v7154_v44, %v4683_v42 }
 0x1a4   :  { %v4975_v45 = vmax.f32 %v4831_v43, 0.0 }
 0x1a5   :  { %v3728_v46 = vpop.f32.mrf.mxu2  ;;  %v4088_v47 = vpop.f32.mrf.mxu3 }
 0x1a6   :  { %5119 = vst [vmem:[%s8758_s3 + $0x110] sm:$0xff] %v4975_v45  ;;  %v4540_v51 = vmax.f32 %v3728_v46, %v4088_v47  ;;  %v3011_v52 = vpop.f32.mrf.mxu0  ;;  %v3371_v53 = vpop.f32.mrf.mxu1 }
 0x1a7   :  { %v4397_v59 = vmax.f32 %v3011_v52, %v3371_v53  ;;  %v6782_v52 = vld [vmem:[%s8756_s0 + $0x328] sm:$0xff] }
 0x1a8   :  { %v4684_v56 = vmax.f32 %v4396_v50, %v4540_v51  ;;  %v6710_v51 = vld [vmem:[%s8756_s0 + $0xe8] sm:$0xff] }
 0x1a9   :  { %6419 = vmatmul.msk.bf16.gmra.mxu0 %vm2047_vm0, %v6707_v48  ;;  %6491 = vmatmul.msk.bf16.gmra.mxu1 %vm2047_vm0, %v6779_v49 }
 0x1aa   :  { %v4832_v57 = vadd.f32 %v7154_v44, %v4684_v56  ;;  %6563 = vmatmul.msk.bf16.gmra.mxu2 %vm2047_vm0, %v6851_v54  ;;  %6635 = vmatmul.msk.bf16.gmra.mxu3 %vm2047_vm0, %v6923_v55 }
 0x1ac   :  { %v4976_v58 = vmax.f32 %v4832_v57, 0.0  ;;  %v6854_v57 = vld [vmem:[%s8756_s0 + $0x568] sm:$0xff] }
 0x1ad   :  { %v3731_v60 = vpop.f32.mrf.mxu2  ;;  %v4091_v61 = vpop.f32.mrf.mxu3 }
 0x1ae   :  { %5120 = vst [vmem:[%s8758_s3 + $0x118] sm:$0xff] %v4976_v58  ;;  %v4541_v62 = vmax.f32 %v3731_v60, %v4091_v61  ;;  %v3013_v63 = vpop.f32.mrf.mxu0  ;;  %v3373_v0 = vpop.f32.mrf.mxu1  ;;  %v6926_v58 = vld [vmem:[%s8756_s0 + $0x7a8] sm:$0xff] }
 0x1af   :  { %v4398_v8 = vmax.f32 %v3013_v63, %v3373_v0 }
 0x1b0   :  { %v4685_v1 = vmax.f32 %v4397_v59, %v4541_v62 }
 0x1b2   :  { %v4833_v2 = vadd.f32 %v7154_v44, %v4685_v1  ;;  %v6852_v44 = vld [vmem:[%s8756_s0 + $0x558] sm:$0xff] }
 0x1b4   :  { %v4977_v3 = vmax.f32 %v4833_v2, 0.0 }
 0x1b5   :  { %v3733_v4 = vpop.f32.mrf.mxu2  ;;  %v4093_v5 = vpop.f32.mrf.mxu3 }
 0x1b6   :  { %5121 = vst [vmem:[%s8758_s3 + $0x120] sm:$0xff] %v4977_v3  ;;  %v4542_v9 = vmax.f32 %v3733_v4, %v4093_v5  ;;  %v3016_v10 = vpop.f32.mrf.mxu0  ;;  %v3376_v11 = vpop.f32.mrf.mxu1 }
 0x1b7   :  { %v4399_v17 = vmax.f32 %v3016_v10, %v3376_v11  ;;  %v6783_v10 = vld [vmem:[%s8756_s0 + $0x330] sm:$0xff] }
 0x1b8   :  { %v4686_v13 = vmax.f32 %v4398_v8, %v4542_v9  ;;  %v6711_v9 = vld [vmem:[%s8756_s0 + $0xf0] sm:$0xff] }
 0x1b9   :  { %6420 = vmatmul.msk.bf16.gmra.mxu0 %vm2047_vm0, %v6708_v6  ;;  %6492 = vmatmul.msk.bf16.gmra.mxu1 %vm2047_vm0, %v6780_v7 }
 0x1ba   :  { %v4834_v15 = vadd.f32 %v7609_v14, %v4686_v13  ;;  %6564 = vmatmul.msk.bf16.gmra.mxu2 %vm2047_vm0, %v6852_v44  ;;  %6636 = vmatmul.msk.bf16.gmra.mxu3 %vm2047_vm0, %v6924_v12 }
 0x1bc   :  { %v4978_v16 = vmax.f32 %v4834_v15, 0.0  ;;  %v6855_v15 = vld [vmem:[%s8756_s0 + $0x570] sm:$0xff] }
 0x1bd   :  { %v3736_v18 = vpop.f32.mrf.mxu2  ;;  %v4096_v19 = vpop.f32.mrf.mxu3 }
 0x1be   :  { %5122 = vst [vmem:[%s8758_s3 + $0x128] sm:$0xff] %v4978_v16  ;;  %v4543_v20 = vmax.f32 %v3736_v18, %v4096_v19  ;;  %v3018_v21 = vpop.f32.mrf.mxu0  ;;  %v3378_v22 = vpop.f32.mrf.mxu1  ;;  %v6927_v16 = vld [vmem:[%s8756_s0 + $0x7b0] sm:$0xff] }
 0x1bf   :  { %v4400_v30 = vmax.f32 %v3018_v21, %v3378_v22 }
 0x1c0   :  { %v4687_v23 = vmax.f32 %v4399_v17, %v4543_v20 }
 0x1c2   :  { %v4835_v24 = vadd.f32 %v7609_v14, %v4687_v23 }
 0x1c4   :  { %v4979_v25 = vmax.f32 %v4835_v24, 0.0 }
 0x1c5   :  { %v3738_v26 = vpop.f32.mrf.mxu2  ;;  %v4098_v27 = vpop.f32.mrf.mxu3 }
 0x1c6   :  { %5123 = vst [vmem:[%s8758_s3 + $0x130] sm:$0xff] %v4979_v25  ;;  %v4544_v31 = vmax.f32 %v3738_v26, %v4098_v27  ;;  %v3021_v32 = vpop.f32.mrf.mxu0  ;;  %v3381_v33 = vpop.f32.mrf.mxu1 }
 0x1c7   :  { %v4401_v39 = vmax.f32 %v3021_v32, %v3381_v33  ;;  %v6784_v32 = vld [vmem:[%s8756_s0 + $0x338] sm:$0xff] }
 0x1c8   :  { %v4688_v36 = vmax.f32 %v4400_v30, %v4544_v31  ;;  %v6712_v31 = vld [vmem:[%s8756_s0 + $0xf8] sm:$0xff] }
 0x1c9   :  { %6421 = vmatmul.msk.bf16.gmra.mxu0 %vm2047_vm0, %v6709_v28  ;;  %6493 = vmatmul.msk.bf16.gmra.mxu1 %vm2047_vm0, %v6781_v29 }
 0x1ca   :  { %v4836_v37 = vadd.f32 %v7609_v14, %v4688_v36  ;;  %6565 = vmatmul.msk.bf16.gmra.mxu2 %vm2047_vm0, %v6853_v34  ;;  %6637 = vmatmul.msk.bf16.gmra.mxu3 %vm2047_vm0, %v6925_v35 }
 0x1cc   :  { %v4980_v38 = vmax.f32 %v4836_v37, 0.0  ;;  %v6856_v37 = vld [vmem:[%s8756_s0 + $0x578] sm:$0xff] }
 0x1cd   :  { %v3741_v40 = vpop.f32.mrf.mxu2  ;;  %v4101_v41 = vpop.f32.mrf.mxu3 }
 0x1ce   :  { %5124 = vst [vmem:[%s8758_s3 + $0x138] sm:$0xff] %v4980_v38  ;;  %v4545_v42 = vmax.f32 %v3741_v40, %v4101_v41  ;;  %v3023_v43 = vpop.f32.mrf.mxu0  ;;  %v3383_v45 = vpop.f32.mrf.mxu1  ;;  %v6928_v38 = vld [vmem:[%s8756_s0 + $0x7b8] sm:$0xff] }
 0x1cf   :  { %v4402_v53 = vmax.f32 %v3023_v43, %v3383_v45 }
 0x1d0   :  { %v4689_v46 = vmax.f32 %v4401_v39, %v4545_v42 }
 0x1d2   :  { %v4837_v47 = vadd.f32 %v7609_v14, %v4689_v46 }
 0x1d4   :  { %v4981_v48 = vmax.f32 %v4837_v47, 0.0 }
 0x1d5   :  { %v3743_v49 = vpop.f32.mrf.mxu2  ;;  %v4103_v50 = vpop.f32.mrf.mxu3 }
 0x1d6   :  { %5125 = vst [vmem:[%s8758_s3 + $0x140] sm:$0xff] %v4981_v48  ;;  %v4546_v54 = vmax.f32 %v3743_v49, %v4103_v50  ;;  %v3026_v55 = vpop.f32.mrf.mxu0  ;;  %v3386_v56 = vpop.f32.mrf.mxu1 }
 0x1d7   :  { %v4403_v62 = vmax.f32 %v3026_v55, %v3386_v56  ;;  %v6785_v55 = vld [vmem:[%s8756_s0 + $0x340] sm:$0xff] }
 0x1d8   :  { %v4690_v59 = vmax.f32 %v4402_v53, %v4546_v54  ;;  %v6713_v54 = vld [vmem:[%s8756_s0 + $0x100] sm:$0xff] }
 0x1d9   :  { %6422 = vmatmul.msk.bf16.gmra.mxu0 %vm2047_vm0, %v6710_v51  ;;  %6494 = vmatmul.msk.bf16.gmra.mxu1 %vm2047_vm0, %v6782_v52 }
 0x1da   :  { %v4838_v60 = vadd.f32 %v7609_v14, %v4690_v59  ;;  %6566 = vmatmul.msk.bf16.gmra.mxu2 %vm2047_vm0, %v6854_v57  ;;  %6638 = vmatmul.msk.bf16.gmra.mxu3 %vm2047_vm0, %v6926_v58 }
 0x1dc   :  { %v4982_v61 = vmax.f32 %v4838_v60, 0.0  ;;  %v6857_v60 = vld [vmem:[%s8756_s0 + $0x580] sm:$0xff] }
 0x1dd   :  { %v3746_v63 = vpop.f32.mrf.mxu2  ;;  %v4106_v0 = vpop.f32.mrf.mxu3 }
 0x1de   :  { %5126 = vst [vmem:[%s8758_s3 + $0x148] sm:$0xff] %v4982_v61  ;;  %v4547_v1 = vmax.f32 %v3746_v63, %v4106_v0  ;;  %v3028_v2 = vpop.f32.mrf.mxu0  ;;  %v3388_v3 = vpop.f32.mrf.mxu1  ;;  %v6929_v61 = vld [vmem:[%s8756_s0 + $0x7c0] sm:$0xff] }
 0x1df   :  { %v4404_v11 = vmax.f32 %v3028_v2, %v3388_v3 }
 0x1e0   :  { %v4691_v4 = vmax.f32 %v4403_v62, %v4547_v1 }
 0x1e2   :  { %v4839_v5 = vadd.f32 %v7609_v14, %v4691_v4 }
 0x1e4   :  { %v4983_v6 = vmax.f32 %v4839_v5, 0.0 }
 0x1e5   :  { %v3748_v7 = vpop.f32.mrf.mxu2  ;;  %v4108_v8 = vpop.f32.mrf.mxu3 }
 0x1e6   :  { %5127 = vst [vmem:[%s8758_s3 + $0x150] sm:$0xff] %v4983_v6  ;;  %v4548_v44 = vmax.f32 %v3748_v7, %v4108_v8  ;;  %v3031_v12 = vpop.f32.mrf.mxu0  ;;  %v3391_v13 = vpop.f32.mrf.mxu1 }
 0x1e7   :  { %v4405_v20 = vmax.f32 %v3031_v12, %v3391_v13  ;;  %v6786_v12 = vld [vmem:[%s8756_s0 + $0x348] sm:$0xff] }
 0x1e8   :  { %v4692_v17 = vmax.f32 %v4404_v11, %v4548_v44  ;;  %v6714_v44 = vld [vmem:[%s8756_s0 + $0x108] sm:$0xff] }
 0x1e9   :  { %6423 = vmatmul.msk.bf16.gmra.mxu0 %vm2047_vm0, %v6711_v9  ;;  %6495 = vmatmul.msk.bf16.gmra.mxu1 %vm2047_vm0, %v6783_v10 }
 0x1ea   :  { %v4840_v18 = vadd.f32 %v7609_v14, %v4692_v17  ;;  %6567 = vmatmul.msk.bf16.gmra.mxu2 %vm2047_vm0, %v6855_v15  ;;  %6639 = vmatmul.msk.bf16.gmra.mxu3 %vm2047_vm0, %v6927_v16 }
 0x1ec   :  { %v4984_v19 = vmax.f32 %v4840_v18, 0.0  ;;  %v6858_v18 = vld [vmem:[%s8756_s0 + $0x588] sm:$0xff] }
 0x1ed   :  { %v3751_v21 = vpop.f32.mrf.mxu2  ;;  %v4111_v22 = vpop.f32.mrf.mxu3 }
 0x1ee   :  { %5128 = vst [vmem:[%s8758_s3 + $0x158] sm:$0xff] %v4984_v19  ;;  %v4549_v23 = vmax.f32 %v3751_v21, %v4111_v22  ;;  %v3033_v24 = vpop.f32.mrf.mxu0  ;;  %v3393_v25 = vpop.f32.mrf.mxu1  ;;  %v6930_v19 = vld [vmem:[%s8756_s0 + $0x7c8] sm:$0xff] }
 0x1ef   :  { %v4406_v33 = vmax.f32 %v3033_v24, %v3393_v25 }
 0x1f0   :  { %v4693_v26 = vmax.f32 %v4405_v20, %v4549_v23 }
 0x1f2   :  { %v4841_v27 = vadd.f32 %v7609_v14, %v4693_v26 }
 0x1f4   :  { %v4985_v28 = vmax.f32 %v4841_v27, 0.0 }
 0x1f5   :  { %v3753_v29 = vpop.f32.mrf.mxu2  ;;  %v4113_v30 = vpop.f32.mrf.mxu3 }
 0x1f6   :  { %5129 = vst [vmem:[%s8758_s3 + $0x160] sm:$0xff] %v4985_v28  ;;  %v4550_v34 = vmax.f32 %v3753_v29, %v4113_v30  ;;  %v3036_v35 = vpop.f32.mrf.mxu0  ;;  %v3396_v36 = vpop.f32.mrf.mxu1 }
 0x1f7   :  { %v4407_v42 = vmax.f32 %v3036_v35, %v3396_v36  ;;  %v6787_v35 = vld [vmem:[%s8756_s0 + $0x350] sm:$0xff] }
 0x1f8   :  { %v4694_v39 = vmax.f32 %v4406_v33, %v4550_v34  ;;  %v6715_v34 = vld [vmem:[%s8756_s0 + $0x110] sm:$0xff] }
 0x1f9   :  { %6424 = vmatmul.msk.bf16.gmra.mxu0 %vm2047_vm0, %v6712_v31  ;;  %6496 = vmatmul.msk.bf16.gmra.mxu1 %vm2047_vm0, %v6784_v32 }
 0x1fa   :  { %v4842_v40 = vadd.f32 %v7609_v14, %v4694_v39  ;;  %6568 = vmatmul.msk.bf16.gmra.mxu2 %vm2047_vm0, %v6856_v37  ;;  %6640 = vmatmul.msk.bf16.gmra.mxu3 %vm2047_vm0, %v6928_v38 }
 0x1fc   :  { %v4986_v41 = vmax.f32 %v4842_v40, 0.0  ;;  %v6859_v40 = vld [vmem:[%s8756_s0 + $0x590] sm:$0xff] }
 0x1fd   :  { %v3756_v43 = vpop.f32.mrf.mxu2  ;;  %v4116_v45 = vpop.f32.mrf.mxu3 }
 0x1fe   :  { %5130 = vst [vmem:[%s8758_s3 + $0x168] sm:$0xff] %v4986_v41  ;;  %v4551_v46 = vmax.f32 %v3756_v43, %v4116_v45  ;;  %v3038_v47 = vpop.f32.mrf.mxu0  ;;  %v3398_v48 = vpop.f32.mrf.mxu1  ;;  %v6931_v41 = vld [vmem:[%s8756_s0 + $0x7d0] sm:$0xff] }
 0x1ff   :  { %v4408_v56 = vmax.f32 %v3038_v47, %v3398_v48 }
 0x200   :  { %v4695_v49 = vmax.f32 %v4407_v42, %v4551_v46 }
 0x202   :  { %v4843_v50 = vadd.f32 %v7609_v14, %v4695_v49 }
 0x204   :  { %v4987_v51 = vmax.f32 %v4843_v50, 0.0 }
 0x205   :  { %v3758_v52 = vpop.f32.mrf.mxu2  ;;  %v4118_v53 = vpop.f32.mrf.mxu3 }
 0x206   :  { %5131 = vst [vmem:[%s8758_s3 + $0x170] sm:$0xff] %v4987_v51  ;;  %v4552_v57 = vmax.f32 %v3758_v52, %v4118_v53  ;;  %v3041_v58 = vpop.f32.mrf.mxu0  ;;  %v3401_v59 = vpop.f32.mrf.mxu1 }
 0x207   :  { %v4409_v1 = vmax.f32 %v3041_v58, %v3401_v59  ;;  %v6788_v58 = vld [vmem:[%s8756_s0 + $0x358] sm:$0xff] }
 0x208   :  { %v4696_v62 = vmax.f32 %v4408_v56, %v4552_v57  ;;  %v6716_v57 = vld [vmem:[%s8756_s0 + $0x118] sm:$0xff] }
 0x209   :  { %6425 = vmatmul.msk.bf16.gmra.mxu0 %vm2047_vm0, %v6713_v54  ;;  %6497 = vmatmul.msk.bf16.gmra.mxu1 %vm2047_vm0, %v6785_v55 }
 0x20a   :  { %v4844_v63 = vadd.f32 %v7609_v14, %v4696_v62  ;;  %6569 = vmatmul.msk.bf16.gmra.mxu2 %vm2047_vm0, %v6857_v60  ;;  %6641 = vmatmul.msk.bf16.gmra.mxu3 %vm2047_vm0, %v6929_v61 }
 0x20c   :  { %v4988_v0 = vmax.f32 %v4844_v63, 0.0  ;;  %v6860_v63 = vld [vmem:[%s8756_s0 + $0x598] sm:$0xff] }
 0x20d   :  { %v3761_v2 = vpop.f32.mrf.mxu2  ;;  %v4121_v3 = vpop.f32.mrf.mxu3 }
 0x20e   :  { %5132 = vst [vmem:[%s8758_s3 + $0x178] sm:$0xff] %v4988_v0  ;;  %v4553_v4 = vmax.f32 %v3761_v2, %v4121_v3  ;;  %v3043_v5 = vpop.f32.mrf.mxu0  ;;  %v3403_v6 = vpop.f32.mrf.mxu1  ;;  %v6932_v0 = vld [vmem:[%s8756_s0 + $0x7d8] sm:$0xff] }
 0x20f   :  { %v4410_v13 = vmax.f32 %v3043_v5, %v3403_v6 }
 0x210   :  { %v4697_v7 = vmax.f32 %v4409_v1, %v4553_v4 }
 0x212   :  { %v4845_v8 = vadd.f32 %v7609_v14, %v4697_v7 }
 0x214   :  { %v4989_v9 = vmax.f32 %v4845_v8, 0.0 }
 0x215   :  { %v3763_v10 = vpop.f32.mrf.mxu2  ;;  %v4123_v11 = vpop.f32.mrf.mxu3 }
 0x216   :  { %5133 = vst [vmem:[%s8758_s3 + $0x180] sm:$0xff] %v4989_v9  ;;  %v4554_v15 = vmax.f32 %v3763_v10, %v4123_v11  ;;  %v3046_v16 = vpop.f32.mrf.mxu0  ;;  %v3406_v17 = vpop.f32.mrf.mxu1 }
 0x217   :  { %v4411_v23 = vmax.f32 %v3046_v16, %v3406_v17  ;;  %v6789_v16 = vld [vmem:[%s8756_s0 + $0x360] sm:$0xff] }
 0x218   :  { %v4698_v20 = vmax.f32 %v4410_v13, %v4554_v15  ;;  %v6717_v15 = vld [vmem:[%s8756_s0 + $0x120] sm:$0xff] }
 0x219   :  { %6426 = vmatmul.msk.bf16.gmra.mxu0 %vm2047_vm0, %v6714_v44  ;;  %6498 = vmatmul.msk.bf16.gmra.mxu1 %vm2047_vm0, %v6786_v12 }
 0x21a   :  { %v4846_v21 = vadd.f32 %v7609_v14, %v4698_v20  ;;  %6570 = vmatmul.msk.bf16.gmra.mxu2 %vm2047_vm0, %v6858_v18  ;;  %6642 = vmatmul.msk.bf16.gmra.mxu3 %vm2047_vm0, %v6930_v19 }
 0x21c   :  { %v4990_v22 = vmax.f32 %v4846_v21, 0.0  ;;  %v6861_v21 = vld [vmem:[%s8756_s0 + $0x5a0] sm:$0xff] }
 0x21d   :  { %v3766_v24 = vpop.f32.mrf.mxu2  ;;  %v4126_v25 = vpop.f32.mrf.mxu3 }
 0x21e   :  { %5134 = vst [vmem:[%s8758_s3 + $0x188] sm:$0xff] %v4990_v22  ;;  %v4555_v26 = vmax.f32 %v3766_v24, %v4126_v25  ;;  %v3048_v27 = vpop.f32.mrf.mxu0  ;;  %v3408_v28 = vpop.f32.mrf.mxu1  ;;  %v6933_v22 = vld [vmem:[%s8756_s0 + $0x7e0] sm:$0xff] }
 0x21f   :  { %v4412_v36 = vmax.f32 %v3048_v27, %v3408_v28 }
 0x220   :  { %v4699_v29 = vmax.f32 %v4411_v23, %v4555_v26 }
 0x222   :  { %v4847_v30 = vadd.f32 %v7609_v14, %v4699_v29 }
 0x224   :  { %v4991_v31 = vmax.f32 %v4847_v30, 0.0 }
 0x225   :  { %v3768_v32 = vpop.f32.mrf.mxu2  ;;  %v4128_v33 = vpop.f32.mrf.mxu3 }
 0x226   :  { %5135 = vst [vmem:[%s8758_s3 + $0x190] sm:$0xff] %v4991_v31  ;;  %v4556_v37 = vmax.f32 %v3768_v32, %v4128_v33  ;;  %v3051_v38 = vpop.f32.mrf.mxu0  ;;  %v3411_v39 = vpop.f32.mrf.mxu1 }
 0x227   :  { %v4413_v46 = vmax.f32 %v3051_v38, %v3411_v39  ;;  %v6790_v38 = vld [vmem:[%s8756_s0 + $0x368] sm:$0xff] }
 0x228   :  { %v4700_v42 = vmax.f32 %v4412_v36, %v4556_v37  ;;  %v6718_v37 = vld [vmem:[%s8756_s0 + $0x128] sm:$0xff] }
 0x229   :  { %6427 = vmatmul.msk.bf16.gmra.mxu0 %vm2047_vm0, %v6715_v34  ;;  %6499 = vmatmul.msk.bf16.gmra.mxu1 %vm2047_vm0, %v6787_v35 }
 0x22a   :  { %v4848_v43 = vadd.f32 %v7609_v14, %v4700_v42  ;;  %6571 = vmatmul.msk.bf16.gmra.mxu2 %vm2047_vm0, %v6859_v40  ;;  %6643 = vmatmul.msk.bf16.gmra.mxu3 %vm2047_vm0, %v6931_v41 }
 0x22c   :  { %v4992_v45 = vmax.f32 %v4848_v43, 0.0  ;;  %v6862_v43 = vld [vmem:[%s8756_s0 + $0x5a8] sm:$0xff] }
 0x22d   :  { %v3771_v47 = vpop.f32.mrf.mxu2  ;;  %v4131_v48 = vpop.f32.mrf.mxu3 }
 0x22e   :  { %5136 = vst [vmem:[%s8758_s3 + $0x198] sm:$0xff] %v4992_v45  ;;  %v4557_v49 = vmax.f32 %v3771_v47, %v4131_v48  ;;  %v3053_v50 = vpop.f32.mrf.mxu0  ;;  %v3413_v51 = vpop.f32.mrf.mxu1  ;;  %v6934_v45 = vld [vmem:[%s8756_s0 + $0x7e8] sm:$0xff] }
 0x22f   :  { %v4414_v59 = vmax.f32 %v3053_v50, %v3413_v51 }
 0x230   :  { %v4701_v52 = vmax.f32 %v4413_v46, %v4557_v49 }
 0x232   :  { %v4849_v53 = vadd.f32 %v7609_v14, %v4701_v52 }
 0x234   :  { %v4993_v54 = vmax.f32 %v4849_v53, 0.0 }
 0x235   :  { %v3773_v55 = vpop.f32.mrf.mxu2  ;;  %v4133_v56 = vpop.f32.mrf.mxu3 }
 0x236   :  { %5137 = vst [vmem:[%s8758_s3 + $0x1a0] sm:$0xff] %v4993_v54  ;;  %v4558_v60 = vmax.f32 %v3773_v55, %v4133_v56  ;;  %v3056_v61 = vpop.f32.mrf.mxu0  ;;  %v3416_v62 = vpop.f32.mrf.mxu1 }
 0x237   :  { %v4415_v4 = vmax.f32 %v3056_v61, %v3416_v62  ;;  %v6791_v61 = vld [vmem:[%s8756_s0 + $0x370] sm:$0xff] }
 0x238   :  { %v4702_v1 = vmax.f32 %v4414_v59, %v4558_v60  ;;  %v6719_v60 = vld [vmem:[%s8756_s0 + $0x130] sm:$0xff] }
 0x239   :  { %6428 = vmatmul.msk.bf16.gmra.mxu0 %vm2047_vm0, %v6716_v57  ;;  %6500 = vmatmul.msk.bf16.gmra.mxu1 %vm2047_vm0, %v6788_v58 }
 0x23a   :  { %v4850_v2 = vadd.f32 %v7609_v14, %v4702_v1  ;;  %6572 = vmatmul.msk.bf16.gmra.mxu2 %vm2047_vm0, %v6860_v63  ;;  %6644 = vmatmul.msk.bf16.gmra.mxu3 %vm2047_vm0, %v6932_v0 }
 0x23c   :  { %v4994_v3 = vmax.f32 %v4850_v2, 0.0  ;;  %v6863_v2 = vld [vmem:[%s8756_s0 + $0x5b0] sm:$0xff] }
 0x23d   :  { %v3776_v5 = vpop.f32.mrf.mxu2  ;;  %v4136_v6 = vpop.f32.mrf.mxu3 }
 0x23e   :  { %5138 = vst [vmem:[%s8758_s3 + $0x1a8] sm:$0xff] %v4994_v3  ;;  %v4559_v7 = vmax.f32 %v3776_v5, %v4136_v6  ;;  %v3058_v8 = vpop.f32.mrf.mxu0  ;;  %v3418_v9 = vpop.f32.mrf.mxu1  ;;  %v6935_v3 = vld [vmem:[%s8756_s0 + $0x7f0] sm:$0xff] }
 0x23f   :  { %v4416_v17 = vmax.f32 %v3058_v8, %v3418_v9 }
 0x240   :  { %v4703_v10 = vmax.f32 %v4415_v4, %v4559_v7 }
 0x242   :  { %v4851_v11 = vadd.f32 %v7609_v14, %v4703_v10 }
 0x244   :  { %v4995_v44 = vmax.f32 %v4851_v11, 0.0 }
 0x245   :  { %v3778_v12 = vpop.f32.mrf.mxu2  ;;  %v4138_v13 = vpop.f32.mrf.mxu3 }
 0x246   :  { %5139 = vst [vmem:[%s8758_s3 + $0x1b0] sm:$0xff] %v4995_v44  ;;  %v4560_v18 = vmax.f32 %v3778_v12, %v4138_v13  ;;  %v3061_v19 = vpop.f32.mrf.mxu0  ;;  %v3421_v20 = vpop.f32.mrf.mxu1 }
 0x247   :  { %v4417_v26 = vmax.f32 %v3061_v19, %v3421_v20  ;;  %v6792_v19 = vld [vmem:[%s8756_s0 + $0x378] sm:$0xff] }
 0x248   :  { %v4704_v23 = vmax.f32 %v4416_v17, %v4560_v18  ;;  %v6720_v18 = vld [vmem:[%s8756_s0 + $0x138] sm:$0xff] }
 0x249   :  { %6429 = vmatmul.msk.bf16.gmra.mxu0 %vm2047_vm0, %v6717_v15  ;;  %6501 = vmatmul.msk.bf16.gmra.mxu1 %vm2047_vm0, %v6789_v16 }
 0x24a   :  { %v4852_v24 = vadd.f32 %v7609_v14, %v4704_v23  ;;  %6573 = vmatmul.msk.bf16.gmra.mxu2 %vm2047_vm0, %v6861_v21  ;;  %6645 = vmatmul.msk.bf16.gmra.mxu3 %vm2047_vm0, %v6933_v22 }
 0x24c   :  { %v4996_v25 = vmax.f32 %v4852_v24, 0.0  ;;  %v6864_v24 = vld [vmem:[%s8756_s0 + $0x5b8] sm:$0xff] }
 0x24d   :  { %v3781_v27 = vpop.f32.mrf.mxu2  ;;  %v4141_v28 = vpop.f32.mrf.mxu3 }
 0x24e   :  { %5140 = vst [vmem:[%s8758_s3 + $0x1b8] sm:$0xff] %v4996_v25  ;;  %v4561_v29 = vmax.f32 %v3781_v27, %v4141_v28  ;;  %v3063_v30 = vpop.f32.mrf.mxu0  ;;  %v3423_v31 = vpop.f32.mrf.mxu1  ;;  %v6936_v25 = vld [vmem:[%s8756_s0 + $0x7f8] sm:$0xff] }
 0x24f   :  { %v4418_v39 = vmax.f32 %v3063_v30, %v3423_v31 }
 0x250   :  { %v4705_v32 = vmax.f32 %v4417_v26, %v4561_v29 }
 0x252   :  { %v4853_v33 = vadd.f32 %v7609_v14, %v4705_v32 }
 0x254   :  { %v4997_v34 = vmax.f32 %v4853_v33, 0.0 }
 0x255   :  { %v3783_v35 = vpop.f32.mrf.mxu2  ;;  %v4143_v36 = vpop.f32.mrf.mxu3 }
 0x256   :  { %5141 = vst [vmem:[%s8758_s3 + $0x1c0] sm:$0xff] %v4997_v34  ;;  %v4562_v40 = vmax.f32 %v3783_v35, %v4143_v36  ;;  %v3066_v41 = vpop.f32.mrf.mxu0  ;;  %v3426_v42 = vpop.f32.mrf.mxu1 }
 0x257   :  { %v4419_v49 = vmax.f32 %v3066_v41, %v3426_v42  ;;  %v6793_v41 = vld [vmem:[%s8756_s0 + $0x380] sm:$0xff] }
 0x258   :  { %v4706_v46 = vmax.f32 %v4418_v39, %v4562_v40  ;;  %v6721_v40 = vld [vmem:[%s8756_s0 + $0x140] sm:$0xff] }
 0x259   :  { %6430 = vmatmul.msk.bf16.gmra.mxu0 %vm2047_vm0, %v6718_v37  ;;  %6502 = vmatmul.msk.bf16.gmra.mxu1 %vm2047_vm0, %v6790_v38 }
 0x25a   :  { %v4854_v47 = vadd.f32 %v7609_v14, %v4706_v46  ;;  %6574 = vmatmul.msk.bf16.gmra.mxu2 %vm2047_vm0, %v6862_v43  ;;  %6646 = vmatmul.msk.bf16.gmra.mxu3 %vm2047_vm0, %v6934_v45 }
 0x25c   :  { %v4998_v48 = vmax.f32 %v4854_v47, 0.0  ;;  %v6865_v47 = vld [vmem:[%s8756_s0 + $0x5c0] sm:$0xff] }
 0x25d   :  { %v3786_v50 = vpop.f32.mrf.mxu2  ;;  %v4146_v51 = vpop.f32.mrf.mxu3 }
 0x25e   :  { %5142 = vst [vmem:[%s8758_s3 + $0x1c8] sm:$0xff] %v4998_v48  ;;  %v4563_v52 = vmax.f32 %v3786_v50, %v4146_v51  ;;  %v3068_v53 = vpop.f32.mrf.mxu0  ;;  %v3428_v54 = vpop.f32.mrf.mxu1  ;;  %v6937_v48 = vld [vmem:[%s8756_s0 + $0x800] sm:$0xff] }
 0x25f   :  { %v4420_v62 = vmax.f32 %v3068_v53, %v3428_v54 }
 0x260   :  { %v4707_v55 = vmax.f32 %v4419_v49, %v4563_v52 }
 0x262   :  { %v4855_v56 = vadd.f32 %v7609_v14, %v4707_v55 }
 0x264   :  { %v4999_v57 = vmax.f32 %v4855_v56, 0.0 }
 0x265   :  { %v3788_v58 = vpop.f32.mrf.mxu2  ;;  %v4148_v59 = vpop.f32.mrf.mxu3 }
 0x266   :  { %5143 = vst [vmem:[%s8758_s3 + $0x1d0] sm:$0xff] %v4999_v57  ;;  %v4564_v63 = vmax.f32 %v3788_v58, %v4148_v59  ;;  %v3071_v0 = vpop.f32.mrf.mxu0  ;;  %v3431_v1 = vpop.f32.mrf.mxu1 }
 0x267   :  { %v4421_v7 = vmax.f32 %v3071_v0, %v3431_v1  ;;  %v6794_v0 = vld [vmem:[%s8756_s0 + $0x388] sm:$0xff] }
 0x268   :  { %v4708_v4 = vmax.f32 %v4420_v62, %v4564_v63  ;;  %v6722_v63 = vld [vmem:[%s8756_s0 + $0x148] sm:$0xff] }
 0x269   :  { %6431 = vmatmul.msk.bf16.gmra.mxu0 %vm2047_vm0, %v6719_v60  ;;  %6503 = vmatmul.msk.bf16.gmra.mxu1 %vm2047_vm0, %v6791_v61 }
 0x26a   :  { %v4856_v5 = vadd.f32 %v7609_v14, %v4708_v4  ;;  %6575 = vmatmul.msk.bf16.gmra.mxu2 %vm2047_vm0, %v6863_v2  ;;  %6647 = vmatmul.msk.bf16.gmra.mxu3 %vm2047_vm0, %v6935_v3 }
 0x26c   :  { %v5000_v6 = vmax.f32 %v4856_v5, 0.0  ;;  %v6866_v5 = vld [vmem:[%s8756_s0 + $0x5c8] sm:$0xff] }
 0x26d   :  { %v3791_v8 = vpop.f32.mrf.mxu2  ;;  %v4151_v9 = vpop.f32.mrf.mxu3 }
 0x26e   :  { %5144 = vst [vmem:[%s8758_s3 + $0x1d8] sm:$0xff] %v5000_v6  ;;  %v4565_v10 = vmax.f32 %v3791_v8, %v4151_v9  ;;  %v3073_v11 = vpop.f32.mrf.mxu0  ;;  %v3433_v44 = vpop.f32.mrf.mxu1  ;;  %v6938_v6 = vld [vmem:[%s8756_s0 + $0x808] sm:$0xff] }
 0x26f   :  { %v4422_v20 = vmax.f32 %v3073_v11, %v3433_v44 }
 0x270   :  { %v4709_v12 = vmax.f32 %v4421_v7, %v4565_v10 }
 0x272   :  { %v4857_v13 = vadd.f32 %v7609_v14, %v4709_v12 }
 0x274   :  { %v5001_v15 = vmax.f32 %v4857_v13, 0.0 }
 0x275   :  { %v3793_v16 = vpop.f32.mrf.mxu2  ;;  %v4153_v17 = vpop.f32.mrf.mxu3 }
 0x276   :  { %5145 = vst [vmem:[%s8758_s3 + $0x1e0] sm:$0xff] %v5001_v15  ;;  %v4566_v21 = vmax.f32 %v3793_v16, %v4153_v17  ;;  %v3076_v22 = vpop.f32.mrf.mxu0  ;;  %v3436_v23 = vpop.f32.mrf.mxu1 }
 0x277   :  { %v4423_v29 = vmax.f32 %v3076_v22, %v3436_v23  ;;  %v6795_v22 = vld [vmem:[%s8756_s0 + $0x390] sm:$0xff] }
 0x278   :  { %v4710_v26 = vmax.f32 %v4422_v20, %v4566_v21  ;;  %v6723_v21 = vld [vmem:[%s8756_s0 + $0x150] sm:$0xff] }
 0x279   :  { %6432 = vmatmul.msk.bf16.gmra.mxu0 %vm2047_vm0, %v6720_v18  ;;  %6504 = vmatmul.msk.bf16.gmra.mxu1 %vm2047_vm0, %v6792_v19 }
 0x27a   :  { %v4858_v27 = vadd.f32 %v7609_v14, %v4710_v26  ;;  %6576 = vmatmul.msk.bf16.gmra.mxu2 %vm2047_vm0, %v6864_v24  ;;  %6648 = vmatmul.msk.bf16.gmra.mxu3 %vm2047_vm0, %v6936_v25 }
 0x27c   :  { %v5002_v28 = vmax.f32 %v4858_v27, 0.0  ;;  %v6867_v27 = vld [vmem:[%s8756_s0 + $0x5d0] sm:$0xff] }
 0x27d   :  { %v3796_v30 = vpop.f32.mrf.mxu2  ;;  %v4156_v31 = vpop.f32.mrf.mxu3 }
 0x27e   :  { %5146 = vst [vmem:[%s8758_s3 + $0x1e8] sm:$0xff] %v5002_v28  ;;  %v4567_v32 = vmax.f32 %v3796_v30, %v4156_v31  ;;  %v3078_v33 = vpop.f32.mrf.mxu0  ;;  %v3438_v34 = vpop.f32.mrf.mxu1  ;;  %v6939_v28 = vld [vmem:[%s8756_s0 + $0x810] sm:$0xff] }
 0x27f   :  { %v4424_v42 = vmax.f32 %v3078_v33, %v3438_v34 }
 0x280   :  { %v4711_v35 = vmax.f32 %v4423_v29, %v4567_v32 }
 0x282   :  { %v4859_v36 = vadd.f32 %v7609_v14, %v4711_v35 }
 0x284   :  { %v5003_v37 = vmax.f32 %v4859_v36, 0.0 }
 0x285   :  { %v3798_v38 = vpop.f32.mrf.mxu2  ;;  %v4158_v39 = vpop.f32.mrf.mxu3 }
 0x286   :  { %5147 = vst [vmem:[%s8758_s3 + $0x1f0] sm:$0xff] %v5003_v37  ;;  %v4568_v43 = vmax.f32 %v3798_v38, %v4158_v39  ;;  %v3081_v45 = vpop.f32.mrf.mxu0  ;;  %v3441_v46 = vpop.f32.mrf.mxu1 }
 0x287   :  { %v4425_v52 = vmax.f32 %v3081_v45, %v3441_v46  ;;  %v6796_v45 = vld [vmem:[%s8756_s0 + $0x398] sm:$0xff] }
 0x288   :  { %v4712_v49 = vmax.f32 %v4424_v42, %v4568_v43  ;;  %v6724_v43 = vld [vmem:[%s8756_s0 + $0x158] sm:$0xff] }
 0x289   :  { %6433 = vmatmul.msk.bf16.gmra.mxu0 %vm2047_vm0, %v6721_v40  ;;  %6505 = vmatmul.msk.bf16.gmra.mxu1 %vm2047_vm0, %v6793_v41 }
 0x28a   :  { %v4860_v50 = vadd.f32 %v7609_v14, %v4712_v49  ;;  %6577 = vmatmul.msk.bf16.gmra.mxu2 %vm2047_vm0, %v6865_v47  ;;  %6649 = vmatmul.msk.bf16.gmra.mxu3 %vm2047_vm0, %v6937_v48 }
 0x28c   :  { %v5004_v51 = vmax.f32 %v4860_v50, 0.0  ;;  %v6868_v50 = vld [vmem:[%s8756_s0 + $0x5d8] sm:$0xff] }
 0x28d   :  { %v3801_v53 = vpop.f32.mrf.mxu2  ;;  %v4161_v54 = vpop.f32.mrf.mxu3 }
 0x28e   :  { %5148 = vst [vmem:[%s8758_s3 + $0x1f8] sm:$0xff] %v5004_v51  ;;  %v4569_v55 = vmax.f32 %v3801_v53, %v4161_v54  ;;  %v3083_v56 = vpop.f32.mrf.mxu0  ;;  %v3443_v57 = vpop.f32.mrf.mxu1  ;;  %v6940_v51 = vld [vmem:[%s8756_s0 + $0x818] sm:$0xff] }
 0x28f   :  { %v4426_v1 = vmax.f32 %v3083_v56, %v3443_v57 }
 0x290   :  { %v4713_v58 = vmax.f32 %v4425_v52, %v4569_v55 }
 0x292   :  { %v4861_v59 = vadd.f32 %v7609_v14, %v4713_v58 }
 0x294   :  { %v5005_v60 = vmax.f32 %v4861_v59, 0.0 }
 0x295   :  { %v3803_v61 = vpop.f32.mrf.mxu2  ;;  %v4163_v62 = vpop.f32.mrf.mxu3 }
 0x296   :  { %5149 = vst [vmem:[%s8758_s3 + $0x200] sm:$0xff] %v5005_v60  ;;  %v4570_v2 = vmax.f32 %v3803_v61, %v4163_v62  ;;  %v3086_v3 = vpop.f32.mrf.mxu0  ;;  %v3446_v4 = vpop.f32.mrf.mxu1 }
 0x297   :  { %v4427_v10 = vmax.f32 %v3086_v3, %v3446_v4  ;;  %v6797_v3 = vld [vmem:[%s8756_s0 + $0x3a0] sm:$0xff] }
 0x298   :  { %v4714_v7 = vmax.f32 %v4426_v1, %v4570_v2  ;;  %v6725_v2 = vld [vmem:[%s8756_s0 + $0x160] sm:$0xff] }
 0x299   :  { %6434 = vmatmul.msk.bf16.gmra.mxu0 %vm2047_vm0, %v6722_v63  ;;  %6506 = vmatmul.msk.bf16.gmra.mxu1 %vm2047_vm0, %v6794_v0 }
 0x29a   :  { %v4862_v8 = vadd.f32 %v7609_v14, %v4714_v7  ;;  %6578 = vmatmul.msk.bf16.gmra.mxu2 %vm2047_vm0, %v6866_v5  ;;  %6650 = vmatmul.msk.bf16.gmra.mxu3 %vm2047_vm0, %v6938_v6 }
 0x29c   :  { %v5006_v9 = vmax.f32 %v4862_v8, 0.0  ;;  %v6869_v8 = vld [vmem:[%s8756_s0 + $0x5e0] sm:$0xff] }
 0x29d   :  { %v3806_v11 = vpop.f32.mrf.mxu2  ;;  %v4166_v44 = vpop.f32.mrf.mxu3 }
 0x29e   :  { %5150 = vst [vmem:[%s8758_s3 + $0x208] sm:$0xff] %v5006_v9  ;;  %v4571_v12 = vmax.f32 %v3806_v11, %v4166_v44  ;;  %v3088_v13 = vpop.f32.mrf.mxu0  ;;  %v3448_v15 = vpop.f32.mrf.mxu1  ;;  %v6941_v9 = vld [vmem:[%s8756_s0 + $0x820] sm:$0xff] }
 0x29f   :  { %v4428_v23 = vmax.f32 %v3088_v13, %v3448_v15 }
 0x2a0   :  { %v4715_v16 = vmax.f32 %v4427_v10, %v4571_v12 }
 0x2a2   :  { %v4863_v17 = vadd.f32 %v7609_v14, %v4715_v16 }
 0x2a4   :  { %v5007_v18 = vmax.f32 %v4863_v17, 0.0 }
 0x2a5   :  { %v3808_v19 = vpop.f32.mrf.mxu2  ;;  %v4168_v20 = vpop.f32.mrf.mxu3 }
 0x2a6   :  { %5151 = vst [vmem:[%s8758_s3 + $0x210] sm:$0xff] %v5007_v18  ;;  %v4572_v24 = vmax.f32 %v3808_v19, %v4168_v20  ;;  %v3091_v25 = vpop.f32.mrf.mxu0  ;;  %v3451_v26 = vpop.f32.mrf.mxu1 }
 0x2a7   :  { %v4429_v32 = vmax.f32 %v3091_v25, %v3451_v26  ;;  %v6798_v25 = vld [vmem:[%s8756_s0 + $0x3a8] sm:$0xff] }
 0x2a8   :  { %v4716_v29 = vmax.f32 %v4428_v23, %v4572_v24  ;;  %v6726_v24 = vld [vmem:[%s8756_s0 + $0x168] sm:$0xff] }
 0x2a9   :  { %6435 = vmatmul.msk.bf16.gmra.mxu0 %vm2047_vm0, %v6723_v21  ;;  %6507 = vmatmul.msk.bf16.gmra.mxu1 %vm2047_vm0, %v6795_v22 }
 0x2aa   :  { %v4864_v30 = vadd.f32 %v7609_v14, %v4716_v29  ;;  %6579 = vmatmul.msk.bf16.gmra.mxu2 %vm2047_vm0, %v6867_v27  ;;  %6651 = vmatmul.msk.bf16.gmra.mxu3 %vm2047_vm0, %v6939_v28 }
 0x2ac   :  { %v5008_v31 = vmax.f32 %v4864_v30, 0.0  ;;  %v6870_v30 = vld [vmem:[%s8756_s0 + $0x5e8] sm:$0xff] }
 0x2ad   :  { %v3811_v33 = vpop.f32.mrf.mxu2  ;;  %v4171_v34 = vpop.f32.mrf.mxu3 }
 0x2ae   :  { %5152 = vst [vmem:[%s8758_s3 + $0x218] sm:$0xff] %v5008_v31  ;;  %v4573_v35 = vmax.f32 %v3811_v33, %v4171_v34  ;;  %v3093_v36 = vpop.f32.mrf.mxu0  ;;  %v3453_v37 = vpop.f32.mrf.mxu1  ;;  %v6942_v31 = vld [vmem:[%s8756_s0 + $0x828] sm:$0xff] }
 0x2af   :  { %v4430_v46 = vmax.f32 %v3093_v36, %v3453_v37 }
 0x2b0   :  { %v4717_v38 = vmax.f32 %v4429_v32, %v4573_v35 }
 0x2b2   :  { %v4865_v39 = vadd.f32 %v7609_v14, %v4717_v38 }
 0x2b4   :  { %v5009_v40 = vmax.f32 %v4865_v39, 0.0 }
 0x2b5   :  { %v3813_v41 = vpop.f32.mrf.mxu2  ;;  %v4173_v42 = vpop.f32.mrf.mxu3 }
 0x2b6   :  { %5153 = vst [vmem:[%s8758_s3 + $0x220] sm:$0xff] %v5009_v40  ;;  %v4574_v47 = vmax.f32 %v3813_v41, %v4173_v42  ;;  %v3096_v48 = vpop.f32.mrf.mxu0  ;;  %v3456_v49 = vpop.f32.mrf.mxu1 }
 0x2b7   :  { %v4431_v55 = vmax.f32 %v3096_v48, %v3456_v49  ;;  %v6799_v48 = vld [vmem:[%s8756_s0 + $0x3b0] sm:$0xff] }
 0x2b8   :  { %v4718_v52 = vmax.f32 %v4430_v46, %v4574_v47  ;;  %v6727_v47 = vld [vmem:[%s8756_s0 + $0x170] sm:$0xff] }
 0x2b9   :  { %6436 = vmatmul.msk.bf16.gmra.mxu0 %vm2047_vm0, %v6724_v43  ;;  %6508 = vmatmul.msk.bf16.gmra.mxu1 %vm2047_vm0, %v6796_v45 }
 0x2ba   :  { %v4866_v53 = vadd.f32 %v7609_v14, %v4718_v52  ;;  %6580 = vmatmul.msk.bf16.gmra.mxu2 %vm2047_vm0, %v6868_v50  ;;  %6652 = vmatmul.msk.bf16.gmra.mxu3 %vm2047_vm0, %v6940_v51 }
 0x2bc   :  { %v5010_v54 = vmax.f32 %v4866_v53, 0.0  ;;  %v6871_v53 = vld [vmem:[%s8756_s0 + $0x5f0] sm:$0xff] }
 0x2bd   :  { %v3816_v56 = vpop.f32.mrf.mxu2  ;;  %v4176_v57 = vpop.f32.mrf.mxu3 }
 0x2be   :  { %5154 = vst [vmem:[%s8758_s3 + $0x228] sm:$0xff] %v5010_v54  ;;  %v4575_v58 = vmax.f32 %v3816_v56, %v4176_v57  ;;  %v3098_v59 = vpop.f32.mrf.mxu0  ;;  %v3458_v60 = vpop.f32.mrf.mxu1  ;;  %v6943_v54 = vld [vmem:[%s8756_s0 + $0x830] sm:$0xff] }
 0x2bf   :  { %v4432_v4 = vmax.f32 %v3098_v59, %v3458_v60 }
 0x2c0   :  { %v4719_v61 = vmax.f32 %v4431_v55, %v4575_v58 }
 0x2c2   :  { %v4867_v62 = vadd.f32 %v7609_v14, %v4719_v61 }
 0x2c4   :  { %v5011_v63 = vmax.f32 %v4867_v62, 0.0 }
 0x2c5   :  { %v3818_v0 = vpop.f32.mrf.mxu2  ;;  %v4178_v1 = vpop.f32.mrf.mxu3 }
 0x2c6   :  { %5155 = vst [vmem:[%s8758_s3 + $0x230] sm:$0xff] %v5011_v63  ;;  %v4576_v5 = vmax.f32 %v3818_v0, %v4178_v1  ;;  %v3101_v6 = vpop.f32.mrf.mxu0  ;;  %v3461_v7 = vpop.f32.mrf.mxu1 }
 0x2c7   :  { %v4433_v12 = vmax.f32 %v3101_v6, %v3461_v7  ;;  %v6800_v6 = vld [vmem:[%s8756_s0 + $0x3b8] sm:$0xff] }
 0x2c8   :  { %v4720_v10 = vmax.f32 %v4432_v4, %v4576_v5  ;;  %v6728_v5 = vld [vmem:[%s8756_s0 + $0x178] sm:$0xff] }
 0x2c9   :  { %6437 = vmatmul.msk.bf16.gmra.mxu0 %vm2047_vm0, %v6725_v2  ;;  %6509 = vmatmul.msk.bf16.gmra.mxu1 %vm2047_vm0, %v6797_v3 }
 0x2ca   :  { %v4868_v11 = vadd.f32 %v7609_v14, %v4720_v10  ;;  %6581 = vmatmul.msk.bf16.gmra.mxu2 %vm2047_vm0, %v6869_v8  ;;  %6653 = vmatmul.msk.bf16.gmra.mxu3 %vm2047_vm0, %v6941_v9 }
 0x2cc   :  { %v5012_v44 = vmax.f32 %v4868_v11, 0.0  ;;  %v6872_v11 = vld [vmem:[%s8756_s0 + $0x5f8] sm:$0xff] }
 0x2cd   :  { %v3821_v13 = vpop.f32.mrf.mxu2  ;;  %v4181_v15 = vpop.f32.mrf.mxu3 }
 0x2ce   :  { %5156 = vst [vmem:[%s8758_s3 + $0x238] sm:$0xff] %v5012_v44  ;;  %v4577_v16 = vmax.f32 %v3821_v13, %v4181_v15  ;;  %v3103_v17 = vpop.f32.mrf.mxu0  ;;  %v3463_v18 = vpop.f32.mrf.mxu1  ;;  %v6944_v44 = vld [vmem:[%s8756_s0 + $0x838] sm:$0xff] }
 0x2cf   :  { %v4434_v26 = vmax.f32 %v3103_v17, %v3463_v18 }
 0x2d0   :  { %v4721_v19 = vmax.f32 %v4433_v12, %v4577_v16 }
 0x2d2   :  { %v4869_v20 = vadd.f32 %v7609_v14, %v4721_v19 }
 0x2d4   :  { %v5013_v21 = vmax.f32 %v4869_v20, 0.0 }
 0x2d5   :  { %v3823_v22 = vpop.f32.mrf.mxu2  ;;  %v4183_v23 = vpop.f32.mrf.mxu3 }
 0x2d6   :  { %5157 = vst [vmem:[%s8758_s3 + $0x240] sm:$0xff] %v5013_v21  ;;  %v4578_v27 = vmax.f32 %v3823_v22, %v4183_v23  ;;  %v3106_v28 = vpop.f32.mrf.mxu0  ;;  %v3466_v29 = vpop.f32.mrf.mxu1 }
 0x2d7   :  { %v4435_v35 = vmax.f32 %v3106_v28, %v3466_v29  ;;  %v6801_v28 = vld [vmem:[%s8756_s0 + $0x3c0] sm:$0xff] }
 0x2d8   :  { %v4722_v32 = vmax.f32 %v4434_v26, %v4578_v27  ;;  %v6729_v27 = vld [vmem:[%s8756_s0 + $0x180] sm:$0xff] }
 0x2d9   :  { %6438 = vmatmul.msk.bf16.gmra.mxu0 %vm2047_vm0, %v6726_v24  ;;  %6510 = vmatmul.msk.bf16.gmra.mxu1 %vm2047_vm0, %v6798_v25 }
 0x2da   :  { %v4870_v33 = vadd.f32 %v7609_v14, %v4722_v32  ;;  %6582 = vmatmul.msk.bf16.gmra.mxu2 %vm2047_vm0, %v6870_v30  ;;  %6654 = vmatmul.msk.bf16.gmra.mxu3 %vm2047_vm0, %v6942_v31  ;;  %v8052_v14 = vld [vmem:[%s8757_s2] ss:$0 sm:$0xff] }
 0x2dc   :  { %v5014_v34 = vmax.f32 %v4870_v33, 0.0  ;;  %v6873_v33 = vld [vmem:[%s8756_s0 + $0x600] sm:$0xff] }
 0x2dd   :  { %v3826_v36 = vpop.f32.mrf.mxu2  ;;  %v4186_v37 = vpop.f32.mrf.mxu3 }
 0x2de   :  { %5158 = vst [vmem:[%s8758_s3 + $0x248] sm:$0xff] %v5014_v34  ;;  %v4579_v38 = vmax.f32 %v3826_v36, %v4186_v37  ;;  %v3108_v39 = vpop.f32.mrf.mxu0  ;;  %v3468_v40 = vpop.f32.mrf.mxu1  ;;  %v6945_v34 = vld [vmem:[%s8756_s0 + $0x840] sm:$0xff] }
 0x2df   :  { %v4436_v49 = vmax.f32 %v3108_v39, %v3468_v40 }
 0x2e0   :  { %v4723_v41 = vmax.f32 %v4435_v35, %v4579_v38 }
 0x2e2   :  { %v4871_v42 = vadd.f32 %v8052_v14, %v4723_v41 }
 0x2e4   :  { %v5015_v43 = vmax.f32 %v4871_v42, 0.0 }
 0x2e5   :  { %v3828_v45 = vpop.f32.mrf.mxu2  ;;  %v4188_v46 = vpop.f32.mrf.mxu3 }
 0x2e6   :  { %5159 = vst [vmem:[%s8758_s3 + $0x250] sm:$0xff] %v5015_v43  ;;  %v4580_v50 = vmax.f32 %v3828_v45, %v4188_v46  ;;  %v3111_v51 = vpop.f32.mrf.mxu0  ;;  %v3471_v52 = vpop.f32.mrf.mxu1 }
 0x2e7   :  { %v4437_v58 = vmax.f32 %v3111_v51, %v3471_v52  ;;  %v6802_v51 = vld [vmem:[%s8756_s0 + $0x3c8] sm:$0xff] }
 0x2e8   :  { %v4724_v55 = vmax.f32 %v4436_v49, %v4580_v50  ;;  %v6730_v50 = vld [vmem:[%s8756_s0 + $0x188] sm:$0xff] }
 0x2e9   :  { %6439 = vmatmul.msk.bf16.gmra.mxu0 %vm2047_vm0, %v6727_v47  ;;  %6511 = vmatmul.msk.bf16.gmra.mxu1 %vm2047_vm0, %v6799_v48 }
 0x2ea   :  { %v4872_v56 = vadd.f32 %v8052_v14, %v4724_v55  ;;  %6583 = vmatmul.msk.bf16.gmra.mxu2 %vm2047_vm0, %v6871_v53  ;;  %6655 = vmatmul.msk.bf16.gmra.mxu3 %vm2047_vm0, %v6943_v54 }
 0x2ec   :  { %v5016_v57 = vmax.f32 %v4872_v56, 0.0  ;;  %v6874_v56 = vld [vmem:[%s8756_s0 + $0x608] sm:$0xff] }
 0x2ed   :  { %v3831_v59 = vpop.f32.mrf.mxu2  ;;  %v4191_v60 = vpop.f32.mrf.mxu3 }
 0x2ee   :  { %5160 = vst [vmem:[%s8758_s3 + $0x258] sm:$0xff] %v5016_v57  ;;  %v4581_v61 = vmax.f32 %v3831_v59, %v4191_v60  ;;  %v3113_v62 = vpop.f32.mrf.mxu0  ;;  %v3473_v63 = vpop.f32.mrf.mxu1  ;;  %v6946_v57 = vld [vmem:[%s8756_s0 + $0x848] sm:$0xff] }
 0x2ef   :  { %v4438_v7 = vmax.f32 %v3113_v62, %v3473_v63 }
 0x2f0   :  { %v4725_v0 = vmax.f32 %v4437_v58, %v4581_v61 }
 0x2f2   :  { %v4873_v1 = vadd.f32 %v8052_v14, %v4725_v0 }
 0x2f4   :  { %v5017_v2 = vmax.f32 %v4873_v1, 0.0 }
 0x2f5   :  { %v3833_v3 = vpop.f32.mrf.mxu2  ;;  %v4193_v4 = vpop.f32.mrf.mxu3 }
 0x2f6   :  { %5161 = vst [vmem:[%s8758_s3 + $0x260] sm:$0xff] %v5017_v2  ;;  %v4582_v8 = vmax.f32 %v3833_v3, %v4193_v4  ;;  %v3116_v9 = vpop.f32.mrf.mxu0  ;;  %v3476_v10 = vpop.f32.mrf.mxu1 }
 0x2f7   :  { %v4439_v16 = vmax.f32 %v3116_v9, %v3476_v10  ;;  %v6803_v9 = vld [vmem:[%s8756_s0 + $0x3d0] sm:$0xff] }
 0x2f8   :  { %v4726_v12 = vmax.f32 %v4438_v7, %v4582_v8  ;;  %v6731_v8 = vld [vmem:[%s8756_s0 + $0x190] sm:$0xff] }
 0x2f9   :  { %6440 = vmatmul.msk.bf16.gmra.mxu0 %vm2047_vm0, %v6728_v5  ;;  %6512 = vmatmul.msk.bf16.gmra.mxu1 %vm2047_vm0, %v6800_v6 }
 0x2fa   :  { %v4874_v13 = vadd.f32 %v8052_v14, %v4726_v12  ;;  %6584 = vmatmul.msk.bf16.gmra.mxu2 %vm2047_vm0, %v6872_v11  ;;  %6656 = vmatmul.msk.bf16.gmra.mxu3 %vm2047_vm0, %v6944_v44 }
 0x2fc   :  { %v5018_v15 = vmax.f32 %v4874_v13, 0.0  ;;  %v6875_v13 = vld [vmem:[%s8756_s0 + $0x610] sm:$0xff] }
 0x2fd   :  { %v3836_v17 = vpop.f32.mrf.mxu2  ;;  %v4196_v18 = vpop.f32.mrf.mxu3 }
 0x2fe   :  { %5162 = vst [vmem:[%s8758_s3 + $0x268] sm:$0xff] %v5018_v15  ;;  %v4583_v19 = vmax.f32 %v3836_v17, %v4196_v18  ;;  %v3118_v20 = vpop.f32.mrf.mxu0  ;;  %v3478_v21 = vpop.f32.mrf.mxu1  ;;  %v6947_v15 = vld [vmem:[%s8756_s0 + $0x850] sm:$0xff] }
 0x2ff   :  { %v4440_v29 = vmax.f32 %v3118_v20, %v3478_v21 }
 0x300   :  { %v4727_v22 = vmax.f32 %v4439_v16, %v4583_v19 }
 0x302   :  { %v4875_v23 = vadd.f32 %v8052_v14, %v4727_v22 }
 0x304   :  { %v5019_v24 = vmax.f32 %v4875_v23, 0.0 }
 0x305   :  { %v3838_v25 = vpop.f32.mrf.mxu2  ;;  %v4198_v26 = vpop.f32.mrf.mxu3 }
 0x306   :  { %5163 = vst [vmem:[%s8758_s3 + $0x270] sm:$0xff] %v5019_v24  ;;  %v4584_v30 = vmax.f32 %v3838_v25, %v4198_v26  ;;  %v3121_v31 = vpop.f32.mrf.mxu0  ;;  %v3481_v32 = vpop.f32.mrf.mxu1 }
 0x307   :  { %v4441_v38 = vmax.f32 %v3121_v31, %v3481_v32  ;;  %v6804_v31 = vld [vmem:[%s8756_s0 + $0x3d8] sm:$0xff] }
 0x308   :  { %v4728_v35 = vmax.f32 %v4440_v29, %v4584_v30  ;;  %v6732_v30 = vld [vmem:[%s8756_s0 + $0x198] sm:$0xff] }
 0x309   :  { %6441 = vmatmul.msk.bf16.gmra.mxu0 %vm2047_vm0, %v6729_v27  ;;  %6513 = vmatmul.msk.bf16.gmra.mxu1 %vm2047_vm0, %v6801_v28 }
 0x30a   :  { %v4876_v36 = vadd.f32 %v8052_v14, %v4728_v35  ;;  %6585 = vmatmul.msk.bf16.gmra.mxu2 %vm2047_vm0, %v6873_v33  ;;  %6657 = vmatmul.msk.bf16.gmra.mxu3 %vm2047_vm0, %v6945_v34 }
 0x30c   :  { %v5020_v37 = vmax.f32 %v4876_v36, 0.0  ;;  %v6876_v36 = vld [vmem:[%s8756_s0 + $0x618] sm:$0xff] }
 0x30d   :  { %v3841_v39 = vpop.f32.mrf.mxu2  ;;  %v4201_v40 = vpop.f32.mrf.mxu3 }
 0x30e   :  { %5164 = vst [vmem:[%s8758_s3 + $0x278] sm:$0xff] %v5020_v37  ;;  %v4585_v41 = vmax.f32 %v3841_v39, %v4201_v40  ;;  %v3123_v42 = vpop.f32.mrf.mxu0  ;;  %v3483_v43 = vpop.f32.mrf.mxu1  ;;  %v6948_v37 = vld [vmem:[%s8756_s0 + $0x858] sm:$0xff] }
 0x30f   :  { %v4442_v52 = vmax.f32 %v3123_v42, %v3483_v43 }
 0x310   :  { %v4729_v45 = vmax.f32 %v4441_v38, %v4585_v41 }
 0x312   :  { %v4877_v46 = vadd.f32 %v8052_v14, %v4729_v45 }
 0x314   :  { %v5021_v47 = vmax.f32 %v4877_v46, 0.0 }
 0x315   :  { %v3843_v48 = vpop.f32.mrf.mxu2  ;;  %v4203_v49 = vpop.f32.mrf.mxu3 }
 0x316   :  { %5165 = vst [vmem:[%s8758_s3 + $0x280] sm:$0xff] %v5021_v47  ;;  %v4586_v53 = vmax.f32 %v3843_v48, %v4203_v49  ;;  %v3126_v54 = vpop.f32.mrf.mxu0  ;;  %v3486_v55 = vpop.f32.mrf.mxu1 }
 0x317   :  { %v4443_v61 = vmax.f32 %v3126_v54, %v3486_v55  ;;  %v6805_v54 = vld [vmem:[%s8756_s0 + $0x3e0] sm:$0xff] }
 0x318   :  { %v4730_v58 = vmax.f32 %v4442_v52, %v4586_v53  ;;  %v6733_v53 = vld [vmem:[%s8756_s0 + $0x1a0] sm:$0xff] }
 0x319   :  { %6442 = vmatmul.msk.bf16.gmra.mxu0 %vm2047_vm0, %v6730_v50  ;;  %6514 = vmatmul.msk.bf16.gmra.mxu1 %vm2047_vm0, %v6802_v51 }
 0x31a   :  { %v4878_v59 = vadd.f32 %v8052_v14, %v4730_v58  ;;  %6586 = vmatmul.msk.bf16.gmra.mxu2 %vm2047_vm0, %v6874_v56  ;;  %6658 = vmatmul.msk.bf16.gmra.mxu3 %vm2047_vm0, %v6946_v57 }
 0x31c   :  { %v5022_v60 = vmax.f32 %v4878_v59, 0.0  ;;  %v6877_v59 = vld [vmem:[%s8756_s0 + $0x620] sm:$0xff] }
 0x31d   :  { %v3846_v62 = vpop.f32.mrf.mxu2  ;;  %v4206_v63 = vpop.f32.mrf.mxu3 }
 0x31e   :  { %5166 = vst [vmem:[%s8758_s3 + $0x288] sm:$0xff] %v5022_v60  ;;  %v4587_v0 = vmax.f32 %v3846_v62, %v4206_v63  ;;  %v3128_v1 = vpop.f32.mrf.mxu0  ;;  %v3488_v2 = vpop.f32.mrf.mxu1  ;;  %v6949_v60 = vld [vmem:[%s8756_s0 + $0x860] sm:$0xff] }
 0x31f   :  { %v4444_v10 = vmax.f32 %v3128_v1, %v3488_v2 }
 0x320   :  { %v4731_v3 = vmax.f32 %v4443_v61, %v4587_v0 }
 0x322   :  { %v4879_v4 = vadd.f32 %v8052_v14, %v4731_v3 }
 0x324   :  { %v5023_v5 = vmax.f32 %v4879_v4, 0.0 }
 0x325   :  { %v3848_v6 = vpop.f32.mrf.mxu2  ;;  %v4208_v7 = vpop.f32.mrf.mxu3 }
 0x326   :  { %5167 = vst [vmem:[%s8758_s3 + $0x290] sm:$0xff] %v5023_v5  ;;  %v4588_v11 = vmax.f32 %v3848_v6, %v4208_v7  ;;  %v3131_v44 = vpop.f32.mrf.mxu0  ;;  %v3491_v12 = vpop.f32.mrf.mxu1 }
 0x327   :  { %v4445_v19 = vmax.f32 %v3131_v44, %v3491_v12  ;;  %v6806_v44 = vld [vmem:[%s8756_s0 + $0x3e8] sm:$0xff] }
 0x328   :  { %v4732_v16 = vmax.f32 %v4444_v10, %v4588_v11  ;;  %v6734_v11 = vld [vmem:[%s8756_s0 + $0x1a8] sm:$0xff] }
 0x329   :  { %6443 = vmatmul.msk.bf16.gmra.mxu0 %vm2047_vm0, %v6731_v8  ;;  %6515 = vmatmul.msk.bf16.gmra.mxu1 %vm2047_vm0, %v6803_v9 }
 0x32a   :  { %v4880_v17 = vadd.f32 %v8052_v14, %v4732_v16  ;;  %6587 = vmatmul.msk.bf16.gmra.mxu2 %vm2047_vm0, %v6875_v13  ;;  %6659 = vmatmul.msk.bf16.gmra.mxu3 %vm2047_vm0, %v6947_v15 }
 0x32c   :  { %v5024_v18 = vmax.f32 %v4880_v17, 0.0  ;;  %v6878_v17 = vld [vmem:[%s8756_s0 + $0x628] sm:$0xff] }
 0x32d   :  { %v3851_v20 = vpop.f32.mrf.mxu2  ;;  %v4211_v21 = vpop.f32.mrf.mxu3 }
 0x32e   :  { %5168 = vst [vmem:[%s8758_s3 + $0x298] sm:$0xff] %v5024_v18  ;;  %v4589_v22 = vmax.f32 %v3851_v20, %v4211_v21  ;;  %v3133_v23 = vpop.f32.mrf.mxu0  ;;  %v3493_v24 = vpop.f32.mrf.mxu1  ;;  %v6950_v18 = vld [vmem:[%s8756_s0 + $0x868] sm:$0xff] }
 0x32f   :  { %v4446_v32 = vmax.f32 %v3133_v23, %v3493_v24 }
 0x330   :  { %v4733_v25 = vmax.f32 %v4445_v19, %v4589_v22 }
 0x332   :  { %v4881_v26 = vadd.f32 %v8052_v14, %v4733_v25 }
 0x334   :  { %v5025_v27 = vmax.f32 %v4881_v26, 0.0 }
 0x335   :  { %v3853_v28 = vpop.f32.mrf.mxu2  ;;  %v4213_v29 = vpop.f32.mrf.mxu3 }
 0x336   :  { %5169 = vst [vmem:[%s8758_s3 + $0x2a0] sm:$0xff] %v5025_v27  ;;  %v4590_v33 = vmax.f32 %v3853_v28, %v4213_v29  ;;  %v3136_v34 = vpop.f32.mrf.mxu0  ;;  %v3496_v35 = vpop.f32.mrf.mxu1 }
 0x337   :  { %v4447_v41 = vmax.f32 %v3136_v34, %v3496_v35  ;;  %v6807_v34 = vld [vmem:[%s8756_s0 + $0x3f0] sm:$0xff] }
 0x338   :  { %v4734_v38 = vmax.f32 %v4446_v32, %v4590_v33  ;;  %v6735_v33 = vld [vmem:[%s8756_s0 + $0x1b0] sm:$0xff] }
 0x339   :  { %6444 = vmatmul.msk.bf16.gmra.mxu0 %vm2047_vm0, %v6732_v30  ;;  %6516 = vmatmul.msk.bf16.gmra.mxu1 %vm2047_vm0, %v6804_v31 }
 0x33a   :  { %v4882_v39 = vadd.f32 %v8052_v14, %v4734_v38  ;;  %6588 = vmatmul.msk.bf16.gmra.mxu2 %vm2047_vm0, %v6876_v36  ;;  %6660 = vmatmul.msk.bf16.gmra.mxu3 %vm2047_vm0, %v6948_v37 }
 0x33c   :  { %v5026_v40 = vmax.f32 %v4882_v39, 0.0  ;;  %v6879_v39 = vld [vmem:[%s8756_s0 + $0x630] sm:$0xff] }
 0x33d   :  { %v3856_v42 = vpop.f32.mrf.mxu2  ;;  %v4216_v43 = vpop.f32.mrf.mxu3 }
 0x33e   :  { %5170 = vst [vmem:[%s8758_s3 + $0x2a8] sm:$0xff] %v5026_v40  ;;  %v4591_v45 = vmax.f32 %v3856_v42, %v4216_v43  ;;  %v3138_v46 = vpop.f32.mrf.mxu0  ;;  %v3498_v47 = vpop.f32.mrf.mxu1  ;;  %v6951_v40 = vld [vmem:[%s8756_s0 + $0x870] sm:$0xff] }
 0x33f   :  { %v4448_v55 = vmax.f32 %v3138_v46, %v3498_v47 }
 0x340   :  { %v4735_v48 = vmax.f32 %v4447_v41, %v4591_v45 }
 0x342   :  { %v4883_v49 = vadd.f32 %v8052_v14, %v4735_v48 }
 0x344   :  { %v5027_v50 = vmax.f32 %v4883_v49, 0.0 }
 0x345   :  { %v3858_v51 = vpop.f32.mrf.mxu2  ;;  %v4218_v52 = vpop.f32.mrf.mxu3 }
 0x346   :  { %5171 = vst [vmem:[%s8758_s3 + $0x2b0] sm:$0xff] %v5027_v50  ;;  %v4592_v56 = vmax.f32 %v3858_v51, %v4218_v52  ;;  %v3141_v57 = vpop.f32.mrf.mxu0  ;;  %v3501_v58 = vpop.f32.mrf.mxu1 }
 0x347   :  { %v4449_v0 = vmax.f32 %v3141_v57, %v3501_v58  ;;  %v6808_v57 = vld [vmem:[%s8756_s0 + $0x3f8] sm:$0xff] }
 0x348   :  { %v4736_v61 = vmax.f32 %v4448_v55, %v4592_v56  ;;  %v6736_v56 = vld [vmem:[%s8756_s0 + $0x1b8] sm:$0xff] }
 0x349   :  { %6445 = vmatmul.msk.bf16.gmra.mxu0 %vm2047_vm0, %v6733_v53  ;;  %6517 = vmatmul.msk.bf16.gmra.mxu1 %vm2047_vm0, %v6805_v54 }
 0x34a   :  { %v4884_v62 = vadd.f32 %v8052_v14, %v4736_v61  ;;  %6589 = vmatmul.msk.bf16.gmra.mxu2 %vm2047_vm0, %v6877_v59  ;;  %6661 = vmatmul.msk.bf16.gmra.mxu3 %vm2047_vm0, %v6949_v60 }
 0x34c   :  { %v5028_v63 = vmax.f32 %v4884_v62, 0.0  ;;  %v6880_v62 = vld [vmem:[%s8756_s0 + $0x638] sm:$0xff] }
 0x34d   :  { %v3861_v1 = vpop.f32.mrf.mxu2  ;;  %v4221_v2 = vpop.f32.mrf.mxu3 }
 0x34e   :  { %5172 = vst [vmem:[%s8758_s3 + $0x2b8] sm:$0xff] %v5028_v63  ;;  %v4593_v3 = vmax.f32 %v3861_v1, %v4221_v2  ;;  %v3143_v4 = vpop.f32.mrf.mxu0  ;;  %v3503_v5 = vpop.f32.mrf.mxu1  ;;  %v6952_v63 = vld [vmem:[%s8756_s0 + $0x878] sm:$0xff] }
 0x34f   :  { %v4450_v12 = vmax.f32 %v3143_v4, %v3503_v5 }
 0x350   :  { %v4737_v6 = vmax.f32 %v4449_v0, %v4593_v3 }
 0x352   :  { %v4885_v7 = vadd.f32 %v8052_v14, %v4737_v6 }
 0x354   :  { %v5029_v8 = vmax.f32 %v4885_v7, 0.0 }
 0x355   :  { %v3863_v9 = vpop.f32.mrf.mxu2  ;;  %v4223_v10 = vpop.f32.mrf.mxu3 }
 0x356   :  { %5173 = vst [vmem:[%s8758_s3 + $0x2c0] sm:$0xff] %v5029_v8  ;;  %v4594_v13 = vmax.f32 %v3863_v9, %v4223_v10  ;;  %v3146_v15 = vpop.f32.mrf.mxu0  ;;  %v3506_v16 = vpop.f32.mrf.mxu1 }
 0x357   :  { %v4451_v22 = vmax.f32 %v3146_v15, %v3506_v16  ;;  %v6809_v15 = vld [vmem:[%s8756_s0 + $0x400] sm:$0xff] }
 0x358   :  { %v4738_v19 = vmax.f32 %v4450_v12, %v4594_v13  ;;  %v6737_v13 = vld [vmem:[%s8756_s0 + $0x1c0] sm:$0xff] }
 0x359   :  { %6446 = vmatmul.msk.bf16.gmra.mxu0 %vm2047_vm0, %v6734_v11  ;;  %6518 = vmatmul.msk.bf16.gmra.mxu1 %vm2047_vm0, %v6806_v44 }
 0x35a   :  { %v4886_v20 = vadd.f32 %v8052_v14, %v4738_v19  ;;  %6590 = vmatmul.msk.bf16.gmra.mxu2 %vm2047_vm0, %v6878_v17  ;;  %6662 = vmatmul.msk.bf16.gmra.mxu3 %vm2047_vm0, %v6950_v18 }
 0x35c   :  { %v5030_v21 = vmax.f32 %v4886_v20, 0.0  ;;  %v6881_v20 = vld [vmem:[%s8756_s0 + $0x640] sm:$0xff] }
 0x35d   :  { %v3866_v23 = vpop.f32.mrf.mxu2  ;;  %v4226_v24 = vpop.f32.mrf.mxu3 }
 0x35e   :  { %5174 = vst [vmem:[%s8758_s3 + $0x2c8] sm:$0xff] %v5030_v21  ;;  %v4595_v25 = vmax.f32 %v3866_v23, %v4226_v24  ;;  %v3148_v26 = vpop.f32.mrf.mxu0  ;;  %v3508_v27 = vpop.f32.mrf.mxu1  ;;  %v6953_v21 = vld [vmem:[%s8756_s0 + $0x880] sm:$0xff] }
 0x35f   :  { %v4452_v35 = vmax.f32 %v3148_v26, %v3508_v27 }
 0x360   :  { %v4739_v28 = vmax.f32 %v4451_v22, %v4595_v25 }
 0x362   :  { %v4887_v29 = vadd.f32 %v8052_v14, %v4739_v28 }
 0x364   :  { %v5031_v30 = vmax.f32 %v4887_v29, 0.0 }
 0x365   :  { %v3868_v31 = vpop.f32.mrf.mxu2  ;;  %v4228_v32 = vpop.f32.mrf.mxu3 }
 0x366   :  { %5175 = vst [vmem:[%s8758_s3 + $0x2d0] sm:$0xff] %v5031_v30  ;;  %v4596_v36 = vmax.f32 %v3868_v31, %v4228_v32  ;;  %v3151_v37 = vpop.f32.mrf.mxu0  ;;  %v3511_v38 = vpop.f32.mrf.mxu1 }
 0x367   :  { %v4453_v45 = vmax.f32 %v3151_v37, %v3511_v38  ;;  %v6810_v37 = vld [vmem:[%s8756_s0 + $0x408] sm:$0xff] }
 0x368   :  { %v4740_v41 = vmax.f32 %v4452_v35, %v4596_v36  ;;  %v6738_v36 = vld [vmem:[%s8756_s0 + $0x1c8] sm:$0xff] }
 0x369   :  { %6447 = vmatmul.msk.bf16.gmra.mxu0 %vm2047_vm0, %v6735_v33  ;;  %6519 = vmatmul.msk.bf16.gmra.mxu1 %vm2047_vm0, %v6807_v34 }
 0x36a   :  { %v4888_v42 = vadd.f32 %v8052_v14, %v4740_v41  ;;  %6591 = vmatmul.msk.bf16.gmra.mxu2 %vm2047_vm0, %v6879_v39  ;;  %6663 = vmatmul.msk.bf16.gmra.mxu3 %vm2047_vm0, %v6951_v40 }
 0x36c   :  { %v5032_v43 = vmax.f32 %v4888_v42, 0.0  ;;  %v6882_v42 = vld [vmem:[%s8756_s0 + $0x648] sm:$0xff] }
 0x36d   :  { %v3871_v46 = vpop.f32.mrf.mxu2  ;;  %v4231_v47 = vpop.f32.mrf.mxu3 }
 0x36e   :  { %5176 = vst [vmem:[%s8758_s3 + $0x2d8] sm:$0xff] %v5032_v43  ;;  %v4597_v48 = vmax.f32 %v3871_v46, %v4231_v47  ;;  %v3153_v49 = vpop.f32.mrf.mxu0  ;;  %v3513_v50 = vpop.f32.mrf.mxu1  ;;  %v6954_v43 = vld [vmem:[%s8756_s0 + $0x888] sm:$0xff] }
 0x36f   :  { %v4454_v58 = vmax.f32 %v3153_v49, %v3513_v50 }
 0x370   :  { %v4741_v51 = vmax.f32 %v4453_v45, %v4597_v48 }
 0x372   :  { %v4889_v52 = vadd.f32 %v8052_v14, %v4741_v51 }
 0x374   :  { %v5033_v53 = vmax.f32 %v4889_v52, 0.0 }
 0x375   :  { %v3873_v54 = vpop.f32.mrf.mxu2  ;;  %v4233_v55 = vpop.f32.mrf.mxu3 }
 0x376   :  { %5177 = vst [vmem:[%s8758_s3 + $0x2e0] sm:$0xff] %v5033_v53  ;;  %v4598_v59 = vmax.f32 %v3873_v54, %v4233_v55  ;;  %v3156_v60 = vpop.f32.mrf.mxu0  ;;  %v3516_v61 = vpop.f32.mrf.mxu1 }
 0x377   :  { %v4455_v3 = vmax.f32 %v3156_v60, %v3516_v61  ;;  %v6811_v60 = vld [vmem:[%s8756_s0 + $0x410] sm:$0xff] }
 0x378   :  { %v4742_v0 = vmax.f32 %v4454_v58, %v4598_v59  ;;  %v6739_v59 = vld [vmem:[%s8756_s0 + $0x1d0] sm:$0xff] }
 0x379   :  { %6448 = vmatmul.msk.bf16.gmra.mxu0 %vm2047_vm0, %v6736_v56  ;;  %6520 = vmatmul.msk.bf16.gmra.mxu1 %vm2047_vm0, %v6808_v57 }
 0x37a   :  { %v4890_v1 = vadd.f32 %v8052_v14, %v4742_v0  ;;  %6592 = vmatmul.msk.bf16.gmra.mxu2 %vm2047_vm0, %v6880_v62  ;;  %6664 = vmatmul.msk.bf16.gmra.mxu3 %vm2047_vm0, %v6952_v63 }
 0x37c   :  { %v5034_v2 = vmax.f32 %v4890_v1, 0.0  ;;  %v6883_v1 = vld [vmem:[%s8756_s0 + $0x650] sm:$0xff] }
 0x37d   :  { %v3876_v4 = vpop.f32.mrf.mxu2  ;;  %v4236_v5 = vpop.f32.mrf.mxu3 }
 0x37e   :  { %5178 = vst [vmem:[%s8758_s3 + $0x2e8] sm:$0xff] %v5034_v2  ;;  %v4599_v6 = vmax.f32 %v3876_v4, %v4236_v5  ;;  %v3158_v7 = vpop.f32.mrf.mxu0  ;;  %v3518_v8 = vpop.f32.mrf.mxu1  ;;  %v6955_v2 = vld [vmem:[%s8756_s0 + $0x890] sm:$0xff] }
 0x37f   :  { %v4456_v16 = vmax.f32 %v3158_v7, %v3518_v8 }
 0x380   :  { %v4743_v9 = vmax.f32 %v4455_v3, %v4599_v6 }
 0x382   :  { %v4891_v10 = vadd.f32 %v8052_v14, %v4743_v9 }
 0x384   :  { %v5035_v11 = vmax.f32 %v4891_v10, 0.0 }
 0x385   :  { %v3878_v44 = vpop.f32.mrf.mxu2  ;;  %v4238_v12 = vpop.f32.mrf.mxu3 }
 0x386   :  { %5179 = vst [vmem:[%s8758_s3 + $0x2f0] sm:$0xff] %v5035_v11  ;;  %v4600_v17 = vmax.f32 %v3878_v44, %v4238_v12  ;;  %v3161_v18 = vpop.f32.mrf.mxu0  ;;  %v3521_v19 = vpop.f32.mrf.mxu1 }
 0x387   :  { %v4457_v25 = vmax.f32 %v3161_v18, %v3521_v19  ;;  %v6812_v18 = vld [vmem:[%s8756_s0 + $0x418] sm:$0xff] }
 0x388   :  { %v4744_v22 = vmax.f32 %v4456_v16, %v4600_v17  ;;  %v6740_v17 = vld [vmem:[%s8756_s0 + $0x1d8] sm:$0xff] }
 0x389   :  { %6449 = vmatmul.msk.bf16.gmra.mxu0 %vm2047_vm0, %v6737_v13  ;;  %6521 = vmatmul.msk.bf16.gmra.mxu1 %vm2047_vm0, %v6809_v15 }
 0x38a   :  { %v4892_v23 = vadd.f32 %v8052_v14, %v4744_v22  ;;  %6593 = vmatmul.msk.bf16.gmra.mxu2 %vm2047_vm0, %v6881_v20  ;;  %6665 = vmatmul.msk.bf16.gmra.mxu3 %vm2047_vm0, %v6953_v21 }
 0x38c   :  { %v5036_v24 = vmax.f32 %v4892_v23, 0.0  ;;  %v6884_v23 = vld [vmem:[%s8756_s0 + $0x658] sm:$0xff] }
 0x38d   :  { %v3881_v26 = vpop.f32.mrf.mxu2  ;;  %v4241_v27 = vpop.f32.mrf.mxu3 }
 0x38e   :  { %5180 = vst [vmem:[%s8758_s3 + $0x2f8] sm:$0xff] %v5036_v24  ;;  %v4601_v28 = vmax.f32 %v3881_v26, %v4241_v27  ;;  %v3163_v29 = vpop.f32.mrf.mxu0  ;;  %v3523_v30 = vpop.f32.mrf.mxu1  ;;  %v6956_v24 = vld [vmem:[%s8756_s0 + $0x898] sm:$0xff] }
 0x38f   :  { %v4458_v38 = vmax.f32 %v3163_v29, %v3523_v30 }
 0x390   :  { %v4745_v31 = vmax.f32 %v4457_v25, %v4601_v28 }
 0x392   :  { %v4893_v32 = vadd.f32 %v8052_v14, %v4745_v31 }
 0x394   :  { %v5037_v33 = vmax.f32 %v4893_v32, 0.0 }
 0x395   :  { %v3883_v34 = vpop.f32.mrf.mxu2  ;;  %v4243_v35 = vpop.f32.mrf.mxu3 }
 0x396   :  { %5181 = vst [vmem:[%s8758_s3 + $0x300] sm:$0xff] %v5037_v33  ;;  %v4602_v39 = vmax.f32 %v3883_v34, %v4243_v35  ;;  %v3166_v40 = vpop.f32.mrf.mxu0  ;;  %v3526_v41 = vpop.f32.mrf.mxu1 }
 0x397   :  { %v4459_v48 = vmax.f32 %v3166_v40, %v3526_v41  ;;  %v6813_v40 = vld [vmem:[%s8756_s0 + $0x420] sm:$0xff] }
 0x398   :  { %v4746_v45 = vmax.f32 %v4458_v38, %v4602_v39  ;;  %v6741_v39 = vld [vmem:[%s8756_s0 + $0x1e0] sm:$0xff] }
 0x399   :  { %6450 = vmatmul.msk.bf16.gmra.mxu0 %vm2047_vm0, %v6738_v36  ;;  %6522 = vmatmul.msk.bf16.gmra.mxu1 %vm2047_vm0, %v6810_v37 }
 0x39a   :  { %v4894_v46 = vadd.f32 %v8052_v14, %v4746_v45  ;;  %6594 = vmatmul.msk.bf16.gmra.mxu2 %vm2047_vm0, %v6882_v42  ;;  %6666 = vmatmul.msk.bf16.gmra.mxu3 %vm2047_vm0, %v6954_v43 }
 0x39c   :  { %v5038_v47 = vmax.f32 %v4894_v46, 0.0  ;;  %v6885_v46 = vld [vmem:[%s8756_s0 + $0x660] sm:$0xff] }
 0x39d   :  { %v3886_v49 = vpop.f32.mrf.mxu2  ;;  %v4246_v50 = vpop.f32.mrf.mxu3 }
 0x39e   :  { %5182 = vst [vmem:[%s8758_s3 + $0x308] sm:$0xff] %v5038_v47  ;;  %v4603_v51 = vmax.f32 %v3886_v49, %v4246_v50  ;;  %v3168_v52 = vpop.f32.mrf.mxu0  ;;  %v3528_v53 = vpop.f32.mrf.mxu1  ;;  %v6957_v47 = vld [vmem:[%s8756_s0 + $0x8a0] sm:$0xff] }
 0x39f   :  { %v4460_v61 = vmax.f32 %v3168_v52, %v3528_v53 }
 0x3a0   :  { %v4747_v54 = vmax.f32 %v4459_v48, %v4603_v51 }
 0x3a2   :  { %v4895_v55 = vadd.f32 %v8052_v14, %v4747_v54 }
 0x3a4   :  { %v5039_v56 = vmax.f32 %v4895_v55, 0.0 }
 0x3a5   :  { %v3888_v57 = vpop.f32.mrf.mxu2  ;;  %v4248_v58 = vpop.f32.mrf.mxu3 }
 0x3a6   :  { %5183 = vst [vmem:[%s8758_s3 + $0x310] sm:$0xff] %v5039_v56  ;;  %v4604_v62 = vmax.f32 %v3888_v57, %v4248_v58  ;;  %v3171_v63 = vpop.f32.mrf.mxu0  ;;  %v3531_v0 = vpop.f32.mrf.mxu1 }
 0x3a7   :  { %v4461_v6 = vmax.f32 %v3171_v63, %v3531_v0  ;;  %v6814_v63 = vld [vmem:[%s8756_s0 + $0x428] sm:$0xff] }
 0x3a8   :  { %v4748_v3 = vmax.f32 %v4460_v61, %v4604_v62  ;;  %v6742_v62 = vld [vmem:[%s8756_s0 + $0x1e8] sm:$0xff] }
 0x3a9   :  { %6451 = vmatmul.msk.bf16.gmra.mxu0 %vm2047_vm0, %v6739_v59  ;;  %6523 = vmatmul.msk.bf16.gmra.mxu1 %vm2047_vm0, %v6811_v60 }
 0x3aa   :  { %v4896_v4 = vadd.f32 %v8052_v14, %v4748_v3  ;;  %6595 = vmatmul.msk.bf16.gmra.mxu2 %vm2047_vm0, %v6883_v1  ;;  %6667 = vmatmul.msk.bf16.gmra.mxu3 %vm2047_vm0, %v6955_v2 }
 0x3ac   :  { %v5040_v5 = vmax.f32 %v4896_v4, 0.0  ;;  %v6886_v4 = vld [vmem:[%s8756_s0 + $0x668] sm:$0xff] }
 0x3ad   :  { %v3891_v7 = vpop.f32.mrf.mxu2  ;;  %v4251_v8 = vpop.f32.mrf.mxu3 }
 0x3ae   :  { %5184 = vst [vmem:[%s8758_s3 + $0x318] sm:$0xff] %v5040_v5  ;;  %v4605_v9 = vmax.f32 %v3891_v7, %v4251_v8  ;;  %v3173_v10 = vpop.f32.mrf.mxu0  ;;  %v3533_v11 = vpop.f32.mrf.mxu1  ;;  %v6958_v5 = vld [vmem:[%s8756_s0 + $0x8a8] sm:$0xff] }
 0x3af   :  { %v4462_v19 = vmax.f32 %v3173_v10, %v3533_v11 }
 0x3b0   :  { %v4749_v44 = vmax.f32 %v4461_v6, %v4605_v9 }
 0x3b2   :  { %v4897_v12 = vadd.f32 %v8052_v14, %v4749_v44 }
 0x3b4   :  { %v5041_v13 = vmax.f32 %v4897_v12, 0.0 }
 0x3b5   :  { %v3893_v15 = vpop.f32.mrf.mxu2  ;;  %v4253_v16 = vpop.f32.mrf.mxu3 }
 0x3b6   :  { %5185 = vst [vmem:[%s8758_s3 + $0x320] sm:$0xff] %v5041_v13  ;;  %v4606_v20 = vmax.f32 %v3893_v15, %v4253_v16  ;;  %v3176_v21 = vpop.f32.mrf.mxu0  ;;  %v3536_v22 = vpop.f32.mrf.mxu1 }
 0x3b7   :  { %v4463_v28 = vmax.f32 %v3176_v21, %v3536_v22  ;;  %v6815_v21 = vld [vmem:[%s8756_s0 + $0x430] sm:$0xff] }
 0x3b8   :  { %v4750_v25 = vmax.f32 %v4462_v19, %v4606_v20  ;;  %v6743_v20 = vld [vmem:[%s8756_s0 + $0x1f0] sm:$0xff] }
 0x3b9   :  { %6452 = vmatmul.msk.bf16.gmra.mxu0 %vm2047_vm0, %v6740_v17  ;;  %6524 = vmatmul.msk.bf16.gmra.mxu1 %vm2047_vm0, %v6812_v18 }
 0x3ba   :  { %v4898_v26 = vadd.f32 %v8052_v14, %v4750_v25  ;;  %6596 = vmatmul.msk.bf16.gmra.mxu2 %vm2047_vm0, %v6884_v23  ;;  %6668 = vmatmul.msk.bf16.gmra.mxu3 %vm2047_vm0, %v6956_v24 }
 0x3bc   :  { %v5042_v27 = vmax.f32 %v4898_v26, 0.0  ;;  %v6887_v26 = vld [vmem:[%s8756_s0 + $0x670] sm:$0xff] }
 0x3bd   :  { %v3896_v29 = vpop.f32.mrf.mxu2  ;;  %v4256_v30 = vpop.f32.mrf.mxu3 }
 0x3be   :  { %5186 = vst [vmem:[%s8758_s3 + $0x328] sm:$0xff] %v5042_v27  ;;  %v4607_v31 = vmax.f32 %v3896_v29, %v4256_v30  ;;  %v3178_v32 = vpop.f32.mrf.mxu0  ;;  %v3538_v33 = vpop.f32.mrf.mxu1  ;;  %v6959_v27 = vld [vmem:[%s8756_s0 + $0x8b0] sm:$0xff] }
 0x3bf   :  { %v4464_v41 = vmax.f32 %v3178_v32, %v3538_v33 }
 0x3c0   :  { %v4751_v34 = vmax.f32 %v4463_v28, %v4607_v31 }
 0x3c2   :  { %v4899_v35 = vadd.f32 %v8052_v14, %v4751_v34 }
 0x3c4   :  { %v5043_v36 = vmax.f32 %v4899_v35, 0.0 }
 0x3c5   :  { %v3898_v37 = vpop.f32.mrf.mxu2  ;;  %v4258_v38 = vpop.f32.mrf.mxu3 }
 0x3c6   :  { %5187 = vst [vmem:[%s8758_s3 + $0x330] sm:$0xff] %v5043_v36  ;;  %v4608_v42 = vmax.f32 %v3898_v37, %v4258_v38  ;;  %v3181_v43 = vpop.f32.mrf.mxu0  ;;  %v3541_v45 = vpop.f32.mrf.mxu1 }
 0x3c7   :  { %v4465_v51 = vmax.f32 %v3181_v43, %v3541_v45  ;;  %v6816_v43 = vld [vmem:[%s8756_s0 + $0x438] sm:$0xff] }
 0x3c8   :  { %v4752_v48 = vmax.f32 %v4464_v41, %v4608_v42  ;;  %v6744_v42 = vld [vmem:[%s8756_s0 + $0x1f8] sm:$0xff] }
 0x3c9   :  { %6453 = vmatmul.msk.bf16.gmra.mxu0 %vm2047_vm0, %v6741_v39  ;;  %6525 = vmatmul.msk.bf16.gmra.mxu1 %vm2047_vm0, %v6813_v40 }
 0x3ca   :  { %v4900_v49 = vadd.f32 %v8052_v14, %v4752_v48  ;;  %6597 = vmatmul.msk.bf16.gmra.mxu2 %vm2047_vm0, %v6885_v46  ;;  %6669 = vmatmul.msk.bf16.gmra.mxu3 %vm2047_vm0, %v6957_v47 }
 0x3cc   :  { %v5044_v50 = vmax.f32 %v4900_v49, 0.0  ;;  %v6888_v49 = vld [vmem:[%s8756_s0 + $0x678] sm:$0xff] }
 0x3cd   :  { %v3901_v52 = vpop.f32.mrf.mxu2  ;;  %v4261_v53 = vpop.f32.mrf.mxu3 }
 0x3ce   :  { %5188 = vst [vmem:[%s8758_s3 + $0x338] sm:$0xff] %v5044_v50  ;;  %v4609_v54 = vmax.f32 %v3901_v52, %v4261_v53  ;;  %v3183_v55 = vpop.f32.mrf.mxu0  ;;  %v3543_v56 = vpop.f32.mrf.mxu1  ;;  %v6960_v50 = vld [vmem:[%s8756_s0 + $0x8b8] sm:$0xff] }
 0x3cf   :  { %v4466_v0 = vmax.f32 %v3183_v55, %v3543_v56 }
 0x3d0   :  { %v4753_v57 = vmax.f32 %v4465_v51, %v4609_v54 }
 0x3d2   :  { %v4901_v58 = vadd.f32 %v8052_v14, %v4753_v57 }
 0x3d4   :  { %v5045_v59 = vmax.f32 %v4901_v58, 0.0 }
 0x3d5   :  { %v3903_v60 = vpop.f32.mrf.mxu2  ;;  %v4263_v61 = vpop.f32.mrf.mxu3 }
 0x3d6   :  { %5189 = vst [vmem:[%s8758_s3 + $0x340] sm:$0xff] %v5045_v59  ;;  %v4610_v1 = vmax.f32 %v3903_v60, %v4263_v61  ;;  %v3186_v2 = vpop.f32.mrf.mxu0  ;;  %v3546_v3 = vpop.f32.mrf.mxu1 }
 0x3d7   :  { %v4467_v9 = vmax.f32 %v3186_v2, %v3546_v3  ;;  %v6817_v2 = vld [vmem:[%s8756_s0 + $0x440] sm:$0xff] }
 0x3d8   :  { %v4754_v6 = vmax.f32 %v4466_v0, %v4610_v1  ;;  %v6745_v1 = vld [vmem:[%s8756_s0 + $0x200] sm:$0xff] }
 0x3d9   :  { %6454 = vmatmul.msk.bf16.gmra.mxu0 %vm2047_vm0, %v6742_v62  ;;  %6526 = vmatmul.msk.bf16.gmra.mxu1 %vm2047_vm0, %v6814_v63 }
 0x3da   :  { %v4902_v7 = vadd.f32 %v8052_v14, %v4754_v6  ;;  %6598 = vmatmul.msk.bf16.gmra.mxu2 %vm2047_vm0, %v6886_v4  ;;  %6670 = vmatmul.msk.bf16.gmra.mxu3 %vm2047_vm0, %v6958_v5 }
 0x3dc   :  { %v5046_v8 = vmax.f32 %v4902_v7, 0.0  ;;  %v6961_v7 = vld [vmem:[%s8756_s0 + $0x8c0] sm:$0xff] }
 0x3dd   :  { %v3906_v10 = vpop.f32.mrf.mxu2  ;;  %v4266_v11 = vpop.f32.mrf.mxu3 }
 0x3de   :  { %5190 = vst [vmem:[%s8758_s3 + $0x348] sm:$0xff] %v5046_v8  ;;  %v4611_v44 = vmax.f32 %v3906_v10, %v4266_v11  ;;  %v3188_v12 = vpop.f32.mrf.mxu0  ;;  %v3548_v13 = vpop.f32.mrf.mxu1 }
 0x3df   :  { %v4468_v22 = vmax.f32 %v3188_v12, %v3548_v13 }
 0x3e0   :  { %v4755_v15 = vmax.f32 %v4467_v9, %v4611_v44  ;;  %v8507_v9 = vld [vmem:[%s8757_s2] ss:$0 sm:$0xff] }
 0x3e2   :  { %v4903_v16 = vadd.f32 %v8052_v14, %v4755_v15 }
 0x3e4   :  { %v5047_v17 = vmax.f32 %v4903_v16, 0.0 }
 0x3e5   :  { %v3908_v18 = vpop.f32.mrf.mxu2  ;;  %v4268_v19 = vpop.f32.mrf.mxu3 }
 0x3e6   :  { %5191 = vst [vmem:[%s8758_s3 + $0x350] sm:$0xff] %v5047_v17  ;;  %v4612_v23 = vmax.f32 %v3908_v18, %v4268_v19  ;;  %v3191_v24 = vpop.f32.mrf.mxu0  ;;  %v3551_v25 = vpop.f32.mrf.mxu1 }
 0x3e7   :  { %v4469_v31 = vmax.f32 %v3191_v24, %v3551_v25  ;;  %v6818_v24 = vld [vmem:[%s8756_s0 + $0x448] sm:$0xff] }
 0x3e8   :  { %v4756_v28 = vmax.f32 %v4468_v22, %v4612_v23  ;;  %v6746_v23 = vld [vmem:[%s8756_s0 + $0x208] sm:$0xff] }
 0x3e9   :  { %6455 = vmatmul.msk.bf16.gmra.mxu0 %vm2047_vm0, %v6743_v20  ;;  %6527 = vmatmul.msk.bf16.gmra.mxu1 %vm2047_vm0, %v6815_v21 }
 0x3ea   :  { %v4904_v29 = vadd.f32 %v8052_v14, %v4756_v28  ;;  %6599 = vmatmul.msk.bf16.gmra.mxu2 %vm2047_vm0, %v6887_v26  ;;  %6671 = vmatmul.msk.bf16.gmra.mxu3 %vm2047_vm0, %v6959_v27 }
 0x3ec   :  { %v5048_v30 = vmax.f32 %v4904_v29, 0.0  ;;  %v6890_v29 = vld [vmem:[%s8756_s0 + $0x688] sm:$0xff] }
 0x3ed   :  { %v3911_v32 = vpop.f32.mrf.mxu2  ;;  %v4271_v33 = vpop.f32.mrf.mxu3 }
 0x3ee   :  { %5192 = vst [vmem:[%s8758_s3 + $0x358] sm:$0xff] %v5048_v30  ;;  %v4613_v34 = vmax.f32 %v3911_v32, %v4271_v33  ;;  %v3193_v35 = vpop.f32.mrf.mxu0  ;;  %v3553_v36 = vpop.f32.mrf.mxu1  ;;  %v6962_v30 = vld [vmem:[%s8756_s0 + $0x8c8] sm:$0xff] }
 0x3ef   :  { %v4470_v45 = vmax.f32 %v3193_v35, %v3553_v36 }
 0x3f0   :  { %v4757_v37 = vmax.f32 %v4469_v31, %v4613_v34 }
 0x3f2   :  { %v4905_v38 = vadd.f32 %v8052_v14, %v4757_v37 }
 0x3f4   :  { %v5049_v39 = vmax.f32 %v4905_v38, 0.0 }
 0x3f5   :  { %v3913_v40 = vpop.f32.mrf.mxu2  ;;  %v4273_v41 = vpop.f32.mrf.mxu3 }
 0x3f6   :  { %5193 = vst [vmem:[%s8758_s3 + $0x360] sm:$0xff] %v5049_v39  ;;  %v4614_v46 = vmax.f32 %v3913_v40, %v4273_v41  ;;  %v3196_v47 = vpop.f32.mrf.mxu0  ;;  %v3556_v48 = vpop.f32.mrf.mxu1 }
 0x3f7   :  { %v4471_v54 = vmax.f32 %v3196_v47, %v3556_v48  ;;  %v6819_v47 = vld [vmem:[%s8756_s0 + $0x450] sm:$0xff] }
 0x3f8   :  { %v4758_v51 = vmax.f32 %v4470_v45, %v4614_v46  ;;  %v6747_v46 = vld [vmem:[%s8756_s0 + $0x210] sm:$0xff] }
 0x3f9   :  { %6456 = vmatmul.msk.bf16.gmra.mxu0 %vm2047_vm0, %v6744_v42  ;;  %6528 = vmatmul.msk.bf16.gmra.mxu1 %vm2047_vm0, %v6816_v43 }
 0x3fa   :  { %v4906_v52 = vadd.f32 %v8052_v14, %v4758_v51  ;;  %6600 = vmatmul.msk.bf16.gmra.mxu2 %vm2047_vm0, %v6888_v49  ;;  %6672 = vmatmul.msk.bf16.gmra.mxu3 %vm2047_vm0, %v6960_v50 }
 0x3fc   :  { %v5050_v53 = vmax.f32 %v4906_v52, 0.0  ;;  %v6891_v52 = vld [vmem:[%s8756_s0 + $0x690] sm:$0xff] }
 0x3fd   :  { %v3916_v55 = vpop.f32.mrf.mxu2  ;;  %v4276_v56 = vpop.f32.mrf.mxu3 }
 0x3fe   :  { %5194 = vst [vmem:[%s8758_s3 + $0x368] sm:$0xff] %v5050_v53  ;;  %v4615_v57 = vmax.f32 %v3916_v55, %v4276_v56  ;;  %v3198_v58 = vpop.f32.mrf.mxu0  ;;  %v3558_v59 = vpop.f32.mrf.mxu1  ;;  %v6963_v53 = vld [vmem:[%s8756_s0 + $0x8d0] sm:$0xff] }
 0x3ff   :  { %v4472_v3 = vmax.f32 %v3198_v58, %v3558_v59 }
 0x400   :  { %v4759_v60 = vmax.f32 %v4471_v54, %v4615_v57 }
 0x402   :  { %v4907_v61 = vadd.f32 %v8052_v14, %v4759_v60  ;;  %v6889_v14 = vld [vmem:[%s8756_s0 + $0x680] sm:$0xff] }
 0x404   :  { %v5051_v62 = vmax.f32 %v4907_v61, 0.0 }
 0x405   :  { %v3918_v63 = vpop.f32.mrf.mxu2  ;;  %v4278_v0 = vpop.f32.mrf.mxu3 }
 0x406   :  { %5195 = vst [vmem:[%s8758_s3 + $0x370] sm:$0xff] %v5051_v62  ;;  %v4616_v4 = vmax.f32 %v3918_v63, %v4278_v0  ;;  %v3201_v5 = vpop.f32.mrf.mxu0  ;;  %v3561_v6 = vpop.f32.mrf.mxu1 }
 0x407   :  { %v4473_v44 = vmax.f32 %v3201_v5, %v3561_v6  ;;  %v6820_v5 = vld [vmem:[%s8756_s0 + $0x458] sm:$0xff] }
 0x408   :  { %v4760_v8 = vmax.f32 %v4472_v3, %v4616_v4  ;;  %v6748_v4 = vld [vmem:[%s8756_s0 + $0x218] sm:$0xff] }
 0x409   :  { %6457 = vmatmul.msk.bf16.gmra.mxu0 %vm2047_vm0, %v6745_v1  ;;  %6529 = vmatmul.msk.bf16.gmra.mxu1 %vm2047_vm0, %v6817_v2 }
 0x40a   :  { %v4908_v10 = vadd.f32 %v8507_v9, %v4760_v8  ;;  %6601 = vmatmul.msk.bf16.gmra.mxu2 %vm2047_vm0, %v6889_v14  ;;  %6673 = vmatmul.msk.bf16.gmra.mxu3 %vm2047_vm0, %v6961_v7 }
 0x40c   :  { %v5052_v11 = vmax.f32 %v4908_v10, 0.0  ;;  %v6892_v10 = vld [vmem:[%s8756_s0 + $0x698] sm:$0xff] }
 0x40d   :  { %v3921_v12 = vpop.f32.mrf.mxu2  ;;  %v4281_v13 = vpop.f32.mrf.mxu3 }
 0x40e   :  { %5196 = vst [vmem:[%s8758_s3 + $0x378] sm:$0xff] %v5052_v11  ;;  %v4617_v15 = vmax.f32 %v3921_v12, %v4281_v13  ;;  %v3203_v16 = vpop.f32.mrf.mxu0  ;;  %v3563_v17 = vpop.f32.mrf.mxu1  ;;  %v6964_v11 = vld [vmem:[%s8756_s0 + $0x8d8] sm:$0xff] }
 0x40f   :  { %v4474_v25 = vmax.f32 %v3203_v16, %v3563_v17 }
 0x410   :  { %v4761_v18 = vmax.f32 %v4473_v44, %v4617_v15 }
 0x412   :  { %v4909_v19 = vadd.f32 %v8507_v9, %v4761_v18 }
 0x414   :  { %v5053_v20 = vmax.f32 %v4909_v19, 0.0 }
 0x415   :  { %v3923_v21 = vpop.f32.mrf.mxu2  ;;  %v4283_v22 = vpop.f32.mrf.mxu3 }
 0x416   :  { %5197 = vst [vmem:[%s8758_s3 + $0x380] sm:$0xff] %v5053_v20  ;;  %v4618_v26 = vmax.f32 %v3923_v21, %v4283_v22  ;;  %v3206_v27 = vpop.f32.mrf.mxu0  ;;  %v3566_v28 = vpop.f32.mrf.mxu1 }
 0x417   :  { %v4475_v34 = vmax.f32 %v3206_v27, %v3566_v28  ;;  %v6821_v27 = vld [vmem:[%s8756_s0 + $0x460] sm:$0xff] }
 0x418   :  { %v4762_v31 = vmax.f32 %v4474_v25, %v4618_v26  ;;  %v6749_v26 = vld [vmem:[%s8756_s0 + $0x220] sm:$0xff] }
 0x419   :  { %6458 = vmatmul.msk.bf16.gmra.mxu0 %vm2047_vm0, %v6746_v23  ;;  %6530 = vmatmul.msk.bf16.gmra.mxu1 %vm2047_vm0, %v6818_v24 }
 0x41a   :  { %v4910_v32 = vadd.f32 %v8507_v9, %v4762_v31  ;;  %6602 = vmatmul.msk.bf16.gmra.mxu2 %vm2047_vm0, %v6890_v29  ;;  %6674 = vmatmul.msk.bf16.gmra.mxu3 %vm2047_vm0, %v6962_v30 }
 0x41c   :  { %v5054_v33 = vmax.f32 %v4910_v32, 0.0  ;;  %v6893_v32 = vld [vmem:[%s8756_s0 + $0x6a0] sm:$0xff] }
 0x41d   :  { %v3926_v35 = vpop.f32.mrf.mxu2  ;;  %v4286_v36 = vpop.f32.mrf.mxu3 }
 0x41e   :  { %5198 = vst [vmem:[%s8758_s3 + $0x388] sm:$0xff] %v5054_v33  ;;  %v4619_v37 = vmax.f32 %v3926_v35, %v4286_v36  ;;  %v3208_v38 = vpop.f32.mrf.mxu0  ;;  %v3568_v39 = vpop.f32.mrf.mxu1  ;;  %v6965_v33 = vld [vmem:[%s8756_s0 + $0x8e0] sm:$0xff] }
 0x41f   :  { %v4476_v48 = vmax.f32 %v3208_v38, %v3568_v39 }
 0x420   :  { %v4763_v40 = vmax.f32 %v4475_v34, %v4619_v37 }
 0x422   :  { %v4911_v41 = vadd.f32 %v8507_v9, %v4763_v40 }
 0x424   :  { %v5055_v42 = vmax.f32 %v4911_v41, 0.0 }
 0x425   :  { %v3928_v43 = vpop.f32.mrf.mxu2  ;;  %v4288_v45 = vpop.f32.mrf.mxu3 }
 0x426   :  { %5199 = vst [vmem:[%s8758_s3 + $0x390] sm:$0xff] %v5055_v42  ;;  %v4620_v49 = vmax.f32 %v3928_v43, %v4288_v45  ;;  %v3211_v50 = vpop.f32.mrf.mxu0  ;;  %v3571_v51 = vpop.f32.mrf.mxu1 }
 0x427   :  { %v4477_v57 = vmax.f32 %v3211_v50, %v3571_v51  ;;  %v6822_v50 = vld [vmem:[%s8756_s0 + $0x468] sm:$0xff] }
 0x428   :  { %v4764_v54 = vmax.f32 %v4476_v48, %v4620_v49  ;;  %v6750_v49 = vld [vmem:[%s8756_s0 + $0x228] sm:$0xff] }
 0x429   :  { %6459 = vmatmul.msk.bf16.gmra.mxu0 %vm2047_vm0, %v6747_v46  ;;  %6531 = vmatmul.msk.bf16.gmra.mxu1 %vm2047_vm0, %v6819_v47 }
 0x42a   :  { %v4912_v55 = vadd.f32 %v8507_v9, %v4764_v54  ;;  %6603 = vmatmul.msk.bf16.gmra.mxu2 %vm2047_vm0, %v6891_v52  ;;  %6675 = vmatmul.msk.bf16.gmra.mxu3 %vm2047_vm0, %v6963_v53 }
 0x42c   :  { %v5056_v56 = vmax.f32 %v4912_v55, 0.0  ;;  %v6894_v55 = vld [vmem:[%s8756_s0 + $0x6a8] sm:$0xff] }
 0x42d   :  { %v3931_v58 = vpop.f32.mrf.mxu2  ;;  %v4291_v59 = vpop.f32.mrf.mxu3 }
 0x42e   :  { %5200 = vst [vmem:[%s8758_s3 + $0x398] sm:$0xff] %v5056_v56  ;;  %v4621_v60 = vmax.f32 %v3931_v58, %v4291_v59  ;;  %v3213_v61 = vpop.f32.mrf.mxu0  ;;  %v3573_v62 = vpop.f32.mrf.mxu1  ;;  %v6966_v56 = vld [vmem:[%s8756_s0 + $0x8e8] sm:$0xff] }
 0x42f   :  { %v4478_v6 = vmax.f32 %v3213_v61, %v3573_v62 }
 0x430   :  { %v4765_v63 = vmax.f32 %v4477_v57, %v4621_v60 }
 0x432   :  { %v4913_v0 = vadd.f32 %v8507_v9, %v4765_v63 }
 0x434   :  { %v5057_v1 = vmax.f32 %v4913_v0, 0.0 }
 0x435   :  { %v3933_v2 = vpop.f32.mrf.mxu2  ;;  %v4293_v3 = vpop.f32.mrf.mxu3 }
 0x436   :  { %5201 = vst [vmem:[%s8758_s3 + $0x3a0] sm:$0xff] %v5057_v1  ;;  %v4622_v14 = vmax.f32 %v3933_v2, %v4293_v3  ;;  %v3216_v7 = vpop.f32.mrf.mxu0  ;;  %v3576_v8 = vpop.f32.mrf.mxu1 }
 0x437   :  { %v4479_v15 = vmax.f32 %v3216_v7, %v3576_v8  ;;  %v6823_v7 = vld [vmem:[%s8756_s0 + $0x470] sm:$0xff] }
 0x438   :  { %v4766_v44 = vmax.f32 %v4478_v6, %v4622_v14  ;;  %v6751_v14 = vld [vmem:[%s8756_s0 + $0x230] sm:$0xff] }
 0x439   :  { %6460 = vmatmul.msk.bf16.gmra.mxu0 %vm2047_vm0, %v6748_v4  ;;  %6532 = vmatmul.msk.bf16.gmra.mxu1 %vm2047_vm0, %v6820_v5 }
 0x43a   :  { %v4914_v12 = vadd.f32 %v8507_v9, %v4766_v44  ;;  %6604 = vmatmul.msk.bf16.gmra.mxu2 %vm2047_vm0, %v6892_v10  ;;  %6676 = vmatmul.msk.bf16.gmra.mxu3 %vm2047_vm0, %v6964_v11 }
 0x43c   :  { %v5058_v13 = vmax.f32 %v4914_v12, 0.0  ;;  %v6895_v12 = vld [vmem:[%s8756_s0 + $0x6b0] sm:$0xff] }
 0x43d   :  { %v3936_v16 = vpop.f32.mrf.mxu2  ;;  %v4296_v17 = vpop.f32.mrf.mxu3 }
 0x43e   :  { %5202 = vst [vmem:[%s8758_s3 + $0x3a8] sm:$0xff] %v5058_v13  ;;  %v4623_v18 = vmax.f32 %v3936_v16, %v4296_v17  ;;  %v3218_v19 = vpop.f32.mrf.mxu0  ;;  %v3578_v20 = vpop.f32.mrf.mxu1  ;;  %v6967_v13 = vld [vmem:[%s8756_s0 + $0x8f0] sm:$0xff] }
 0x43f   :  { %v4480_v28 = vmax.f32 %v3218_v19, %v3578_v20 }
 0x440   :  { %v4767_v21 = vmax.f32 %v4479_v15, %v4623_v18 }
 0x442   :  { %v4915_v22 = vadd.f32 %v8507_v9, %v4767_v21 }
 0x444   :  { %v5059_v23 = vmax.f32 %v4915_v22, 0.0 }
 0x445   :  { %v3938_v24 = vpop.f32.mrf.mxu2  ;;  %v4298_v25 = vpop.f32.mrf.mxu3 }
 0x446   :  { %5203 = vst [vmem:[%s8758_s3 + $0x3b0] sm:$0xff] %v5059_v23  ;;  %v4624_v29 = vmax.f32 %v3938_v24, %v4298_v25  ;;  %v3221_v30 = vpop.f32.mrf.mxu0  ;;  %v3581_v31 = vpop.f32.mrf.mxu1 }
 0x447   :  { %v4481_v37 = vmax.f32 %v3221_v30, %v3581_v31  ;;  %v6824_v30 = vld [vmem:[%s8756_s0 + $0x478] sm:$0xff] }
 0x448   :  { %v4768_v34 = vmax.f32 %v4480_v28, %v4624_v29  ;;  %v6752_v29 = vld [vmem:[%s8756_s0 + $0x238] sm:$0xff] }
 0x449   :  { %6461 = vmatmul.msk.bf16.gmra.mxu0 %vm2047_vm0, %v6749_v26  ;;  %6533 = vmatmul.msk.bf16.gmra.mxu1 %vm2047_vm0, %v6821_v27 }
 0x44a   :  { %v4916_v35 = vadd.f32 %v8507_v9, %v4768_v34  ;;  %6605 = vmatmul.msk.bf16.gmra.mxu2 %vm2047_vm0, %v6893_v32  ;;  %6677 = vmatmul.msk.bf16.gmra.mxu3 %vm2047_vm0, %v6965_v33 }
 0x44c   :  { %v5060_v36 = vmax.f32 %v4916_v35, 0.0  ;;  %v6896_v35 = vld [vmem:[%s8756_s0 + $0x6b8] sm:$0xff] }
 0x44d   :  { %v3941_v38 = vpop.f32.mrf.mxu2  ;;  %v4301_v39 = vpop.f32.mrf.mxu3 }
 0x44e   :  { %5204 = vst [vmem:[%s8758_s3 + $0x3b8] sm:$0xff] %v5060_v36  ;;  %v4625_v40 = vmax.f32 %v3941_v38, %v4301_v39  ;;  %v3223_v41 = vpop.f32.mrf.mxu0  ;;  %v3583_v42 = vpop.f32.mrf.mxu1  ;;  %v6968_v36 = vld [vmem:[%s8756_s0 + $0x8f8] sm:$0xff] }
 0x44f   :  { %v4482_v51 = vmax.f32 %v3223_v41, %v3583_v42 }
 0x450   :  { %v4769_v43 = vmax.f32 %v4481_v37, %v4625_v40 }
 0x452   :  { %v4917_v45 = vadd.f32 %v8507_v9, %v4769_v43 }
 0x454   :  { %v5061_v46 = vmax.f32 %v4917_v45, 0.0 }
 0x455   :  { %v3943_v47 = vpop.f32.mrf.mxu2  ;;  %v4303_v48 = vpop.f32.mrf.mxu3 }
 0x456   :  { %5205 = vst [vmem:[%s8758_s3 + $0x3c0] sm:$0xff] %v5061_v46  ;;  %v4626_v52 = vmax.f32 %v3943_v47, %v4303_v48  ;;  %v3226_v53 = vpop.f32.mrf.mxu0  ;;  %v3586_v54 = vpop.f32.mrf.mxu1 }
 0x457   :  { %v4483_v60 = vmax.f32 %v3226_v53, %v3586_v54 }
 0x458   :  { %v4770_v57 = vmax.f32 %v4482_v51, %v4626_v52 }
 0x459   :  { %6462 = vmatmul.msk.bf16.gmra.mxu0 %vm2047_vm0, %v6750_v49  ;;  %6534 = vmatmul.msk.bf16.gmra.mxu1 %vm2047_vm0, %v6822_v50 }
 0x45a   :  { %v4918_v58 = vadd.f32 %v8507_v9, %v4770_v57  ;;  %6606 = vmatmul.msk.bf16.gmra.mxu2 %vm2047_vm0, %v6894_v55  ;;  %6678 = vmatmul.msk.bf16.gmra.mxu3 %vm2047_vm0, %v6966_v56 }
 0x45c   :  { %v5062_v59 = vmax.f32 %v4918_v58, 0.0 }
 0x45d   :  { %v3946_v61 = vpop.f32.mrf.mxu2  ;;  %v4306_v62 = vpop.f32.mrf.mxu3 }
 0x45e   :  { %5206 = vst [vmem:[%s8758_s3 + $0x3c8] sm:$0xff] %v5062_v59  ;;  %v4627_v63 = vmax.f32 %v3946_v61, %v4306_v62  ;;  %v3228_v0 = vpop.f32.mrf.mxu0  ;;  %v3588_v1 = vpop.f32.mrf.mxu1 }
 0x45f   :  { %v4484_v8 = vmax.f32 %v3228_v0, %v3588_v1 }
 0x460   :  { %v4771_v2 = vmax.f32 %v4483_v60, %v4627_v63 }
 0x462   :  { %v4919_v3 = vadd.f32 %v8507_v9, %v4771_v2 }
 0x464   :  { %v5063_v4 = vmax.f32 %v4919_v3, 0.0 }
 0x465   :  { %v3948_v5 = vpop.f32.mrf.mxu2  ;;  %v4308_v6 = vpop.f32.mrf.mxu3 }
 0x466   :  { %5207 = vst [vmem:[%s8758_s3 + $0x3d0] sm:$0xff] %v5063_v4  ;;  %v4628_v10 = vmax.f32 %v3948_v5, %v4308_v6  ;;  %v3231_v11 = vpop.f32.mrf.mxu0  ;;  %v3591_v44 = vpop.f32.mrf.mxu1 }
 0x467   :  { %v4485_v18 = vmax.f32 %v3231_v11, %v3591_v44 }
 0x468   :  { %v4772_v15 = vmax.f32 %v4484_v8, %v4628_v10 }
 0x469   :  { %6463 = vmatmul.msk.bf16.gmra.mxu0 %vm2047_vm0, %v6751_v14  ;;  %6535 = vmatmul.msk.bf16.gmra.mxu1 %vm2047_vm0, %v6823_v7 }
 0x46a   :  { %v4920_v16 = vadd.f32 %v8507_v9, %v4772_v15  ;;  %6607 = vmatmul.msk.bf16.gmra.mxu2 %vm2047_vm0, %v6895_v12  ;;  %6679 = vmatmul.msk.bf16.gmra.mxu3 %vm2047_vm0, %v6967_v13 }
 0x46c   :  { %v5064_v17 = vmax.f32 %v4920_v16, 0.0 }
 0x46d   :  { %v3951_v19 = vpop.f32.mrf.mxu2  ;;  %v4311_v20 = vpop.f32.mrf.mxu3 }
 0x46e   :  { %5208 = vst [vmem:[%s8758_s3 + $0x3d8] sm:$0xff] %v5064_v17  ;;  %v4629_v21 = vmax.f32 %v3951_v19, %v4311_v20  ;;  %v3233_v22 = vpop.f32.mrf.mxu0  ;;  %v3593_v23 = vpop.f32.mrf.mxu1 }
 0x46f   :  { %v4486_v31 = vmax.f32 %v3233_v22, %v3593_v23 }
 0x470   :  { %v4773_v24 = vmax.f32 %v4485_v18, %v4629_v21 }
 0x472   :  { %v4921_v25 = vadd.f32 %v8507_v9, %v4773_v24 }
 0x474   :  { %v5065_v26 = vmax.f32 %v4921_v25, 0.0 }
 0x475   :  { %v3953_v27 = vpop.f32.mrf.mxu2  ;;  %v4313_v28 = vpop.f32.mrf.mxu3 }
 0x476   :  { %5209 = vst [vmem:[%s8758_s3 + $0x3e0] sm:$0xff] %v5065_v26  ;;  %v4630_v32 = vmax.f32 %v3953_v27, %v4313_v28  ;;  %v3236_v33 = vpop.f32.mrf.mxu0  ;;  %v3596_v34 = vpop.f32.mrf.mxu1 }
 0x477   :  { %v4487_v40 = vmax.f32 %v3236_v33, %v3596_v34 }
 0x478   :  { %v4774_v37 = vmax.f32 %v4486_v31, %v4630_v32 }
 0x479   :  { %6464 = vmatmul.msk.bf16.gmra.mxu0 %vm2047_vm0, %v6752_v29  ;;  %6536 = vmatmul.msk.bf16.gmra.mxu1 %vm2047_vm0, %v6824_v30 }
 0x47a   :  { %v4922_v38 = vadd.f32 %v8507_v9, %v4774_v37  ;;  %6608 = vmatmul.msk.bf16.gmra.mxu2 %vm2047_vm0, %v6896_v35  ;;  %6680 = vmatmul.msk.bf16.gmra.mxu3 %vm2047_vm0, %v6968_v36 }
 0x47c   :  { %v5066_v39 = vmax.f32 %v4922_v38, 0.0 }
 0x47d   :  { %v3956_v41 = vpop.f32.mrf.mxu2  ;;  %v4316_v42 = vpop.f32.mrf.mxu3 }
 0x47e   :  { %5210 = vst [vmem:[%s8758_s3 + $0x3e8] sm:$0xff] %v5066_v39  ;;  %v4631_v43 = vmax.f32 %v3956_v41, %v4316_v42  ;;  %v3238_v45 = vpop.f32.mrf.mxu0  ;;  %v3598_v46 = vpop.f32.mrf.mxu1 }
 0x47f   :  { %v4488_v52 = vmax.f32 %v3238_v45, %v3598_v46 }
 0x480   :  { %v4775_v47 = vmax.f32 %v4487_v40, %v4631_v43 }
 0x482   :  { %v4923_v48 = vadd.f32 %v8507_v9, %v4775_v47 }
 0x484   :  { %v5067_v49 = vmax.f32 %v4923_v48, 0.0 }
 0x485   :  { %v3958_v50 = vpop.f32.mrf.mxu2  ;;  %v4318_v51 = vpop.f32.mrf.mxu3 }
 0x486   :  { %5211 = vst [vmem:[%s8758_s3 + $0x3f0] sm:$0xff] %v5067_v49  ;;  %v4632_v53 = vmax.f32 %v3958_v50, %v4318_v51  ;;  %v3241_v54 = vpop.f32.mrf.mxu0  ;;  %v3601_v55 = vpop.f32.mrf.mxu1 }
 0x487   :  { %v4489_v59 = vmax.f32 %v3241_v54, %v3601_v55 }
 0x488   :  { %v4776_v56 = vmax.f32 %v4488_v52, %v4632_v53 }
 0x48a   :  { %v4924_v57 = vadd.f32 %v8507_v9, %v4776_v56 }
 0x48c   :  { %v5068_v58 = vmax.f32 %v4924_v57, 0.0 }
 0x48d   :  { %v3961_v60 = vpop.f32.mrf.mxu2  ;;  %v4321_v61 = vpop.f32.mrf.mxu3 }
 0x48e   :  { %5212 = vst [vmem:[%s8758_s3 + $0x3f8] sm:$0xff] %v5068_v58  ;;  %v4633_v62 = vmax.f32 %v3961_v60, %v4321_v61  ;;  %v3243_v63 = vpop.f32.mrf.mxu0  ;;  %v3603_v0 = vpop.f32.mrf.mxu1 }
 0x48f   :  { %v4490_v6 = vmax.f32 %v3243_v63, %v3603_v0 }
 0x490   :  { %v4777_v1 = vmax.f32 %v4489_v59, %v4633_v62 }
 0x492   :  { %v4925_v2 = vadd.f32 %v8507_v9, %v4777_v1 }
 0x494   :  { %v5069_v3 = vmax.f32 %v4925_v2, 0.0 }
 0x495   :  { %v3963_v4 = vpop.f32.mrf.mxu2  ;;  %v4323_v5 = vpop.f32.mrf.mxu3 }
 0x496   :  { %5213 = vst [vmem:[%s8758_s3 + $0x400] sm:$0xff] %v5069_v3  ;;  %v4634_v14 = vmax.f32 %v3963_v4, %v4323_v5  ;;  %v3246_v7 = vpop.f32.mrf.mxu0  ;;  %v3606_v8 = vpop.f32.mrf.mxu1 }
 0x497   :  { %v4491_v12 = vmax.f32 %v3246_v7, %v3606_v8 }
 0x498   :  { %v4778_v10 = vmax.f32 %v4490_v6, %v4634_v14 }
 0x49a   :  { %v4926_v11 = vadd.f32 %v8507_v9, %v4778_v10 }
 0x49c   :  { %v5070_v44 = vmax.f32 %v4926_v11, 0.0 }
 0x49d   :  { %v3966_v13 = vpop.f32.mrf.mxu2  ;;  %v4326_v15 = vpop.f32.mrf.mxu3 }
 0x49e   :  { %5214 = vst [vmem:[%s8758_s3 + $0x408] sm:$0xff] %v5070_v44  ;;  %v4635_v16 = vmax.f32 %v3966_v13, %v4326_v15  ;;  %v3248_v17 = vpop.f32.mrf.mxu0  ;;  %v3608_v18 = vpop.f32.mrf.mxu1 }
 0x49f   :  { %v4492_v24 = vmax.f32 %v3248_v17, %v3608_v18 }
 0x4a0   :  { %v4779_v19 = vmax.f32 %v4491_v12, %v4635_v16 }
 0x4a2   :  { %v4927_v20 = vadd.f32 %v8507_v9, %v4779_v19 }
 0x4a4   :  { %v5071_v21 = vmax.f32 %v4927_v20, 0.0 }
 0x4a5   :  { %v3968_v22 = vpop.f32.mrf.mxu2  ;;  %v4328_v23 = vpop.f32.mrf.mxu3 }
 0x4a6   :  { %5215 = vst [vmem:[%s8758_s3 + $0x410] sm:$0xff] %v5071_v21  ;;  %v4636_v25 = vmax.f32 %v3968_v22, %v4328_v23  ;;  %v3251_v26 = vpop.f32.mrf.mxu0  ;;  %v3611_v27 = vpop.f32.mrf.mxu1 }
 0x4a7   :  { %v4493_v31 = vmax.f32 %v3251_v26, %v3611_v27 }
 0x4a8   :  { %v4780_v28 = vmax.f32 %v4492_v24, %v4636_v25 }
 0x4aa   :  { %v4928_v29 = vadd.f32 %v8507_v9, %v4780_v28 }
 0x4ac   :  { %v5072_v30 = vmax.f32 %v4928_v29, 0.0 }
 0x4ad   :  { %v3971_v32 = vpop.f32.mrf.mxu2  ;;  %v4331_v33 = vpop.f32.mrf.mxu3 }
 0x4ae   :  { %5216 = vst [vmem:[%s8758_s3 + $0x418] sm:$0xff] %v5072_v30  ;;  %v4637_v34 = vmax.f32 %v3971_v32, %v4331_v33  ;;  %v3253_v35 = vpop.f32.mrf.mxu0  ;;  %v3613_v36 = vpop.f32.mrf.mxu1 }
 0x4af   :  { %v4494_v42 = vmax.f32 %v3253_v35, %v3613_v36 }
 0x4b0   :  { %v4781_v37 = vmax.f32 %v4493_v31, %v4637_v34 }
 0x4b2   :  { %v4929_v38 = vadd.f32 %v8507_v9, %v4781_v37 }
 0x4b4   :  { %v5073_v39 = vmax.f32 %v4929_v38, 0.0 }
 0x4b5   :  { %v3973_v40 = vpop.f32.mrf.mxu2  ;;  %v4333_v41 = vpop.f32.mrf.mxu3 }
 0x4b6   :  { %5217 = vst [vmem:[%s8758_s3 + $0x420] sm:$0xff] %v5073_v39  ;;  %v4638_v43 = vmax.f32 %v3973_v40, %v4333_v41  ;;  %v3256_v45 = vpop.f32.mrf.mxu0  ;;  %v3616_v46 = vpop.f32.mrf.mxu1 }
 0x4b7   :  { %v4495_v50 = vmax.f32 %v3256_v45, %v3616_v46 }
 0x4b8   :  { %v4782_v47 = vmax.f32 %v4494_v42, %v4638_v43 }
 0x4ba   :  { %v4930_v48 = vadd.f32 %v8507_v9, %v4782_v47 }
 0x4bc   :  { %v5074_v49 = vmax.f32 %v4930_v48, 0.0 }
 0x4bd   :  { %v3976_v51 = vpop.f32.mrf.mxu2  ;;  %v4336_v52 = vpop.f32.mrf.mxu3 }
 0x4be   :  { %5218 = vst [vmem:[%s8758_s3 + $0x428] sm:$0xff] %v5074_v49  ;;  %v4639_v53 = vmax.f32 %v3976_v51, %v4336_v52  ;;  %v3258_v54 = vpop.f32.mrf.mxu0  ;;  %v3618_v55 = vpop.f32.mrf.mxu1 }
 0x4bf   :  { %v4496_v61 = vmax.f32 %v3258_v54, %v3618_v55 }
 0x4c0   :  { %v4783_v56 = vmax.f32 %v4495_v50, %v4639_v53 }
 0x4c2   :  { %v4931_v57 = vadd.f32 %v8507_v9, %v4783_v56 }
 0x4c4   :  { %v5075_v58 = vmax.f32 %v4931_v57, 0.0 }
 0x4c5   :  { %v3978_v59 = vpop.f32.mrf.mxu2  ;;  %v4338_v60 = vpop.f32.mrf.mxu3 }
 0x4c6   :  { %5219 = vst [vmem:[%s8758_s3 + $0x430] sm:$0xff] %v5075_v58  ;;  %v4640_v62 = vmax.f32 %v3978_v59, %v4338_v60  ;;  %v3261_v63 = vpop.f32.mrf.mxu0  ;;  %v3621_v0 = vpop.f32.mrf.mxu1 }
 0x4c7   :  { %v4497_v4 = vmax.f32 %v3261_v63, %v3621_v0 }
 0x4c8   :  { %v4784_v1 = vmax.f32 %v4496_v61, %v4640_v62 }
 0x4ca   :  { %v4932_v2 = vadd.f32 %v8507_v9, %v4784_v1 }
 0x4cc   :  { %v5076_v3 = vmax.f32 %v4932_v2, 0.0 }
 0x4cd   :  { %v3981_v5 = vpop.f32.mrf.mxu2  ;;  %v4341_v6 = vpop.f32.mrf.mxu3 }
 0x4ce   :  { %5220 = vst [vmem:[%s8758_s3 + $0x438] sm:$0xff] %v5076_v3  ;;  %v4641_v14 = vmax.f32 %v3981_v5, %v4341_v6  ;;  %v3263_v7 = vpop.f32.mrf.mxu0  ;;  %v3623_v8 = vpop.f32.mrf.mxu1 }
 0x4cf   :  { %v4498_v15 = vmax.f32 %v3263_v7, %v3623_v8 }
 0x4d0   :  { %v4785_v10 = vmax.f32 %v4497_v4, %v4641_v14 }
 0x4d2   :  { %v4933_v11 = vadd.f32 %v8507_v9, %v4785_v10 }
 0x4d4   :  { %v5077_v44 = vmax.f32 %v4933_v11, 0.0 }
 0x4d5   :  { %v3983_v12 = vpop.f32.mrf.mxu2  ;;  %v4343_v13 = vpop.f32.mrf.mxu3 }
 0x4d6   :  { %5221 = vst [vmem:[%s8758_s3 + $0x440] sm:$0xff] %v5077_v44  ;;  %v4642_v16 = vmax.f32 %v3983_v12, %v4343_v13  ;;  %v3266_v17 = vpop.f32.mrf.mxu0  ;;  %v3626_v18 = vpop.f32.mrf.mxu1 }
 0x4d7   :  { %v4499_v22 = vmax.f32 %v3266_v17, %v3626_v18 }
 0x4d8   :  { %v4786_v19 = vmax.f32 %v4498_v15, %v4642_v16 }
 0x4da   :  { %v4934_v20 = vadd.f32 %v8507_v9, %v4786_v19 }
 0x4dc   :  { %v5078_v21 = vmax.f32 %v4934_v20, 0.0 }
 0x4dd   :  { %v3986_v23 = vpop.f32.mrf.mxu2  ;;  %v4346_v24 = vpop.f32.mrf.mxu3 }
 0x4de   :  { %5222 = vst [vmem:[%s8758_s3 + $0x448] sm:$0xff] %v5078_v21  ;;  %v4643_v25 = vmax.f32 %v3986_v23, %v4346_v24  ;;  %v3268_v26 = vpop.f32.mrf.mxu0  ;;  %v3628_v27 = vpop.f32.mrf.mxu1 }
 0x4df   :  { %v4500_v33 = vmax.f32 %v3268_v26, %v3628_v27 }
 0x4e0   :  { %v4787_v28 = vmax.f32 %v4499_v22, %v4643_v25 }
 0x4e2   :  { %v4935_v29 = vadd.f32 %v8507_v9, %v4787_v28 }
 0x4e4   :  { %v5079_v30 = vmax.f32 %v4935_v29, 0.0 }
 0x4e5   :  { %v3988_v31 = vpop.f32.mrf.mxu2  ;;  %v4348_v32 = vpop.f32.mrf.mxu3 }
 0x4e6   :  { %5223 = vst [vmem:[%s8758_s3 + $0x450] sm:$0xff] %v5079_v30  ;;  %v4644_v34 = vmax.f32 %v3988_v31, %v4348_v32  ;;  %v3271_v35 = vpop.f32.mrf.mxu0  ;;  %v3631_v36 = vpop.f32.mrf.mxu1 }
 0x4e7   :  { %v4501_v40 = vmax.f32 %v3271_v35, %v3631_v36 }
 0x4e8   :  { %v4788_v37 = vmax.f32 %v4500_v33, %v4644_v34 }
 0x4ea   :  { %v4936_v38 = vadd.f32 %v8507_v9, %v4788_v37 }
 0x4ec   :  { %v5080_v39 = vmax.f32 %v4936_v38, 0.0 }
 0x4ed   :  { %v3991_v41 = vpop.f32.mrf.mxu2  ;;  %v4351_v42 = vpop.f32.mrf.mxu3 }
 0x4ee   :  { %5224 = vst [vmem:[%s8758_s3 + $0x458] sm:$0xff] %v5080_v39  ;;  %v4645_v43 = vmax.f32 %v3991_v41, %v4351_v42  ;;  %v3273_v45 = vpop.f32.mrf.mxu0  ;;  %v3633_v46 = vpop.f32.mrf.mxu1 }
 0x4ef   :  { %v4502_v52 = vmax.f32 %v3273_v45, %v3633_v46 }
 0x4f0   :  { %v4789_v47 = vmax.f32 %v4501_v40, %v4645_v43 }
 0x4f2   :  { %v4937_v48 = vadd.f32 %v8507_v9, %v4789_v47 }
 0x4f4   :  { %v5081_v49 = vmax.f32 %v4937_v48, 0.0 }
 0x4f5   :  { %v3993_v50 = vpop.f32.mrf.mxu2  ;;  %v4353_v51 = vpop.f32.mrf.mxu3 }
 0x4f6   :  { %5225 = vst [vmem:[%s8758_s3 + $0x460] sm:$0xff] %v5081_v49  ;;  %v4646_v53 = vmax.f32 %v3993_v50, %v4353_v51  ;;  %v3276_v55 = vpop.f32.mrf.mxu0  ;;  %v3636_v56 = vpop.f32.mrf.mxu1 }
 0x4f7   :  { %v4503_v59 = vmax.f32 %v3276_v55, %v3636_v56 }
 0x4f8   :  { %v4790_v54 = vmax.f32 %v4502_v52, %v4646_v53 }
 0x4fa   :  { %v4938_v57 = vadd.f32 %v8507_v9, %v4790_v54 }
 0x4fc   :  { %v5082_v58 = vmax.f32 %v4938_v57, 0.0 }
 0x4fd   :  { %v3996_v60 = vpop.f32.mrf.mxu2  ;;  %v4356_v61 = vpop.f32.mrf.mxu3 }
 0x4fe   :  { %5226 = vst [vmem:[%s8758_s3 + $0x468] sm:$0xff] %v5082_v58  ;;  %v4647_v62 = vmax.f32 %v3996_v60, %v4356_v61  ;;  %v3278_v1 = vpop.f32.mrf.mxu0  ;;  %v3638_v2 = vpop.f32.mrf.mxu1 }
 0x4ff   :  { %v4504_v6 = vmax.f32 %v3278_v1, %v3638_v2 }
 0x500   :  { %v4791_v63 = vmax.f32 %v4503_v59, %v4647_v62 }
 0x502   :  { %v4939_v0 = vadd.f32 %v8507_v9, %v4791_v63 }
 0x504   :  { %v5083_v3 = vmax.f32 %v4939_v0, 0.0 }
 0x505   :  { %v3998_v4 = vpop.f32.mrf.mxu2  ;;  %v4358_v5 = vpop.f32.mrf.mxu3 }
 0x506   :  { %5227 = vst [vmem:[%s8758_s3 + $0x470] sm:$0xff] %v5083_v3  ;;  %v4648_v14 = vmax.f32 %v3998_v4, %v4358_v5 }
 0x508   :  { %v4792_v7 = vmax.f32 %v4504_v6, %v4648_v14 }
 0x50a   :  { %v4940_v8 = vadd.f32 %v8507_v9, %v4792_v7 }
 0x50c   :  { %v5084_v10 = vmax.f32 %v4940_v8, 0.0 }
 0x50e   :  { %5228 = vst [vmem:[%s8758_s3 + $0x478] sm:$0xff] %v5084_v10 }

// kernel: net_forward.4
= control target key start
LH: loop header
LB: loop body
LE: loop exit
PB: predicated region body
PF: predicated region fallthrough
CT: control target
= control target key end

     0   :  { %s2002_s1 = inlined_call_operand.vmem [shape: bf16[256,128], index: 1, kind: input, shape index: {}]   ;;  %s2003_s0 = inlined_call_operand.vmem [shape: bf16[4,128,256], index: 0, kind: input, shape index: {}]   ;;  %s2004_s2 = inlined_call_operand.vmem [shape: f32[1,128], index: 2, kind: input, shape index: {}]   ;;  %s2005_s3 = inlined_call_operand.vmem [shape: f32[128,128], index: 3, kind: output, shape index: {}]  }
   0x1   :  { %v1359_v0 = vld [vmem:[%s2002_s1 + $0x38] sm:$0xff]  ;;  %v1358_v2 = vld [vmem:[%s2002_s1 + $0x30] sm:$0xff]  ;;  %v1357_v4 = vld [vmem:[%s2002_s1 + $0x28] sm:$0xff] }
   0x2   :  { %v1367_v1 = vld [vmem:[%s2002_s1 + $0x78] sm:$0xff]  ;;  %526 = vmatpush.bf16.msra.mxu0 %v1359_v0  ;;  %1368 = vmatpush.bf16.msra.mxu2 %v1359_v0  ;;  %v1366_v3 = vld [vmem:[%s2002_s1 + $0x70] sm:$0xff]  ;;  %v1365_v5 = vld [vmem:[%s2002_s1 + $0x68] sm:$0xff] }
   0x3   :  { %695 = vmatpush.bf16.msra.mxu1 %v1367_v1  ;;  %1376 = vmatpush.bf16.msra.mxu3 %v1367_v1  ;;  %v1356_v6 = vld [vmem:[%s2002_s1 + $0x20] sm:$0xff]  ;;  %v1355_v8 = vld [vmem:[%s2002_s1 + $0x18] sm:$0xff]  ;;  %v1354_v10 = vld [vmem:[%s2002_s1 + $0x10] sm:$0xff] }
   0x4   :  { %v1364_v7 = vld [vmem:[%s2002_s1 + $0x60] sm:$0xff]  ;;  %v1363_v9 = vld [vmem:[%s2002_s1 + $0x58] sm:$0xff]  ;;  %v1362_v11 = vld [vmem:[%s2002_s1 + $0x50] sm:$0xff] }
   0x5   :  { %v1353_v12 = vld [vmem:[%s2002_s1 + $0x8] sm:$0xff]  ;;  %v1352_v14 = vld [vmem:[%s2002_s1] sm:$0xff]  ;;  %v978_v28 = vld [vmem:[%s2003_s0 + $0x10] sm:$0xf] }
   0x6   :  { %527 = vmatpush.bf16.msra.mxu0 %v1358_v2  ;;  %1369 = vmatpush.bf16.msra.mxu2 %v1358_v2  ;;  %v1361_v13 = vld [vmem:[%s2002_s1 + $0x48] sm:$0xff]  ;;  %v1360_v15 = vld [vmem:[%s2002_s1 + $0x40] sm:$0xff]  ;;  %v1291_v29 = vld [vmem:[%s2003_s0 + $0x14] sm:$0xf0] }
   0x7   :  { %696 = vmatpush.bf16.msra.mxu1 %v1366_v3  ;;  %1377 = vmatpush.bf16.msra.mxu3 %v1366_v3  ;;  %v970_v16 = vld [vmem:[%s2003_s0] sm:$0xf]  ;;  %v1289_v17 = vld [vmem:[%s2003_s0 + $0x4] sm:$0xf0]  ;;  %v1288_v20 = vld [vmem:[%s2003_s0 + $0x4] sm:$0xf]  ;;  %v979_v36 = vor.u32 %v1291_v29, %v978_v28 }
   0x8   :  { %v1098_v18 = vld [vmem:[%s2003_s0 + $0x100] sm:$0xf]  ;;  %v1321_v19 = vld [vmem:[%s2003_s0 + $0x104] sm:$0xf0]  ;;  %v972_v21 = vld [vmem:[%s2003_s0 + $0x8] sm:$0xf0]  ;;  %v971_v24 = vor.u32 %v1289_v17, %v970_v16 }
   0x9   :  { %v1320_v22 = vld [vmem:[%s2003_s0 + $0x104] sm:$0xf]  ;;  %v1100_v23 = vld [vmem:[%s2003_s0 + $0x108] sm:$0xf0]  ;;  %v1099_v25 = vor.u32 %v1321_v19, %v1098_v18  ;;  %v975_v26 = vor.u32 %v1288_v20, %v972_v21  ;;  %v1106_v30 = vld [vmem:[%s2003_s0 + $0x110] sm:$0xf] }
   0xa   :  { %528 = vmatpush.bf16.msra.mxu0 %v1357_v4  ;;  %1370 = vmatpush.bf16.msra.mxu2 %v1357_v4  ;;  %v1103_v27 = vor.u32 %v1320_v22, %v1100_v23  ;;  %v1323_v31 = vld [vmem:[%s2003_s0 + $0x114] sm:$0xf0]  ;;  %v1290_v32 = vld [vmem:[%s2003_s0 + $0x14] sm:$0xf]  ;;  %v980_v33 = vld [vmem:[%s2003_s0 + $0x18] sm:$0xf0] }
   0xb   :  { %697 = vmatpush.bf16.msra.mxu1 %v1365_v5  ;;  %1378 = vmatpush.bf16.msra.mxu3 %v1365_v5  ;;  %v1322_v34 = vld [vmem:[%s2003_s0 + $0x114] sm:$0xf]  ;;  %v1108_v35 = vld [vmem:[%s2003_s0 + $0x118] sm:$0xf0]  ;;  %v1107_v37 = vor.u32 %v1323_v31, %v1106_v30  ;;  %v983_v38 = vor.u32 %v1290_v32, %v980_v33  ;;  %v986_v40 = vld [vmem:[%s2003_s0 + $0x20] sm:$0xf] }
   0xc   :  { %v1111_v39 = vor.u32 %v1322_v34, %v1108_v35  ;;  %v1293_v41 = vld [vmem:[%s2003_s0 + $0x24] sm:$0xf0]  ;;  %v1114_v42 = vld [vmem:[%s2003_s0 + $0x120] sm:$0xf]  ;;  %v1292_v44 = vld [vmem:[%s2003_s0 + $0x24] sm:$0xf] }
   0xd   :  { %v1325_v43 = vld [vmem:[%s2003_s0 + $0x124] sm:$0xf0]  ;;  %v988_v45 = vld [vmem:[%s2003_s0 + $0x28] sm:$0xf0]  ;;  %v1324_v46 = vld [vmem:[%s2003_s0 + $0x124] sm:$0xf]  ;;  %v987_v48 = vor.u32 %v1293_v41, %v986_v40 }
   0xe   :  { %529 = vmatpush.bf16.msra.mxu0 %v1356_v6  ;;  %1371 = vmatpush.bf16.msra.mxu2 %v1356_v6  ;;  %v1116_v47 = vld [vmem:[%s2003_s0 + $0x128] sm:$0xf0]  ;;  %v1115_v49 = vor.u32 %v1325_v43, %v1114_v42  ;;  %v991_v50 = vor.u32 %v1292_v44, %v988_v45  ;;  %v994_v52 = vld [vmem:[%s2003_s0 + $0x30] sm:$0xf]  ;;  %v1295_v53 = vld [vmem:[%s2003_s0 + $0x34] sm:$0xf0] }
   0xf   :  { %698 = vmatpush.bf16.msra.mxu1 %v1364_v7  ;;  %1379 = vmatpush.bf16.msra.mxu3 %v1364_v7  ;;  %v1119_v51 = vor.u32 %v1324_v46, %v1116_v47  ;;  %v1122_v54 = vld [vmem:[%s2003_s0 + $0x130] sm:$0xf]  ;;  %v1327_v55 = vld [vmem:[%s2003_s0 + $0x134] sm:$0xf0]  ;;  %v1294_v56 = vld [vmem:[%s2003_s0 + $0x34] sm:$0xf]  ;;  %v995_v60 = vor.u32 %v1295_v53, %v994_v52 }
  0x10   :  { %v996_v57 = vld [vmem:[%s2003_s0 + $0x38] sm:$0xf0]  ;;  %v1326_v58 = vld [vmem:[%s2003_s0 + $0x134] sm:$0xf]  ;;  %v1123_v61 = vor.u32 %v1327_v55, %v1122_v54  ;;  %v1002_v0 = vld [vmem:[%s2003_s0 + $0x40] sm:$0xf] }
  0x11   :  { %v1124_v59 = vld [vmem:[%s2003_s0 + $0x138] sm:$0xf0]  ;;  %v999_v62 = vor.u32 %v1294_v56, %v996_v57  ;;  %v1297_v1 = vld [vmem:[%s2003_s0 + $0x44] sm:$0xf0]  ;;  %v1130_v2 = vld [vmem:[%s2003_s0 + $0x140] sm:$0xf] }
  0x12   :  { %530 = vmatpush.bf16.msra.mxu0 %v1355_v8  ;;  %1372 = vmatpush.bf16.msra.mxu2 %v1355_v8  ;;  %v1127_v63 = vor.u32 %v1326_v58, %v1124_v59  ;;  %v1329_v3 = vld [vmem:[%s2003_s0 + $0x144] sm:$0xf0]  ;;  %v1296_v4 = vld [vmem:[%s2003_s0 + $0x44] sm:$0xf]  ;;  %v1004_v5 = vld [vmem:[%s2003_s0 + $0x48] sm:$0xf0]  ;;  %v1003_v8 = vor.u32 %v1297_v1, %v1002_v0 }
  0x13   :  { %699 = vmatpush.bf16.msra.mxu1 %v1363_v9  ;;  %1380 = vmatpush.bf16.msra.mxu3 %v1363_v9  ;;  %v1328_v6 = vld [vmem:[%s2003_s0 + $0x144] sm:$0xf]  ;;  %v1132_v7 = vld [vmem:[%s2003_s0 + $0x148] sm:$0xf0]  ;;  %v1131_v9 = vor.u32 %v1329_v3, %v1130_v2  ;;  %v1298_v16 = vld [vmem:[%s2003_s0 + $0x54] sm:$0xf] }
  0x14   :  { %v1012_v17 = vld [vmem:[%s2003_s0 + $0x58] sm:$0xf0]  ;;  %v1330_v18 = vld [vmem:[%s2003_s0 + $0x154] sm:$0xf]  ;;  %v1300_v28 = vld [vmem:[%s2003_s0 + $0x64] sm:$0xf] }
  0x15   :  { %v1140_v19 = vld [vmem:[%s2003_s0 + $0x158] sm:$0xf0]  ;;  %v1015_v22 = vor.u32 %v1298_v16, %v1012_v17  ;;  %v1020_v29 = vld [vmem:[%s2003_s0 + $0x68] sm:$0xf0]  ;;  %v1332_v30 = vld [vmem:[%s2003_s0 + $0x164] sm:$0xf] }
  0x16   :  { %531 = vmatpush.bf16.msra.mxu0 %v1354_v10  ;;  %1373 = vmatpush.bf16.msra.mxu2 %v1354_v10  ;;  %v1007_v10 = vor.u32 %v1296_v4, %v1004_v5  ;;  %v1143_v23 = vor.u32 %v1330_v18, %v1140_v19  ;;  %v1148_v31 = vld [vmem:[%s2003_s0 + $0x168] sm:$0xf0]  ;;  %v1023_v34 = vor.u32 %v1300_v28, %v1020_v29  ;;  %v1302_v40 = vld [vmem:[%s2003_s0 + $0x74] sm:$0xf]  ;;  %v1028_v41 = vld [vmem:[%s2003_s0 + $0x78] sm:$0xf0] }
  0x17   :  { %700 = vmatpush.bf16.msra.mxu1 %v1362_v11  ;;  %1381 = vmatpush.bf16.msra.mxu3 %v1362_v11  ;;  %v1135_v11 = vor.u32 %v1328_v6, %v1132_v7  ;;  %v1151_v35 = vor.u32 %v1332_v30, %v1148_v31  ;;  %v1334_v42 = vld [vmem:[%s2003_s0 + $0x174] sm:$0xf]  ;;  %v1156_v43 = vld [vmem:[%s2003_s0 + $0x178] sm:$0xf0]  ;;  %v1031_v46 = vor.u32 %v1302_v40, %v1028_v41  ;;  %v1304_v52 = vld [vmem:[%s2003_s0 + $0x84] sm:$0xf] }
  0x18   :  { %v1159_v47 = vor.u32 %v1334_v42, %v1156_v43  ;;  %v1036_v53 = vld [vmem:[%s2003_s0 + $0x88] sm:$0xf0]  ;;  %v1336_v54 = vld [vmem:[%s2003_s0 + $0x184] sm:$0xf]  ;;  %v1042_v5 = vld [vmem:[%s2003_s0 + $0x90] sm:$0xf] }
  0x19   :  { %v1164_v55 = vld [vmem:[%s2003_s0 + $0x188] sm:$0xf0]  ;;  %v1039_v59 = vor.u32 %v1304_v52, %v1036_v53  ;;  %v1307_v6 = vld [vmem:[%s2003_s0 + $0x94] sm:$0xf0]  ;;  %v1170_v7 = vld [vmem:[%s2003_s0 + $0x190] sm:$0xf] }
  0x1a   :  { %532 = vmatpush.bf16.msra.mxu0 %v1353_v12  ;;  %1374 = vmatpush.bf16.msra.mxu2 %v1353_v12  ;;  %v1010_v12 = vld [vmem:[%s2003_s0 + $0x50] sm:$0xf]  ;;  %v1050_v29 = vld [vmem:[%s2003_s0 + $0xa0] sm:$0xf]  ;;  %v1309_v30 = vld [vmem:[%s2003_s0 + $0xa4] sm:$0xf0] }
  0x1b   :  { %701 = vmatpush.bf16.msra.mxu1 %v1361_v13  ;;  %1382 = vmatpush.bf16.msra.mxu3 %v1361_v13  ;;  %v1299_v13 = vld [vmem:[%s2003_s0 + $0x54] sm:$0xf0]  ;;  %v1178_v31 = vld [vmem:[%s2003_s0 + $0x1a0] sm:$0xf]  ;;  %v1058_v53 = vld [vmem:[%s2003_s0 + $0xb0] sm:$0xf] }
  0x1c   :  { %v1011_v20 = vor.u32 %v1299_v13, %v1010_v12  ;;  %v1172_v12 = vld [vmem:[%s2003_s0 + $0x198] sm:$0xf0] }
  0x1e   :  { %533 = vmatpush.bf16.msra.mxu0 %v1352_v14  ;;  %1375 = vmatpush.bf16.msra.mxu2 %v1352_v14  ;;  %v1138_v14 = vld [vmem:[%s2003_s0 + $0x150] sm:$0xf] }
  0x1f   :  { %702 = vmatpush.bf16.msra.mxu1 %v1360_v15  ;;  %1383 = vmatpush.bf16.msra.mxu3 %v1360_v15  ;;  %v1331_v15 = vld [vmem:[%s2003_s0 + $0x154] sm:$0xf0] }
  0x20   :  { %v1139_v21 = vor.u32 %v1331_v15, %v1138_v14  ;;  %v1043_v15 = vor.u32 %v1307_v6, %v1042_v5 }
  0x21   :  { %534 = vmatmul.bf16.vlgmr.msra.gmra.mxu0 %v971_v24  ;;  %614 = vmatmul.bf16.vlgmr.msra.gmra.mxu2 %v1099_v25  ;;  %v1018_v24 = vld [vmem:[%s2003_s0 + $0x60] sm:$0xf]  ;;  %v1301_v25 = vld [vmem:[%s2003_s0 + $0x64] sm:$0xf0] }
  0x22   :  { %703 = vmatmul.bf16.vlgmr.msra.gmra.mxu1 %v975_v26  ;;  %783 = vmatmul.bf16.vlgmr.msra.gmra.mxu3 %v1103_v27  ;;  %v1146_v26 = vld [vmem:[%s2003_s0 + $0x160] sm:$0xf]  ;;  %v1333_v27 = vld [vmem:[%s2003_s0 + $0x164] sm:$0xf0]  ;;  %v1019_v32 = vor.u32 %v1301_v25, %v1018_v24 }
  0x23   :  { %v1147_v33 = vor.u32 %v1333_v27, %v1146_v26 }
  0x31   :  { %539 = vmatmul.bf16.gmra.mxu0 %v979_v36  ;;  %619 = vmatmul.bf16.gmra.mxu2 %v1107_v37  ;;  %v1026_v36 = vld [vmem:[%s2003_s0 + $0x70] sm:$0xf]  ;;  %v1303_v37 = vld [vmem:[%s2003_s0 + $0x74] sm:$0xf0] }
  0x32   :  { %708 = vmatmul.bf16.gmra.mxu1 %v983_v38  ;;  %788 = vmatmul.bf16.gmra.mxu3 %v1111_v39  ;;  %v1154_v38 = vld [vmem:[%s2003_s0 + $0x170] sm:$0xf]  ;;  %v1335_v39 = vld [vmem:[%s2003_s0 + $0x174] sm:$0xf0]  ;;  %v1027_v44 = vor.u32 %v1303_v37, %v1026_v36  ;;  %v1180_v36 = vld [vmem:[%s2003_s0 + $0x1a8] sm:$0xf0] }
  0x33   :  { %v1155_v45 = vor.u32 %v1335_v39, %v1154_v38  ;;  %v1051_v39 = vor.u32 %v1309_v30, %v1050_v29 }
  0x41   :  { %544 = vmatmul.bf16.gmra.mxu0 %v987_v48  ;;  %624 = vmatmul.bf16.gmra.mxu2 %v1115_v49  ;;  %v1034_v48 = vld [vmem:[%s2003_s0 + $0x80] sm:$0xf]  ;;  %v1305_v49 = vld [vmem:[%s2003_s0 + $0x84] sm:$0xf0] }
  0x42   :  { %713 = vmatmul.bf16.gmra.mxu1 %v991_v50  ;;  %793 = vmatmul.bf16.gmra.mxu3 %v1119_v51  ;;  %v1162_v50 = vld [vmem:[%s2003_s0 + $0x180] sm:$0xf]  ;;  %v1337_v51 = vld [vmem:[%s2003_s0 + $0x184] sm:$0xf0]  ;;  %v1035_v56 = vor.u32 %v1305_v49, %v1034_v48 }
  0x43   :  { %v1163_v57 = vor.u32 %v1337_v51, %v1162_v50 }
  0x51   :  { %549 = vmatmul.bf16.gmra.mxu0 %v995_v60  ;;  %629 = vmatmul.bf16.gmra.mxu2 %v1123_v61  ;;  %v1167_v60 = vor.u32 %v1336_v54, %v1164_v55  ;;  %v1311_v54 = vld [vmem:[%s2003_s0 + $0xb4] sm:$0xf0]  ;;  %v1186_v55 = vld [vmem:[%s2003_s0 + $0x1b0] sm:$0xf] }
  0x52   :  { %718 = vmatmul.bf16.gmra.mxu1 %v999_v62  ;;  %798 = vmatmul.bf16.gmra.mxu3 %v1127_v63 }
  0x61   :  { %554 = vmatmul.bf16.gmra.mxu0 %v1003_v8  ;;  %634 = vmatmul.bf16.gmra.mxu2 %v1131_v9  ;;  %v1339_v8 = vld [vmem:[%s2003_s0 + $0x194] sm:$0xf0]  ;;  %v1306_v9 = vld [vmem:[%s2003_s0 + $0x94] sm:$0xf] }
  0x62   :  { %723 = vmatmul.bf16.gmra.mxu1 %v1007_v10  ;;  %803 = vmatmul.bf16.gmra.mxu3 %v1135_v11  ;;  %v1044_v10 = vld [vmem:[%s2003_s0 + $0x98] sm:$0xf0]  ;;  %v1338_v11 = vld [vmem:[%s2003_s0 + $0x194] sm:$0xf]  ;;  %v1171_v16 = vor.u32 %v1339_v8, %v1170_v7 }
  0x63   :  { %v1047_v19 = vor.u32 %v1306_v9, %v1044_v10 }
  0x71   :  { %559 = vmatmul.bf16.gmra.mxu0 %v1011_v20  ;;  %639 = vmatmul.bf16.gmra.mxu2 %v1139_v21  ;;  %v1175_v20 = vor.u32 %v1338_v11, %v1172_v12 }
  0x72   :  { %728 = vmatmul.bf16.gmra.mxu1 %v1015_v22  ;;  %808 = vmatmul.bf16.gmra.mxu3 %v1143_v23 }
  0x81   :  { %564 = vmatmul.bf16.gmra.mxu0 %v1019_v32  ;;  %644 = vmatmul.bf16.gmra.mxu2 %v1147_v33  ;;  %v1341_v32 = vld [vmem:[%s2003_s0 + $0x1a4] sm:$0xf0]  ;;  %v1308_v33 = vld [vmem:[%s2003_s0 + $0xa4] sm:$0xf] }
  0x82   :  { %733 = vmatmul.bf16.gmra.mxu1 %v1023_v34  ;;  %813 = vmatmul.bf16.gmra.mxu3 %v1151_v35  ;;  %v1052_v34 = vld [vmem:[%s2003_s0 + $0xa8] sm:$0xf0]  ;;  %v1340_v35 = vld [vmem:[%s2003_s0 + $0x1a4] sm:$0xf]  ;;  %v1179_v40 = vor.u32 %v1341_v32, %v1178_v31 }
  0x83   :  { %v1055_v43 = vor.u32 %v1308_v33, %v1052_v34 }
  0x91   :  { %569 = vmatmul.bf16.gmra.mxu0 %v1027_v44  ;;  %649 = vmatmul.bf16.gmra.mxu2 %v1155_v45  ;;  %v1183_v44 = vor.u32 %v1340_v35, %v1180_v36 }
  0x92   :  { %738 = vmatmul.bf16.gmra.mxu1 %v1031_v46  ;;  %818 = vmatmul.bf16.gmra.mxu3 %v1159_v47 }
  0x9e   :  { %v535_v58 = vpop.f32.mrf.mxu0 }
  0x9f   :  { %v704_v61 = vpop.f32.mrf.mxu1 }
  0xa0   :  { %v1669_v62 = vadd.f32 %v704_v61, %v535_v58  ;;  %v1060_v58 = vld [vmem:[%s2003_s0 + $0xb8] sm:$0xf0] }
  0xa1   :  { %574 = vmatmul.bf16.gmra.mxu0 %v1035_v56  ;;  %654 = vmatmul.bf16.gmra.mxu2 %v1163_v57  ;;  %v1343_v56 = vld [vmem:[%s2003_s0 + $0x1b4] sm:$0xf0]  ;;  %v1310_v57 = vld [vmem:[%s2003_s0 + $0xb4] sm:$0xf] }
  0xa2   :  { %743 = vmatmul.bf16.gmra.mxu1 %v1039_v59  ;;  %823 = vmatmul.bf16.gmra.mxu3 %v1167_v60  ;;  %v1342_v59 = vld [vmem:[%s2003_s0 + $0x1b4] sm:$0xf]  ;;  %v1188_v60 = vld [vmem:[%s2003_s0 + $0x1b8] sm:$0xf0]  ;;  %v1063_v6 = vor.u32 %v1310_v57, %v1060_v58 }
  0xa3   :  { %v1191_v7 = vor.u32 %v1342_v59, %v1188_v60 }
  0xa4   :  { %v615_v63 = vpop.f32.mrf.mxu2 }
  0xa5   :  { %v784_v0 = vpop.f32.mrf.mxu3 }
  0xa6   :  { %v1671_v1 = vadd.f32 %v784_v0, %v615_v63  ;;  %v537_v2 = vpop.f32.mrf.mxu0  ;;  %v1059_v0 = vor.u32 %v1311_v54, %v1058_v53  ;;  %v1076_v53 = vld [vmem:[%s2003_s0 + $0xd8] sm:$0xf0]  ;;  %v1346_v54 = vld [vmem:[%s2003_s0 + $0x1d4] sm:$0xf] }
  0xa7   :  { %v706_v3 = vpop.f32.mrf.mxu1 }
  0xa8   :  { %v1673_v4 = vadd.f32 %v706_v3, %v537_v2  ;;  %v1187_v2 = vor.u32 %v1343_v56, %v1186_v55  ;;  %v1204_v55 = vld [vmem:[%s2003_s0 + $0x1d8] sm:$0xf0] }
  0xac   :  { %v617_v13 = vpop.f32.mrf.mxu2 }
  0xad   :  { %v786_v14 = vpop.f32.mrf.mxu3 }
  0xae   :  { %v1699_v17 = vadd.f32 %v786_v14, %v617_v13  ;;  %v540_v18 = vpop.f32.mrf.mxu0 }
  0xaf   :  { %v709_v21 = vpop.f32.mrf.mxu1 }
  0xb0   :  { %v1701_v22 = vadd.f32 %v709_v21, %v540_v18  ;;  %v1313_v18 = vld [vmem:[%s2003_s0 + $0xc4] sm:$0xf0]  ;;  %v1312_v21 = vld [vmem:[%s2003_s0 + $0xc4] sm:$0xf] }
  0xb1   :  { %579 = vmatmul.bf16.gmra.mxu0 %v1043_v15  ;;  %659 = vmatmul.bf16.gmra.mxu2 %v1171_v16  ;;  %v1066_v16 = vld [vmem:[%s2003_s0 + $0xc0] sm:$0xf] }
  0xb2   :  { %748 = vmatmul.bf16.gmra.mxu1 %v1047_v19  ;;  %828 = vmatmul.bf16.gmra.mxu3 %v1175_v20  ;;  %v1194_v19 = vld [vmem:[%s2003_s0 + $0x1c0] sm:$0xf]  ;;  %v1345_v20 = vld [vmem:[%s2003_s0 + $0x1c4] sm:$0xf0]  ;;  %v1067_v30 = vor.u32 %v1313_v18, %v1066_v16 }
  0xb3   :  { %v1195_v31 = vor.u32 %v1345_v20, %v1194_v19  ;;  %v1317_v16 = vld [vmem:[%s2003_s0 + $0xe4] sm:$0xf0]  ;;  %v1210_v18 = vld [vmem:[%s2003_s0 + $0x1e0] sm:$0xf]  ;;  %v1316_v20 = vld [vmem:[%s2003_s0 + $0xe4] sm:$0xf] }
  0xb4   :  { %v620_v23 = vpop.f32.mrf.mxu2  ;;  %v1349_v19 = vld [vmem:[%s2003_s0 + $0x1e4] sm:$0xf0] }
  0xb5   :  { %v789_v24 = vpop.f32.mrf.mxu3 }
  0xb6   :  { %v1703_v25 = vadd.f32 %v789_v24, %v620_v23  ;;  %v542_v26 = vpop.f32.mrf.mxu0  ;;  %v1068_v23 = vld [vmem:[%s2003_s0 + $0xc8] sm:$0xf0]  ;;  %v1344_v24 = vld [vmem:[%s2003_s0 + $0x1c4] sm:$0xf] }
  0xb7   :  { %v711_v27 = vpop.f32.mrf.mxu1  ;;  %v1071_v34 = vor.u32 %v1312_v21, %v1068_v23  ;;  %v1084_v21 = vld [vmem:[%s2003_s0 + $0xe8] sm:$0xf0]  ;;  %v1348_v23 = vld [vmem:[%s2003_s0 + $0x1e4] sm:$0xf] }
  0xb8   :  { %v1705_v28 = vadd.f32 %v711_v27, %v542_v26  ;;  %v1196_v26 = vld [vmem:[%s2003_s0 + $0x1c8] sm:$0xf0] }
  0xb9   :  { %v1199_v35 = vor.u32 %v1344_v24, %v1196_v26  ;;  %v1212_v24 = vld [vmem:[%s2003_s0 + $0x1e8] sm:$0xf0] }
  0xbc   :  { %v622_v37 = vpop.f32.mrf.mxu2 }
  0xbd   :  { %v791_v38 = vpop.f32.mrf.mxu3 }
  0xbe   :  { %v1731_v41 = vadd.f32 %v791_v38, %v622_v37  ;;  %v545_v42 = vpop.f32.mrf.mxu0 }
  0xbf   :  { %v714_v45 = vpop.f32.mrf.mxu1 }
  0xc0   :  { %v1733_v46 = vadd.f32 %v714_v45, %v545_v42  ;;  %v1074_v45 = vld [vmem:[%s2003_s0 + $0xd0] sm:$0xf] }
  0xc1   :  { %584 = vmatmul.bf16.gmra.mxu0 %v1051_v39  ;;  %664 = vmatmul.bf16.gmra.mxu2 %v1179_v40 }
  0xc2   :  { %753 = vmatmul.bf16.gmra.mxu1 %v1055_v43  ;;  %833 = vmatmul.bf16.gmra.mxu3 %v1183_v44 }
  0xc4   :  { %v625_v47 = vpop.f32.mrf.mxu2 }
  0xc5   :  { %v794_v48 = vpop.f32.mrf.mxu3 }
  0xc6   :  { %v1735_v49 = vadd.f32 %v794_v48, %v625_v47  ;;  %v547_v50 = vpop.f32.mrf.mxu0  ;;  %v1315_v47 = vld [vmem:[%s2003_s0 + $0xd4] sm:$0xf0]  ;;  %v1202_v48 = vld [vmem:[%s2003_s0 + $0x1d0] sm:$0xf] }
  0xc7   :  { %v716_v51 = vpop.f32.mrf.mxu1  ;;  %v1075_v58 = vor.u32 %v1315_v47, %v1074_v45 }
  0xc8   :  { %v1737_v52 = vadd.f32 %v716_v51, %v547_v50  ;;  %v1347_v50 = vld [vmem:[%s2003_s0 + $0x1d4] sm:$0xf0]  ;;  %v1314_v51 = vld [vmem:[%s2003_s0 + $0xd4] sm:$0xf] }
  0xc9   :  { %v1203_v59 = vor.u32 %v1347_v50, %v1202_v48  ;;  %v1090_v50 = vld [vmem:[%s2003_s0 + $0xf0] sm:$0xf] }
  0xcc   :  { %v627_v61 = vpop.f32.mrf.mxu2 }
  0xcd   :  { %v796_v63 = vpop.f32.mrf.mxu3 }
  0xce   :  { %v1763_v3 = vadd.f32 %v796_v63, %v627_v61  ;;  %v550_v5 = vpop.f32.mrf.mxu0  ;;  %v1079_v63 = vor.u32 %v1314_v51, %v1076_v53  ;;  %v1319_v51 = vld [vmem:[%s2003_s0 + $0xf4] sm:$0xf0]  ;;  %v1218_v53 = vld [vmem:[%s2003_s0 + $0x1f0] sm:$0xf] }
  0xcf   :  { %v719_v8 = vpop.f32.mrf.mxu1 }
  0xd0   :  { %v1765_v9 = vadd.f32 %v719_v8, %v550_v5 }
  0xd1   :  { %589 = vmatmul.bf16.gmra.mxu0 %v1059_v0  ;;  %669 = vmatmul.bf16.gmra.mxu2 %v1187_v2  ;;  %v1207_v0 = vor.u32 %v1346_v54, %v1204_v55  ;;  %v1351_v54 = vld [vmem:[%s2003_s0 + $0x1f4] sm:$0xf0]  ;;  %v1318_v55 = vld [vmem:[%s2003_s0 + $0xf4] sm:$0xf] }
  0xd2   :  { %758 = vmatmul.bf16.gmra.mxu1 %v1063_v6  ;;  %838 = vmatmul.bf16.gmra.mxu3 %v1191_v7 }
  0xd4   :  { %v630_v10 = vpop.f32.mrf.mxu2 }
  0xd5   :  { %v799_v11 = vpop.f32.mrf.mxu3 }
  0xd6   :  { %v1767_v12 = vadd.f32 %v799_v11, %v630_v10  ;;  %v552_v13 = vpop.f32.mrf.mxu0 }
  0xd7   :  { %v721_v14 = vpop.f32.mrf.mxu1 }
  0xd8   :  { %v1769_v15 = vadd.f32 %v721_v14, %v552_v13  ;;  %v1082_v14 = vld [vmem:[%s2003_s0 + $0xe0] sm:$0xf] }
  0xdc   :  { %v632_v27 = vpop.f32.mrf.mxu2 }
  0xdd   :  { %v801_v29 = vpop.f32.mrf.mxu3 }
  0xde   :  { %v1795_v32 = vadd.f32 %v801_v29, %v632_v27  ;;  %v555_v33 = vpop.f32.mrf.mxu0  ;;  %v1083_v29 = vor.u32 %v1317_v16, %v1082_v14 }
  0xdf   :  { %v724_v36 = vpop.f32.mrf.mxu1 }
  0xe0   :  { %v1797_v37 = vadd.f32 %v724_v36, %v555_v33 }
  0xe1   :  { %594 = vmatmul.bf16.gmra.mxu0 %v1067_v30  ;;  %674 = vmatmul.bf16.gmra.mxu2 %v1195_v31  ;;  %v1211_v30 = vor.u32 %v1349_v19, %v1210_v18 }
  0xe2   :  { %763 = vmatmul.bf16.gmra.mxu1 %v1071_v34  ;;  %843 = vmatmul.bf16.gmra.mxu3 %v1199_v35  ;;  %v1087_v34 = vor.u32 %v1316_v20, %v1084_v21  ;;  %v1215_v35 = vor.u32 %v1348_v23, %v1212_v24 }
  0xe4   :  { %v635_v38 = vpop.f32.mrf.mxu2 }
  0xe5   :  { %v804_v39 = vpop.f32.mrf.mxu3 }
  0xe6   :  { %v1799_v40 = vadd.f32 %v804_v39, %v635_v38  ;;  %v557_v42 = vpop.f32.mrf.mxu0 }
  0xe7   :  { %v726_v43 = vpop.f32.mrf.mxu1 }
  0xe8   :  { %v1801_v44 = vadd.f32 %v726_v43, %v557_v42 }
  0xec   :  { %v637_v56 = vpop.f32.mrf.mxu2 }
  0xed   :  { %v806_v57 = vpop.f32.mrf.mxu3 }
  0xee   :  { %v1827_v60 = vadd.f32 %v806_v57, %v637_v56  ;;  %v560_v61 = vpop.f32.mrf.mxu0  ;;  %v1092_v56 = vld [vmem:[%s2003_s0 + $0xf8] sm:$0xf0]  ;;  %v1350_v57 = vld [vmem:[%s2003_s0 + $0x1f4] sm:$0xf] }
  0xef   :  { %v729_v2 = vpop.f32.mrf.mxu1 }
  0xf0   :  { %v1829_v5 = vadd.f32 %v729_v2, %v560_v61 }
  0xf1   :  { %599 = vmatmul.bf16.gmra.mxu0 %v1075_v58  ;;  %679 = vmatmul.bf16.gmra.mxu2 %v1203_v59  ;;  %v1220_v58 = vld [vmem:[%s2003_s0 + $0x1f8] sm:$0xf0] }
  0xf2   :  { %768 = vmatmul.bf16.gmra.mxu1 %v1079_v63  ;;  %848 = vmatmul.bf16.gmra.mxu3 %v1207_v0  ;;  %v1091_v63 = vor.u32 %v1319_v51, %v1090_v50  ;;  %v1219_v0 = vor.u32 %v1351_v54, %v1218_v53  ;;  %v1906_v50 = vld [vmem:[%s2004_s2] ss:$0 sm:$0xff] }
  0xf4   :  { %v640_v6 = vpop.f32.mrf.mxu2 }
  0xf5   :  { %v809_v7 = vpop.f32.mrf.mxu3 }
  0xf6   :  { %v1831_v8 = vadd.f32 %v809_v7, %v640_v6  ;;  %v562_v10 = vpop.f32.mrf.mxu0  ;;  %v1095_v7 = vor.u32 %v1318_v55, %v1092_v56 }
  0xf7   :  { %v731_v11 = vpop.f32.mrf.mxu1 }
  0xf8   :  { %v1833_v13 = vadd.f32 %v731_v11, %v562_v10  ;;  %v1223_v10 = vor.u32 %v1350_v57, %v1220_v58 }
  0xfc   :  { %v642_v26 = vpop.f32.mrf.mxu2 }
  0xfd   :  { %v811_v27 = vpop.f32.mrf.mxu3 }
  0xfe   :  { %v1859_v31 = vadd.f32 %v811_v27, %v642_v26  ;;  %v565_v33 = vpop.f32.mrf.mxu0 }
  0xff   :  { %v734_v36 = vpop.f32.mrf.mxu1 }
 0x100   :  { %v1861_v38 = vadd.f32 %v734_v36, %v565_v33 }
 0x101   :  { %604 = vmatmul.bf16.gmra.mxu0 %v1083_v29  ;;  %684 = vmatmul.bf16.gmra.mxu2 %v1211_v30 }
 0x102   :  { %773 = vmatmul.bf16.gmra.mxu1 %v1087_v34  ;;  %853 = vmatmul.bf16.gmra.mxu3 %v1215_v35 }
 0x104   :  { %v645_v39 = vpop.f32.mrf.mxu2 }
 0x105   :  { %v814_v42 = vpop.f32.mrf.mxu3 }
 0x106   :  { %v1863_v43 = vadd.f32 %v814_v42, %v645_v39  ;;  %v567_v45 = vpop.f32.mrf.mxu0 }
 0x107   :  { %v736_v47 = vpop.f32.mrf.mxu1 }
 0x108   :  { %v1865_v48 = vadd.f32 %v736_v47, %v567_v45 }
 0x10c   :  { %v647_v59 = vpop.f32.mrf.mxu2 }
 0x10d   :  { %v816_v61 = vpop.f32.mrf.mxu3 }
 0x10e   :  { %v1891_v2 = vadd.f32 %v816_v61, %v647_v59  ;;  %v570_v6 = vpop.f32.mrf.mxu0 }
 0x10f   :  { %v739_v11 = vpop.f32.mrf.mxu1 }
 0x110   :  { %v1893_v14 = vadd.f32 %v739_v11, %v570_v6 }
 0x111   :  { %609 = vmatmul.bf16.gmra.mxu0 %v1091_v63  ;;  %689 = vmatmul.bf16.gmra.mxu2 %v1219_v0 }
 0x112   :  { %778 = vmatmul.bf16.gmra.mxu1 %v1095_v7  ;;  %858 = vmatmul.bf16.gmra.mxu3 %v1223_v10 }
 0x114   :  { %v650_v16 = vpop.f32.mrf.mxu2 }
 0x115   :  { %v819_v18 = vpop.f32.mrf.mxu3 }
 0x116   :  { %v1895_v19 = vadd.f32 %v819_v18, %v650_v16  ;;  %v572_v20 = vpop.f32.mrf.mxu0 }
 0x117   :  { %v741_v21 = vpop.f32.mrf.mxu1 }
 0x118   :  { %v1897_v23 = vadd.f32 %v741_v21, %v572_v20 }
 0x11c   :  { %v652_v24 = vpop.f32.mrf.mxu2 }
 0x11d   :  { %v821_v26 = vpop.f32.mrf.mxu3 }
 0x11e   :  { %v1899_v27 = vadd.f32 %v821_v26, %v652_v24  ;;  %v575_v29 = vpop.f32.mrf.mxu0 }
 0x11f   :  { %v744_v30 = vpop.f32.mrf.mxu1 }
 0x120   :  { %v745_v33 = vadd.f32 %v744_v30, %v575_v29 }
 0x122   :  { %v864_v45 = vmax.f32 %v1669_v62, %v745_v33 }
 0x124   :  { %v655_v34 = vpop.f32.mrf.mxu2 }
 0x125   :  { %v824_v35 = vpop.f32.mrf.mxu3 }
 0x126   :  { %v825_v36 = vadd.f32 %v824_v35, %v655_v34  ;;  %v577_v39 = vpop.f32.mrf.mxu0 }
 0x127   :  { %v746_v42 = vpop.f32.mrf.mxu1 }
 0x128   :  { %v880_v47 = vmax.f32 %v1671_v1, %v825_v36  ;;  %v747_v54 = vadd.f32 %v746_v42, %v577_v39 }
 0x12a   :  { %v896_v51 = vmax.f32 %v864_v45, %v880_v47  ;;  %v865_v62 = vmax.f32 %v1673_v4, %v747_v54 }
 0x12c   :  { %v916_v53 = vadd.f32 %v1906_v50, %v896_v51  ;;  %v657_v55 = vpop.f32.mrf.mxu2 }
 0x12d   :  { %v826_v56 = vpop.f32.mrf.mxu3 }
 0x12e   :  { %v932_v57 = vmax.f32 %v916_v53, 0.0  ;;  %v827_v58 = vadd.f32 %v826_v56, %v657_v55  ;;  %v580_v59 = vpop.f32.mrf.mxu0 }
 0x12f   :  { %v749_v61 = vpop.f32.mrf.mxu1 }
 0x130   :  { %948 = vst [vmem:[%s2005_s3] sm:$0xff] %v932_v57  ;;  %v881_v1 = vmax.f32 %v1699_v17, %v827_v58  ;;  %v750_v6 = vadd.f32 %v749_v61, %v580_v59 }
 0x132   :  { %v897_v63 = vmax.f32 %v865_v62, %v881_v1  ;;  %v866_v21 = vmax.f32 %v1701_v22, %v750_v6 }
 0x134   :  { %v917_v0 = vadd.f32 %v1906_v50, %v897_v63  ;;  %v660_v7 = vpop.f32.mrf.mxu2 }
 0x135   :  { %v829_v10 = vpop.f32.mrf.mxu3 }
 0x136   :  { %v933_v11 = vmax.f32 %v917_v0, 0.0  ;;  %v830_v16 = vadd.f32 %v829_v10, %v660_v7  ;;  %v582_v18 = vpop.f32.mrf.mxu0 }
 0x137   :  { %v751_v20 = vpop.f32.mrf.mxu1 }
 0x138   :  { %949 = vst [vmem:[%s2005_s3 + $0x8] sm:$0xff] %v933_v11  ;;  %v882_v4 = vmax.f32 %v1703_v25, %v830_v16  ;;  %v752_v26 = vadd.f32 %v751_v20, %v582_v18 }
 0x13a   :  { %v898_v24 = vmax.f32 %v866_v21, %v882_v4  ;;  %v867_v39 = vmax.f32 %v1705_v28, %v752_v26 }
 0x13c   :  { %v918_v17 = vadd.f32 %v1906_v50, %v898_v24  ;;  %v662_v29 = vpop.f32.mrf.mxu2 }
 0x13d   :  { %v831_v30 = vpop.f32.mrf.mxu3 }
 0x13e   :  { %v934_v33 = vmax.f32 %v918_v17, 0.0  ;;  %v832_v34 = vadd.f32 %v831_v30, %v662_v29  ;;  %v585_v35 = vpop.f32.mrf.mxu0 }
 0x13f   :  { %v754_v36 = vpop.f32.mrf.mxu1 }
 0x140   :  { %950 = vst [vmem:[%s2005_s3 + $0x10] sm:$0xff] %v934_v33  ;;  %v883_v22 = vmax.f32 %v1731_v41, %v832_v34  ;;  %v755_v45 = vadd.f32 %v754_v36, %v585_v35 }
 0x142   :  { %v899_v42 = vmax.f32 %v867_v39, %v883_v22  ;;  %v868_v57 = vmax.f32 %v1733_v46, %v755_v45 }
 0x144   :  { %v919_v25 = vadd.f32 %v1906_v50, %v899_v42  ;;  %v665_v47 = vpop.f32.mrf.mxu2 }
 0x145   :  { %v834_v51 = vpop.f32.mrf.mxu3 }
 0x146   :  { %v935_v53 = vmax.f32 %v919_v25, 0.0  ;;  %v835_v54 = vadd.f32 %v834_v51, %v665_v47  ;;  %v587_v55 = vpop.f32.mrf.mxu0 }
 0x147   :  { %v756_v56 = vpop.f32.mrf.mxu1 }
 0x148   :  { %951 = vst [vmem:[%s2005_s3 + $0x18] sm:$0xff] %v935_v53  ;;  %v884_v28 = vmax.f32 %v1735_v49, %v835_v54  ;;  %v757_v59 = vadd.f32 %v756_v56, %v587_v55 }
 0x14a   :  { %v900_v58 = vmax.f32 %v868_v57, %v884_v28  ;;  %v869_v7 = vmax.f32 %v1737_v52, %v757_v59 }
 0x14c   :  { %v920_v41 = vadd.f32 %v1906_v50, %v900_v58  ;;  %v667_v61 = vpop.f32.mrf.mxu2 }
 0x14d   :  { %v836_v62 = vpop.f32.mrf.mxu3 }
 0x14e   :  { %v936_v1 = vmax.f32 %v920_v41, 0.0  ;;  %v837_v63 = vadd.f32 %v836_v62, %v667_v61  ;;  %v590_v0 = vpop.f32.mrf.mxu0 }
 0x14f   :  { %v759_v6 = vpop.f32.mrf.mxu1 }
 0x150   :  { %952 = vst [vmem:[%s2005_s3 + $0x20] sm:$0xff] %v936_v1  ;;  %v885_v46 = vmax.f32 %v1763_v3, %v837_v63  ;;  %v760_v11 = vadd.f32 %v759_v6, %v590_v0 }
 0x152   :  { %v901_v10 = vmax.f32 %v869_v7, %v885_v46  ;;  %v870_v17 = vmax.f32 %v1765_v9, %v760_v11 }
 0x154   :  { %v921_v49 = vadd.f32 %v1906_v50, %v901_v10  ;;  %v670_v16 = vpop.f32.mrf.mxu2 }
 0x155   :  { %v839_v18 = vpop.f32.mrf.mxu3 }
 0x156   :  { %v937_v20 = vmax.f32 %v921_v49, 0.0  ;;  %v840_v21 = vadd.f32 %v839_v18, %v670_v16  ;;  %v592_v4 = vpop.f32.mrf.mxu0 }
 0x157   :  { %v761_v24 = vpop.f32.mrf.mxu1 }
 0x158   :  { %953 = vst [vmem:[%s2005_s3 + $0x28] sm:$0xff] %v937_v20  ;;  %v886_v52 = vmax.f32 %v1767_v12, %v840_v21  ;;  %v762_v29 = vadd.f32 %v761_v24, %v592_v4 }
 0x15a   :  { %v902_v26 = vmax.f32 %v870_v17, %v886_v52  ;;  %v871_v22 = vmax.f32 %v1769_v15, %v762_v29 }
 0x15c   :  { %v922_v3 = vadd.f32 %v1906_v50, %v902_v26  ;;  %v672_v30 = vpop.f32.mrf.mxu2 }
 0x15d   :  { %v841_v33 = vpop.f32.mrf.mxu3 }
 0x15e   :  { %v938_v34 = vmax.f32 %v922_v3, 0.0  ;;  %v842_v35 = vadd.f32 %v841_v33, %v672_v30  ;;  %v595_v36 = vpop.f32.mrf.mxu0 }
 0x15f   :  { %v764_v39 = vpop.f32.mrf.mxu1 }
 0x160   :  { %954 = vst [vmem:[%s2005_s3 + $0x30] sm:$0xff] %v938_v34  ;;  %v887_v9 = vmax.f32 %v1795_v32, %v842_v35  ;;  %v765_v25 = vadd.f32 %v764_v39, %v595_v36 }
 0x162   :  { %v903_v42 = vmax.f32 %v871_v22, %v887_v9  ;;  %v872_v56 = vmax.f32 %v1797_v37, %v765_v25 }
 0x164   :  { %v923_v12 = vadd.f32 %v1906_v50, %v903_v42  ;;  %v675_v45 = vpop.f32.mrf.mxu2 }
 0x165   :  { %v844_v47 = vpop.f32.mrf.mxu3 }
 0x166   :  { %v939_v51 = vmax.f32 %v923_v12, 0.0  ;;  %v845_v53 = vadd.f32 %v844_v47, %v675_v45  ;;  %v597_v54 = vpop.f32.mrf.mxu0 }
 0x167   :  { %v766_v55 = vpop.f32.mrf.mxu1 }
 0x168   :  { %955 = vst [vmem:[%s2005_s3 + $0x38] sm:$0xff] %v939_v51  ;;  %v888_v15 = vmax.f32 %v1799_v40, %v845_v53  ;;  %v767_v28 = vadd.f32 %v766_v55, %v597_v54 }
 0x16a   :  { %v904_v57 = vmax.f32 %v872_v56, %v888_v15  ;;  %v873_v63 = vmax.f32 %v1801_v44, %v767_v28 }
 0x16c   :  { %v924_v32 = vadd.f32 %v1906_v50, %v904_v57  ;;  %v677_v58 = vpop.f32.mrf.mxu2 }
 0x16d   :  { %v846_v41 = vpop.f32.mrf.mxu3 }
 0x16e   :  { %v940_v59 = vmax.f32 %v924_v32, 0.0  ;;  %v847_v61 = vadd.f32 %v846_v41, %v677_v58  ;;  %v600_v62 = vpop.f32.mrf.mxu0 }
 0x16f   :  { %v769_v1 = vpop.f32.mrf.mxu1 }
 0x170   :  { %956 = vst [vmem:[%s2005_s3 + $0x40] sm:$0xff] %v940_v59  ;;  %v889_v37 = vmax.f32 %v1827_v60, %v847_v61  ;;  %v770_v6 = vadd.f32 %v769_v1, %v600_v62 }
 0x172   :  { %v905_v0 = vmax.f32 %v873_v63, %v889_v37  ;;  %v874_v18 = vmax.f32 %v1829_v5, %v770_v6 }
 0x174   :  { %v925_v40 = vadd.f32 %v1906_v50, %v905_v0  ;;  %v680_v7 = vpop.f32.mrf.mxu2 }
 0x175   :  { %v849_v46 = vpop.f32.mrf.mxu3 }
 0x176   :  { %v941_v10 = vmax.f32 %v925_v40, 0.0  ;;  %v850_v49 = vadd.f32 %v849_v46, %v680_v7  ;;  %v602_v11 = vpop.f32.mrf.mxu0 }
 0x177   :  { %v771_v16 = vpop.f32.mrf.mxu1 }
 0x178   :  { %957 = vst [vmem:[%s2005_s3 + $0x48] sm:$0xff] %v941_v10  ;;  %v890_v44 = vmax.f32 %v1831_v8, %v850_v49  ;;  %v772_v21 = vadd.f32 %v771_v16, %v602_v11 }
 0x17a   :  { %v906_v20 = vmax.f32 %v874_v18, %v890_v44  ;;  %v875_v29 = vmax.f32 %v1833_v13, %v772_v21 }
 0x17c   :  { %v926_v60 = vadd.f32 %v1906_v50, %v906_v20  ;;  %v682_v4 = vpop.f32.mrf.mxu2 }
 0x17d   :  { %v851_v24 = vpop.f32.mrf.mxu3 }
 0x17e   :  { %v942_v17 = vmax.f32 %v926_v60, 0.0  ;;  %v852_v52 = vadd.f32 %v851_v24, %v682_v4  ;;  %v605_v26 = vpop.f32.mrf.mxu0 }
 0x17f   :  { %v774_v3 = vpop.f32.mrf.mxu1 }
 0x180   :  { %958 = vst [vmem:[%s2005_s3 + $0x50] sm:$0xff] %v942_v17  ;;  %v891_v5 = vmax.f32 %v1859_v31, %v852_v52  ;;  %v775_v33 = vadd.f32 %v774_v3, %v605_v26 }
 0x182   :  { %v907_v30 = vmax.f32 %v875_v29, %v891_v5  ;;  %v876_v42 = vmax.f32 %v1861_v38, %v775_v33 }
 0x184   :  { %v927_v8 = vadd.f32 %v1906_v50, %v907_v30  ;;  %v685_v34 = vpop.f32.mrf.mxu2 }
 0x185   :  { %v854_v35 = vpop.f32.mrf.mxu3 }
 0x186   :  { %v943_v36 = vmax.f32 %v927_v8, 0.0  ;;  %v855_v39 = vadd.f32 %v854_v35, %v685_v34  ;;  %v607_v22 = vpop.f32.mrf.mxu0 }
 0x187   :  { %v776_v9 = vpop.f32.mrf.mxu1 }
 0x188   :  { %959 = vst [vmem:[%s2005_s3 + $0x58] sm:$0xff] %v943_v36  ;;  %v892_v13 = vmax.f32 %v1863_v43, %v855_v39  ;;  %v777_v25 = vadd.f32 %v776_v9, %v607_v22 }
 0x18a   :  { %v908_v12 = vmax.f32 %v876_v42, %v892_v13  ;;  %v877_v56 = vmax.f32 %v1865_v48, %v777_v25 }
 0x18c   :  { %v928_v31 = vadd.f32 %v1906_v50, %v908_v12  ;;  %v687_v45 = vpop.f32.mrf.mxu2 }
 0x18d   :  { %v856_v47 = vpop.f32.mrf.mxu3 }
 0x18e   :  { %v944_v51 = vmax.f32 %v928_v31, 0.0  ;;  %v857_v53 = vadd.f32 %v856_v47, %v687_v45  ;;  %v610_v54 = vpop.f32.mrf.mxu0 }
 0x18f   :  { %v779_v55 = vpop.f32.mrf.mxu1 }
 0x190   :  { %960 = vst [vmem:[%s2005_s3 + $0x60] sm:$0xff] %v944_v51  ;;  %v893_v38 = vmax.f32 %v1891_v2, %v857_v53  ;;  %v780_v57 = vadd.f32 %v779_v55, %v610_v54 }
 0x192   :  { %v909_v15 = vmax.f32 %v877_v56, %v893_v38  ;;  %v878_v59 = vmax.f32 %v1893_v14, %v780_v57 }
 0x194   :  { %v929_v43 = vadd.f32 %v1906_v50, %v909_v15  ;;  %v690_v32 = vpop.f32.mrf.mxu2 }
 0x195   :  { %v859_v28 = vpop.f32.mrf.mxu3 }
 0x196   :  { %v945_v58 = vmax.f32 %v929_v43, 0.0  ;;  %v860_v41 = vadd.f32 %v859_v28, %v690_v32  ;;  %v612_v62 = vpop.f32.mrf.mxu0 }
 0x197   :  { %v781_v48 = vpop.f32.mrf.mxu1 }
 0x198   :  { %961 = vst [vmem:[%s2005_s3 + $0x68] sm:$0xff] %v945_v58  ;;  %v894_v61 = vmax.f32 %v1895_v19, %v860_v41  ;;  %v782_v63 = vadd.f32 %v781_v48, %v612_v62 }
 0x19a   :  { %v910_v1 = vmax.f32 %v878_v59, %v894_v61  ;;  %v879_v7 = vmax.f32 %v1897_v23, %v782_v63 }
 0x19c   :  { %v930_v2 = vadd.f32 %v1906_v50, %v910_v1  ;;  %v692_v37 = vpop.f32.mrf.mxu2 }
 0x19d   :  { %v861_v0 = vpop.f32.mrf.mxu3 }
 0x19e   :  { %v946_v40 = vmax.f32 %v930_v2, 0.0  ;;  %v862_v6 = vadd.f32 %v861_v0, %v692_v37 }
 0x1a0   :  { %962 = vst [vmem:[%s2005_s3 + $0x70] sm:$0xff] %v946_v40  ;;  %v895_v14 = vmax.f32 %v1899_v27, %v862_v6 }
 0x1a2   :  { %v911_v46 = vmax.f32 %v879_v7, %v895_v14 }
 0x1a4   :  { %v931_v19 = vadd.f32 %v1906_v50, %v911_v46 }
 0x1a6   :  { %v947_v10 = vmax.f32 %v931_v19, 0.0 }
 0x1a8   :  { %963 = vst [vmem:[%s2005_s3 + $0x78] sm:$0xff] %v947_v10 }

// kernel: net_forward.5
= control target key start
LH: loop header
LB: loop body
LE: loop exit
PB: predicated region body
PF: predicated region fallthrough
CT: control target
= control target key end

     0   :  { %s2575_s1 = inlined_call_operand.vmem [shape: bf16[2048,128], index: 1, kind: input, shape index: {}]   ;;  %s2576_s2 = inlined_call_operand.vmem [shape: f32[1,128], index: 2, kind: input, shape index: {}]   ;;  %s2577_s0 = inlined_call_operand.vmem [shape: bf16[8,2048], index: 0, kind: input, shape index: {}]   ;;  %s2578_s4 = inlined_call_operand.vmem [shape: f32[1,128], index: 4, kind: input, shape index: {}]   ;;  %s2579_s3 = inlined_call_operand.vmem [shape: bf16[128,128], index: 3, kind: input, shape index: {}]   ;;  %s2580_s5 = inlined_call_operand.vmem [shape: f32[8,128], index: 5, kind: output, shape index: {}]  }
   0x1   :  { %v1969_v0 = vld [vmem:[%s2575_s1 + $0x38] sm:$0xff]  ;;  %v1968_v4 = vld [vmem:[%s2575_s1 + $0x30] sm:$0xff]  ;;  %v1967_v8 = vld [vmem:[%s2575_s1 + $0x28] sm:$0xff] }
   0x2   :  { %v1977_v1 = vld [vmem:[%s2575_s1 + $0x78] sm:$0xff]  ;;  %1112 = vmatpush.bf16.msra.mxu0 %v1969_v0  ;;  %v1976_v5 = vld [vmem:[%s2575_s1 + $0x70] sm:$0xff]  ;;  %v1975_v9 = vld [vmem:[%s2575_s1 + $0x68] sm:$0xff] }
   0x3   :  { %v1985_v2 = vld [vmem:[%s2575_s1 + $0xb8] sm:$0xff]  ;;  %1125 = vmatpush.bf16.msra.mxu1 %v1977_v1  ;;  %v1984_v6 = vld [vmem:[%s2575_s1 + $0xb0] sm:$0xff]  ;;  %v1983_v10 = vld [vmem:[%s2575_s1 + $0xa8] sm:$0xff] }
   0x4   :  { %v1993_v3 = vld [vmem:[%s2575_s1 + $0xf8] sm:$0xff]  ;;  %1138 = vmatpush.bf16.msra.mxu2 %v1985_v2  ;;  %v1992_v7 = vld [vmem:[%s2575_s1 + $0xf0] sm:$0xff]  ;;  %v1991_v11 = vld [vmem:[%s2575_s1 + $0xe8] sm:$0xff] }
   0x5   :  { %1151 = vmatpush.bf16.msra.mxu3 %v1993_v3  ;;  %v1966_v12 = vld [vmem:[%s2575_s1 + $0x20] sm:$0xff]  ;;  %v1965_v16 = vld [vmem:[%s2575_s1 + $0x18] sm:$0xff]  ;;  %v1964_v20 = vld [vmem:[%s2575_s1 + $0x10] sm:$0xff] }
   0x6   :  { %1113 = vmatpush.bf16.msra.mxu0 %v1968_v4  ;;  %v1974_v13 = vld [vmem:[%s2575_s1 + $0x60] sm:$0xff]  ;;  %v1973_v17 = vld [vmem:[%s2575_s1 + $0x58] sm:$0xff]  ;;  %v1972_v21 = vld [vmem:[%s2575_s1 + $0x50] sm:$0xff] }
   0x7   :  { %1126 = vmatpush.bf16.msra.mxu1 %v1976_v5  ;;  %v1982_v14 = vld [vmem:[%s2575_s1 + $0xa0] sm:$0xff]  ;;  %v1981_v18 = vld [vmem:[%s2575_s1 + $0x98] sm:$0xff]  ;;  %v1980_v22 = vld [vmem:[%s2575_s1 + $0x90] sm:$0xff] }
   0x8   :  { %1139 = vmatpush.bf16.msra.mxu2 %v1984_v6  ;;  %v1990_v15 = vld [vmem:[%s2575_s1 + $0xe0] sm:$0xff]  ;;  %v1989_v19 = vld [vmem:[%s2575_s1 + $0xd8] sm:$0xff]  ;;  %v1988_v23 = vld [vmem:[%s2575_s1 + $0xd0] sm:$0xff] }
   0x9   :  { %1152 = vmatpush.bf16.msra.mxu3 %v1992_v7  ;;  %v1963_v24 = vld [vmem:[%s2575_s1 + $0x8] sm:$0xff]  ;;  %v20_v29 = vld [vmem:[%s2577_s0] sm:$0xff]  ;;  %v2001_v38 = vld [vmem:[%s2575_s1 + $0x138] sm:$0xff] }
   0xa   :  { %1114 = vmatpush.bf16.msra.mxu0 %v1967_v8  ;;  %v1971_v25 = vld [vmem:[%s2575_s1 + $0x48] sm:$0xff]  ;;  %v1962_v30 = vld [vmem:[%s2575_s1] sm:$0xff]  ;;  %v296_v33 = vunpack.c.l.b16 %v20_v29  ;;  %v297_v37 = vunpack.c.h.b16 %v20_v29  ;;  %v2009_v39 = vld [vmem:[%s2575_s1 + $0x178] sm:$0xff] }
   0xb   :  { %1127 = vmatpush.bf16.msra.mxu1 %v1975_v9  ;;  %v1979_v26 = vld [vmem:[%s2575_s1 + $0x88] sm:$0xff]  ;;  %v1970_v31 = vld [vmem:[%s2575_s1 + $0x40] sm:$0xff]  ;;  %v2017_v40 = vld [vmem:[%s2575_s1 + $0x1b8] sm:$0xff] }
   0xc   :  { %1140 = vmatpush.bf16.msra.mxu2 %v1983_v10  ;;  %v1987_v27 = vld [vmem:[%s2575_s1 + $0xc8] sm:$0xff]  ;;  %v1978_v34 = vld [vmem:[%s2575_s1 + $0x80] sm:$0xff]  ;;  %v2025_v41 = vld [vmem:[%s2575_s1 + $0x1f8] sm:$0xff]  ;;  %v312_v43 = vpack.c.b16 %v296_v33, %v296_v33  ;;  %v313_v45 = vpack.c.b16 %v297_v37, %v297_v37 }
   0xd   :  { %1153 = vmatpush.bf16.msra.mxu3 %v1991_v11  ;;  %v21_v28 = vld [vmem:[%s2577_s0 + $0x8] sm:$0xff]  ;;  %v1986_v35 = vld [vmem:[%s2575_s1 + $0xc0] sm:$0xff]  ;;  %v2000_v46 = vld [vmem:[%s2575_s1 + $0x130] sm:$0xff] }
   0xe   :  { %1115 = vmatpush.bf16.msra.mxu0 %v1966_v12  ;;  %v298_v32 = vunpack.c.l.b16 %v21_v28  ;;  %v299_v36 = vunpack.c.h.b16 %v21_v28  ;;  %v2008_v47 = vld [vmem:[%s2575_s1 + $0x170] sm:$0xff]  ;;  %v1999_v50 = vld [vmem:[%s2575_s1 + $0x128] sm:$0xff]  ;;  %v1998_v54 = vld [vmem:[%s2575_s1 + $0x120] sm:$0xff] }
   0xf   :  { %1128 = vmatpush.bf16.msra.mxu1 %v1974_v13  ;;  %v2016_v48 = vld [vmem:[%s2575_s1 + $0x1b0] sm:$0xff]  ;;  %v2007_v51 = vld [vmem:[%s2575_s1 + $0x168] sm:$0xff]  ;;  %v2006_v55 = vld [vmem:[%s2575_s1 + $0x160] sm:$0xff] }
  0x10   :  { %1141 = vmatpush.bf16.msra.mxu2 %v1982_v14  ;;  %v314_v42 = vpack.c.b16 %v298_v32, %v298_v32  ;;  %v315_v44 = vpack.c.b16 %v299_v36, %v299_v36  ;;  %v2024_v49 = vld [vmem:[%s2575_s1 + $0x1f0] sm:$0xff]  ;;  %v2015_v52 = vld [vmem:[%s2575_s1 + $0x1a8] sm:$0xff]  ;;  %v2014_v56 = vld [vmem:[%s2575_s1 + $0x1a0] sm:$0xff] }
  0x11   :  { %1154 = vmatpush.bf16.msra.mxu3 %v1990_v15  ;;  %v2023_v53 = vld [vmem:[%s2575_s1 + $0x1e8] sm:$0xff]  ;;  %v2022_v57 = vld [vmem:[%s2575_s1 + $0x1e0] sm:$0xff]  ;;  %v1997_v58 = vld [vmem:[%s2575_s1 + $0x118] sm:$0xff] }
  0x12   :  { %1116 = vmatpush.bf16.msra.mxu0 %v1965_v16  ;;  %v2005_v59 = vld [vmem:[%s2575_s1 + $0x158] sm:$0xff]  ;;  %v1996_v62 = vld [vmem:[%s2575_s1 + $0x110] sm:$0xff]  ;;  %v1995_v2 = vld [vmem:[%s2575_s1 + $0x108] sm:$0xff] }
  0x13   :  { %1129 = vmatpush.bf16.msra.mxu1 %v1973_v17  ;;  %v2013_v60 = vld [vmem:[%s2575_s1 + $0x198] sm:$0xff]  ;;  %v2004_v63 = vld [vmem:[%s2575_s1 + $0x150] sm:$0xff]  ;;  %v2003_v3 = vld [vmem:[%s2575_s1 + $0x148] sm:$0xff] }
  0x14   :  { %1142 = vmatpush.bf16.msra.mxu2 %v1981_v18  ;;  %v2021_v61 = vld [vmem:[%s2575_s1 + $0x1d8] sm:$0xff]  ;;  %v2012_v0 = vld [vmem:[%s2575_s1 + $0x190] sm:$0xff]  ;;  %v2011_v4 = vld [vmem:[%s2575_s1 + $0x188] sm:$0xff] }
  0x15   :  { %1155 = vmatpush.bf16.msra.mxu3 %v1989_v19  ;;  %v2020_v1 = vld [vmem:[%s2575_s1 + $0x1d0] sm:$0xff]  ;;  %v2019_v5 = vld [vmem:[%s2575_s1 + $0x1c8] sm:$0xff]  ;;  %v23_v6 = vld [vmem:[%s2577_s0 + $0x18] sm:$0xff] }
  0x16   :  { %1117 = vmatpush.bf16.msra.mxu0 %v1964_v20  ;;  %v22_v7 = vld [vmem:[%s2577_s0 + $0x10] sm:$0xff]  ;;  %v1994_v8 = vld [vmem:[%s2575_s1 + $0x100] sm:$0xff]  ;;  %v302_v10 = vunpack.c.l.b16 %v23_v6  ;;  %v303_v14 = vunpack.c.h.b16 %v23_v6  ;;  %v2033_v16 = vld [vmem:[%s2575_s1 + $0x238] sm:$0xff] }
  0x17   :  { %1130 = vmatpush.bf16.msra.mxu1 %v1972_v21  ;;  %v2002_v9 = vld [vmem:[%s2575_s1 + $0x140] sm:$0xff]  ;;  %v300_v11 = vunpack.c.l.b16 %v22_v7  ;;  %v301_v15 = vunpack.c.h.b16 %v22_v7  ;;  %v2041_v17 = vld [vmem:[%s2575_s1 + $0x278] sm:$0xff]  ;;  %v2031_v28 = vld [vmem:[%s2575_s1 + $0x228] sm:$0xff] }
  0x18   :  { %1143 = vmatpush.bf16.msra.mxu2 %v1980_v22  ;;  %v2010_v12 = vld [vmem:[%s2575_s1 + $0x180] sm:$0xff]  ;;  %v2049_v18 = vld [vmem:[%s2575_s1 + $0x2b8] sm:$0xff]  ;;  %v318_v20 = vpack.c.b16 %v302_v10, %v302_v10  ;;  %v319_v22 = vpack.c.b16 %v303_v14, %v303_v14  ;;  %v2039_v29 = vld [vmem:[%s2575_s1 + $0x268] sm:$0xff] }
  0x19   :  { %1156 = vmatpush.bf16.msra.mxu3 %v1988_v23  ;;  %v2018_v13 = vld [vmem:[%s2575_s1 + $0x1c0] sm:$0xff]  ;;  %v2057_v19 = vld [vmem:[%s2575_s1 + $0x2f8] sm:$0xff]  ;;  %v316_v21 = vpack.c.b16 %v300_v11, %v300_v11  ;;  %v317_v23 = vpack.c.b16 %v301_v15, %v301_v15  ;;  %v2063_v6 = vld [vmem:[%s2575_s1 + $0x328] sm:$0xff] }
  0x1a   :  { %1118 = vmatpush.bf16.msra.mxu0 %v1963_v24  ;;  %v2032_v24 = vld [vmem:[%s2575_s1 + $0x230] sm:$0xff]  ;;  %v2030_v32 = vld [vmem:[%s2575_s1 + $0x220] sm:$0xff]  ;;  %v2029_v36 = vld [vmem:[%s2575_s1 + $0x218] sm:$0xff] }
  0x1b   :  { %1131 = vmatpush.bf16.msra.mxu1 %v1971_v25  ;;  %v2040_v25 = vld [vmem:[%s2575_s1 + $0x270] sm:$0xff]  ;;  %v2038_v33 = vld [vmem:[%s2575_s1 + $0x260] sm:$0xff]  ;;  %v2037_v37 = vld [vmem:[%s2575_s1 + $0x258] sm:$0xff] }
  0x1c   :  { %1144 = vmatpush.bf16.msra.mxu2 %v1979_v26  ;;  %v2048_v26 = vld [vmem:[%s2575_s1 + $0x2b0] sm:$0xff]  ;;  %v2071_v7 = vld [vmem:[%s2575_s1 + $0x368] sm:$0xff]  ;;  %v2062_v10 = vld [vmem:[%s2575_s1 + $0x320] sm:$0xff] }
  0x1d   :  { %1157 = vmatpush.bf16.msra.mxu3 %v1987_v27  ;;  %v2056_v27 = vld [vmem:[%s2575_s1 + $0x2f0] sm:$0xff]  ;;  %v2070_v11 = vld [vmem:[%s2575_s1 + $0x360] sm:$0xff]  ;;  %v2061_v14 = vld [vmem:[%s2575_s1 + $0x318] sm:$0xff] }
  0x1e   :  { %1119 = vmatpush.bf16.msra.mxu0 %v1962_v30  ;;  %v2047_v30 = vld [vmem:[%s2575_s1 + $0x2a8] sm:$0xff]  ;;  %v2069_v15 = vld [vmem:[%s2575_s1 + $0x358] sm:$0xff] }
  0x1f   :  { %1132 = vmatpush.bf16.msra.mxu1 %v1970_v31  ;;  %v2055_v31 = vld [vmem:[%s2575_s1 + $0x2e8] sm:$0xff] }
  0x20   :  { %1145 = vmatpush.bf16.msra.mxu2 %v1978_v34  ;;  %v2046_v34 = vld [vmem:[%s2575_s1 + $0x2a0] sm:$0xff] }
  0x21   :  { %1158 = vmatpush.bf16.msra.mxu3 %v1986_v35  ;;  %1120 = vmatmul.bf16.vlgmr.msra.gmra.mxu0 %v312_v43  ;;  %v2054_v35 = vld [vmem:[%s2575_s1 + $0x2e0] sm:$0xff]  ;;  %v2052_v43 = vld [vmem:[%s2575_s1 + $0x2d0] sm:$0xff] }
  0x22   :  { %1164 = vmatpush.bf16.msrb.mxu0 %v2001_v38  ;;  %1133 = vmatmul.bf16.vlgmr.msra.gmra.mxu1 %v313_v45  ;;  %v2045_v38 = vld [vmem:[%s2575_s1 + $0x298] sm:$0xff]  ;;  %v2035_v45 = vld [vmem:[%s2575_s1 + $0x248] sm:$0xff] }
  0x23   :  { %1177 = vmatpush.bf16.msrb.mxu1 %v2009_v39  ;;  %1146 = vmatmul.bf16.vlgmr.msra.gmra.mxu2 %v314_v42  ;;  %v2053_v39 = vld [vmem:[%s2575_s1 + $0x2d8] sm:$0xff]  ;;  %v2044_v42 = vld [vmem:[%s2575_s1 + $0x290] sm:$0xff] }
  0x24   :  { %1190 = vmatpush.bf16.msrb.mxu2 %v2017_v40  ;;  %1159 = vmatmul.bf16.vlgmr.msra.gmra.mxu3 %v315_v44  ;;  %v2028_v40 = vld [vmem:[%s2575_s1 + $0x210] sm:$0xff]  ;;  %v2027_v44 = vld [vmem:[%s2575_s1 + $0x208] sm:$0xff] }
  0x25   :  { %1203 = vmatpush.bf16.msrb.mxu3 %v2025_v41  ;;  %v2036_v41 = vld [vmem:[%s2575_s1 + $0x250] sm:$0xff] }
  0x26   :  { %1165 = vmatpush.bf16.msrb.mxu0 %v2000_v46  ;;  %v2043_v46 = vld [vmem:[%s2575_s1 + $0x288] sm:$0xff] }
  0x27   :  { %1178 = vmatpush.bf16.msrb.mxu1 %v2008_v47  ;;  %v2051_v47 = vld [vmem:[%s2575_s1 + $0x2c8] sm:$0xff] }
  0x28   :  { %1191 = vmatpush.bf16.msrb.mxu2 %v2016_v48  ;;  %v24_v48 = vld [vmem:[%s2577_s0 + $0x20] sm:$0xff] }
  0x29   :  { %1204 = vmatpush.bf16.msrb.mxu3 %v2024_v49  ;;  %v25_v49 = vld [vmem:[%s2577_s0 + $0x28] sm:$0xff] }
  0x2a   :  { %1166 = vmatpush.bf16.msrb.mxu0 %v1999_v50  ;;  %v2026_v50 = vld [vmem:[%s2575_s1 + $0x200] sm:$0xff] }
  0x2b   :  { %1179 = vmatpush.bf16.msrb.mxu1 %v2007_v51  ;;  %v2034_v51 = vld [vmem:[%s2575_s1 + $0x240] sm:$0xff] }
  0x2c   :  { %1192 = vmatpush.bf16.msrb.mxu2 %v2015_v52  ;;  %v304_v52 = vunpack.c.l.b16 %v24_v48 }
  0x2d   :  { %1205 = vmatpush.bf16.msrb.mxu3 %v2023_v53  ;;  %v306_v53 = vunpack.c.l.b16 %v25_v49 }
  0x2e   :  { %1167 = vmatpush.bf16.msrb.mxu0 %v1998_v54  ;;  %v2042_v54 = vld [vmem:[%s2575_s1 + $0x280] sm:$0xff] }
  0x2f   :  { %1180 = vmatpush.bf16.msrb.mxu1 %v2006_v55  ;;  %v2050_v55 = vld [vmem:[%s2575_s1 + $0x2c0] sm:$0xff] }
  0x30   :  { %1193 = vmatpush.bf16.msrb.mxu2 %v2014_v56  ;;  %v305_v56 = vunpack.c.h.b16 %v24_v48 }
  0x31   :  { %1206 = vmatpush.bf16.msrb.mxu3 %v2022_v57  ;;  %v307_v57 = vunpack.c.h.b16 %v25_v49 }
  0x32   :  { %1168 = vmatpush.bf16.msrb.mxu0 %v1997_v58  ;;  %v2065_v58 = vld [vmem:[%s2575_s1 + $0x338] sm:$0xff] }
  0x33   :  { %1181 = vmatpush.bf16.msrb.mxu1 %v2005_v59  ;;  %v2073_v59 = vld [vmem:[%s2575_s1 + $0x378] sm:$0xff] }
  0x34   :  { %1194 = vmatpush.bf16.msrb.mxu2 %v2013_v60  ;;  %v2081_v60 = vld [vmem:[%s2575_s1 + $0x3b8] sm:$0xff] }
  0x35   :  { %1207 = vmatpush.bf16.msrb.mxu3 %v2021_v61  ;;  %v2089_v61 = vld [vmem:[%s2575_s1 + $0x3f8] sm:$0xff] }
  0x36   :  { %1169 = vmatpush.bf16.msrb.mxu0 %v1996_v62  ;;  %v320_v62 = vpack.c.b16 %v304_v52, %v304_v52 }
  0x37   :  { %1182 = vmatpush.bf16.msrb.mxu1 %v2004_v63  ;;  %v322_v63 = vpack.c.b16 %v306_v53, %v306_v53 }
  0x38   :  { %1195 = vmatpush.bf16.msrb.mxu2 %v2012_v0  ;;  %v321_v0 = vpack.c.b16 %v305_v56, %v305_v56 }
  0x39   :  { %1208 = vmatpush.bf16.msrb.mxu3 %v2020_v1  ;;  %v323_v1 = vpack.c.b16 %v307_v57, %v307_v57  ;;  %v2097_v57 = vld [vmem:[%s2579_s3 + $0x38] sm:$0xff] }
  0x3a   :  { %1170 = vmatpush.bf16.msrb.mxu0 %v1995_v2  ;;  %v2064_v2 = vld [vmem:[%s2575_s1 + $0x330] sm:$0xff] }
  0x3b   :  { %1183 = vmatpush.bf16.msrb.mxu1 %v2003_v3  ;;  %v2072_v3 = vld [vmem:[%s2575_s1 + $0x370] sm:$0xff] }
  0x3c   :  { %1196 = vmatpush.bf16.msrb.mxu2 %v2011_v4  ;;  %v2080_v4 = vld [vmem:[%s2575_s1 + $0x3b0] sm:$0xff] }
  0x3d   :  { %1209 = vmatpush.bf16.msrb.mxu3 %v2019_v5  ;;  %v2088_v5 = vld [vmem:[%s2575_s1 + $0x3f0] sm:$0xff] }
  0x3e   :  { %1171 = vmatpush.bf16.msrb.mxu0 %v1994_v8  ;;  %v2079_v8 = vld [vmem:[%s2575_s1 + $0x3a8] sm:$0xff] }
  0x3f   :  { %1184 = vmatpush.bf16.msrb.mxu1 %v2002_v9  ;;  %v2087_v9 = vld [vmem:[%s2575_s1 + $0x3e8] sm:$0xff] }
  0x40   :  { %1197 = vmatpush.bf16.msrb.mxu2 %v2010_v12  ;;  %v2078_v12 = vld [vmem:[%s2575_s1 + $0x3a0] sm:$0xff] }
  0x41   :  { %1210 = vmatpush.bf16.msrb.mxu3 %v2018_v13  ;;  %1172 = vmatmul.bf16.vlgmr.msrb.gmra.mxu0 %v316_v21  ;;  %v2086_v13 = vld [vmem:[%s2575_s1 + $0x3e0] sm:$0xff]  ;;  %v2084_v21 = vld [vmem:[%s2575_s1 + $0x3d0] sm:$0xff] }
  0x42   :  { %1216 = vmatpush.bf16.msra.mxu0 %v2033_v16  ;;  %1185 = vmatmul.bf16.vlgmr.msrb.gmra.mxu1 %v317_v23  ;;  %v2077_v16 = vld [vmem:[%s2575_s1 + $0x398] sm:$0xff]  ;;  %v2067_v23 = vld [vmem:[%s2575_s1 + $0x348] sm:$0xff] }
  0x43   :  { %1229 = vmatpush.bf16.msra.mxu1 %v2041_v17  ;;  %1198 = vmatmul.bf16.vlgmr.msrb.gmra.mxu2 %v318_v20  ;;  %v2085_v17 = vld [vmem:[%s2575_s1 + $0x3d8] sm:$0xff]  ;;  %v2076_v20 = vld [vmem:[%s2575_s1 + $0x390] sm:$0xff] }
  0x44   :  { %1242 = vmatpush.bf16.msra.mxu2 %v2049_v18  ;;  %1211 = vmatmul.bf16.vlgmr.msrb.gmra.mxu3 %v319_v22  ;;  %v2060_v18 = vld [vmem:[%s2575_s1 + $0x310] sm:$0xff]  ;;  %v2059_v22 = vld [vmem:[%s2575_s1 + $0x308] sm:$0xff] }
  0x45   :  { %1255 = vmatpush.bf16.msra.mxu3 %v2057_v19  ;;  %v2068_v19 = vld [vmem:[%s2575_s1 + $0x350] sm:$0xff] }
  0x46   :  { %1217 = vmatpush.bf16.msra.mxu0 %v2032_v24  ;;  %v26_v24 = vld [vmem:[%s2577_s0 + $0x30] sm:$0xff] }
  0x47   :  { %1230 = vmatpush.bf16.msra.mxu1 %v2040_v25  ;;  %v2075_v25 = vld [vmem:[%s2575_s1 + $0x388] sm:$0xff] }
  0x48   :  { %1243 = vmatpush.bf16.msra.mxu2 %v2048_v26  ;;  %v2083_v26 = vld [vmem:[%s2575_s1 + $0x3c8] sm:$0xff] }
  0x49   :  { %1256 = vmatpush.bf16.msra.mxu3 %v2056_v27  ;;  %v27_v27 = vld [vmem:[%s2577_s0 + $0x38] sm:$0xff] }
  0x4a   :  { %1218 = vmatpush.bf16.msra.mxu0 %v2031_v28  ;;  %v308_v28 = vunpack.c.l.b16 %v26_v24 }
  0x4b   :  { %1231 = vmatpush.bf16.msra.mxu1 %v2039_v29  ;;  %v309_v29 = vunpack.c.h.b16 %v26_v24 }
  0x4c   :  { %1244 = vmatpush.bf16.msra.mxu2 %v2047_v30  ;;  %v2058_v30 = vld [vmem:[%s2575_s1 + $0x300] sm:$0xff] }
  0x4d   :  { %1257 = vmatpush.bf16.msra.mxu3 %v2055_v31  ;;  %v2066_v31 = vld [vmem:[%s2575_s1 + $0x340] sm:$0xff] }
  0x4e   :  { %1219 = vmatpush.bf16.msra.mxu0 %v2030_v32  ;;  %v310_v32 = vunpack.c.l.b16 %v27_v27 }
  0x4f   :  { %1232 = vmatpush.bf16.msra.mxu1 %v2038_v33  ;;  %v311_v33 = vunpack.c.h.b16 %v27_v27 }
  0x50   :  { %1245 = vmatpush.bf16.msra.mxu2 %v2046_v34  ;;  %v2074_v34 = vld [vmem:[%s2575_s1 + $0x380] sm:$0xff] }
  0x51   :  { %1258 = vmatpush.bf16.msra.mxu3 %v2054_v35  ;;  %v2082_v35 = vld [vmem:[%s2575_s1 + $0x3c0] sm:$0xff] }
  0x52   :  { %1220 = vmatpush.bf16.msra.mxu0 %v2029_v36  ;;  %v324_v36 = vpack.c.b16 %v308_v28, %v308_v28 }
  0x53   :  { %1233 = vmatpush.bf16.msra.mxu1 %v2037_v37  ;;  %v325_v37 = vpack.c.b16 %v309_v29, %v309_v29 }
  0x54   :  { %1246 = vmatpush.bf16.msra.mxu2 %v2045_v38  ;;  %v326_v38 = vpack.c.b16 %v310_v32, %v310_v32 }
  0x55   :  { %1259 = vmatpush.bf16.msra.mxu3 %v2053_v39  ;;  %v327_v39 = vpack.c.b16 %v311_v33, %v311_v33 }
  0x56   :  { %1221 = vmatpush.bf16.msra.mxu0 %v2028_v40  ;;  %v2098_v40 = vld [vmem:[%s2576_s2] ss:$0 sm:$0xff] }
  0x57   :  { %1234 = vmatpush.bf16.msra.mxu1 %v2036_v41 }
  0x58   :  { %1247 = vmatpush.bf16.msra.mxu2 %v2044_v42 }
  0x59   :  { %1260 = vmatpush.bf16.msra.mxu3 %v2052_v43 }
  0x5a   :  { %1222 = vmatpush.bf16.msra.mxu0 %v2027_v44 }
  0x5b   :  { %1235 = vmatpush.bf16.msra.mxu1 %v2035_v45 }
  0x5c   :  { %1248 = vmatpush.bf16.msra.mxu2 %v2043_v46 }
  0x5d   :  { %1261 = vmatpush.bf16.msra.mxu3 %v2051_v47 }
  0x5e   :  { %1223 = vmatpush.bf16.msra.mxu0 %v2026_v50 }
  0x5f   :  { %1236 = vmatpush.bf16.msra.mxu1 %v2034_v51 }
  0x60   :  { %1249 = vmatpush.bf16.msra.mxu2 %v2042_v54 }
  0x61   :  { %1262 = vmatpush.bf16.msra.mxu3 %v2050_v55  ;;  %1224 = vmatmul.bf16.vlgmr.msra.gmra.mxu0 %v320_v62 }
  0x62   :  { %1268 = vmatpush.bf16.msrb.mxu0 %v2065_v58  ;;  %1237 = vmatmul.bf16.vlgmr.msra.gmra.mxu1 %v321_v0  ;;  %v2094_v0 = vld [vmem:[%s2579_s3 + $0x20] sm:$0xff] }
  0x63   :  { %1281 = vmatpush.bf16.msrb.mxu1 %v2073_v59  ;;  %1250 = vmatmul.bf16.vlgmr.msra.gmra.mxu2 %v322_v63 }
  0x64   :  { %1294 = vmatpush.bf16.msrb.mxu2 %v2081_v60  ;;  %1263 = vmatmul.bf16.vlgmr.msra.gmra.mxu3 %v323_v1  ;;  %v2096_v60 = vld [vmem:[%s2579_s3 + $0x30] sm:$0xff]  ;;  %v2093_v1 = vld [vmem:[%s2579_s3 + $0x18] sm:$0xff] }
  0x65   :  { %1307 = vmatpush.bf16.msrb.mxu3 %v2089_v61  ;;  %v2095_v61 = vld [vmem:[%s2579_s3 + $0x28] sm:$0xff] }
  0x66   :  { %1269 = vmatpush.bf16.msrb.mxu0 %v2064_v2 }
  0x67   :  { %1282 = vmatpush.bf16.msrb.mxu1 %v2072_v3  ;;  %v2092_v3 = vld [vmem:[%s2579_s3 + $0x10] sm:$0xff] }
  0x68   :  { %1295 = vmatpush.bf16.msrb.mxu2 %v2080_v4 }
  0x69   :  { %1308 = vmatpush.bf16.msrb.mxu3 %v2088_v5  ;;  %v2091_v5 = vld [vmem:[%s2579_s3 + $0x8] sm:$0xff] }
  0x6a   :  { %1270 = vmatpush.bf16.msrb.mxu0 %v2063_v6 }
  0x6b   :  { %1283 = vmatpush.bf16.msrb.mxu1 %v2071_v7 }
  0x6c   :  { %1296 = vmatpush.bf16.msrb.mxu2 %v2079_v8 }
  0x6d   :  { %1309 = vmatpush.bf16.msrb.mxu3 %v2087_v9 }
  0x6e   :  { %1271 = vmatpush.bf16.msrb.mxu0 %v2062_v10  ;;  %v2090_v10 = vld [vmem:[%s2579_s3] sm:$0xff] }
  0x6f   :  { %1284 = vmatpush.bf16.msrb.mxu1 %v2070_v11 }
  0x70   :  { %1297 = vmatpush.bf16.msrb.mxu2 %v2078_v12 }
  0x71   :  { %1310 = vmatpush.bf16.msrb.mxu3 %v2086_v13 }
  0x72   :  { %1272 = vmatpush.bf16.msrb.mxu0 %v2061_v14 }
  0x73   :  { %1285 = vmatpush.bf16.msrb.mxu1 %v2069_v15 }
  0x74   :  { %1298 = vmatpush.bf16.msrb.mxu2 %v2077_v16 }
  0x75   :  { %1311 = vmatpush.bf16.msrb.mxu3 %v2085_v17 }
  0x76   :  { %1273 = vmatpush.bf16.msrb.mxu0 %v2060_v18 }
  0x77   :  { %1286 = vmatpush.bf16.msrb.mxu1 %v2068_v19 }
  0x78   :  { %1299 = vmatpush.bf16.msrb.mxu2 %v2076_v20 }
  0x79   :  { %1312 = vmatpush.bf16.msrb.mxu3 %v2084_v21 }
  0x7a   :  { %1274 = vmatpush.bf16.msrb.mxu0 %v2059_v22 }
  0x7b   :  { %1287 = vmatpush.bf16.msrb.mxu1 %v2067_v23 }
  0x7c   :  { %1300 = vmatpush.bf16.msrb.mxu2 %v2075_v25 }
  0x7d   :  { %1313 = vmatpush.bf16.msrb.mxu3 %v2083_v26 }
  0x7e   :  { %1275 = vmatpush.bf16.msrb.mxu0 %v2058_v30 }
  0x7f   :  { %1288 = vmatpush.bf16.msrb.mxu1 %v2066_v31 }
  0x80   :  { %1301 = vmatpush.bf16.msrb.mxu2 %v2074_v34 }
  0x81   :  { %1314 = vmatpush.bf16.msrb.mxu3 %v2082_v35  ;;  %1276 = vmatmul.bf16.vlgmr.msrb.gmra.mxu0 %v324_v36  ;;  %v2099_v35 = vld [vmem:[%s2578_s4] ss:$0 sm:$0xff] }
  0x82   :  { %1289 = vmatmul.bf16.vlgmr.msrb.gmra.mxu1 %v325_v37  ;;  %1390 = vmatpush.bf16.msra.mxu0 %v2097_v57 }
  0x83   :  { %1302 = vmatmul.bf16.vlgmr.msrb.gmra.mxu2 %v326_v38 }
  0x84   :  { %1315 = vmatmul.bf16.vlgmr.msrb.gmra.mxu3 %v327_v39 }
  0x86   :  { %1391 = vmatpush.bf16.msra.mxu0 %v2096_v60 }
  0x8a   :  { %1392 = vmatpush.bf16.msra.mxu0 %v2095_v61 }
  0x8e   :  { %1393 = vmatpush.bf16.msra.mxu0 %v2094_v0 }
  0x92   :  { %1394 = vmatpush.bf16.msra.mxu0 %v2093_v1 }
  0x96   :  { %1395 = vmatpush.bf16.msra.mxu0 %v2092_v3 }
  0x9a   :  { %1396 = vmatpush.bf16.msra.mxu0 %v2091_v5 }
  0x9e   :  { %v1121_v41 = vpop.f32.mrf.mxu0  ;;  %1397 = vmatpush.bf16.msra.mxu0 %v2090_v10 }
  0x9f   :  { %v1122_v42 = vadd.f32 %v2098_v40, %v1121_v41  ;;  %v1134_v43 = vpop.f32.mrf.mxu1 }
  0xa1   :  { %v1135_v44 = vadd.f32 %v1134_v43, %v1122_v42 }
  0xa6   :  { %v1147_v45 = vpop.f32.mrf.mxu2  ;;  %v1123_v48 = vpop.f32.mrf.mxu0 }
  0xa7   :  { %v1148_v46 = vadd.f32 %v1147_v45, %v1135_v44  ;;  %v1160_v47 = vpop.f32.mrf.mxu3  ;;  %v1136_v50 = vpop.f32.mrf.mxu1 }
  0xa9   :  { %v1161_v49 = vadd.f32 %v1160_v47, %v1148_v46 }
  0xae   :  { %v1149_v51 = vpop.f32.mrf.mxu2 }
  0xaf   :  { %v1162_v52 = vpop.f32.mrf.mxu3 }
  0xbe   :  { %v1173_v53 = vpop.f32.mrf.mxu0 }
  0xbf   :  { %v1186_v54 = vpop.f32.mrf.mxu1  ;;  %v1174_v6 = vadd.f32 %v1173_v53, %v1161_v49 }
  0xc1   :  { %v1187_v11 = vadd.f32 %v1186_v54, %v1174_v6 }
  0xc6   :  { %v1199_v55 = vpop.f32.mrf.mxu2  ;;  %v1175_v58 = vpop.f32.mrf.mxu0 }
  0xc7   :  { %v1212_v56 = vpop.f32.mrf.mxu3  ;;  %v1188_v59 = vpop.f32.mrf.mxu1  ;;  %v1200_v13 = vadd.f32 %v1199_v55, %v1187_v11 }
  0xc9   :  { %v1213_v16 = vadd.f32 %v1212_v56, %v1200_v13 }
  0xce   :  { %v1201_v62 = vpop.f32.mrf.mxu2 }
  0xcf   :  { %v1214_v63 = vpop.f32.mrf.mxu3 }
  0xde   :  { %v1225_v2 = vpop.f32.mrf.mxu0 }
  0xdf   :  { %v1238_v4 = vpop.f32.mrf.mxu1  ;;  %v1226_v17 = vadd.f32 %v1225_v2, %v1213_v16 }
  0xe1   :  { %v1239_v18 = vadd.f32 %v1238_v4, %v1226_v17 }
  0xe6   :  { %v1251_v7 = vpop.f32.mrf.mxu2  ;;  %v1227_v9 = vpop.f32.mrf.mxu0 }
  0xe7   :  { %v1264_v8 = vpop.f32.mrf.mxu3  ;;  %v1240_v12 = vpop.f32.mrf.mxu1  ;;  %v1252_v19 = vadd.f32 %v1251_v7, %v1239_v18 }
  0xe9   :  { %v1265_v20 = vadd.f32 %v1264_v8, %v1252_v19 }
  0xee   :  { %v1253_v14 = vpop.f32.mrf.mxu2 }
  0xef   :  { %v1266_v15 = vpop.f32.mrf.mxu3 }
  0xfe   :  { %v1277_v21 = vpop.f32.mrf.mxu0 }
  0xff   :  { %v1290_v22 = vpop.f32.mrf.mxu1  ;;  %v1278_v23 = vadd.f32 %v1277_v21, %v1265_v20 }
 0x101   :  { %v1291_v24 = vadd.f32 %v1290_v22, %v1278_v23 }
 0x106   :  { %v1303_v25 = vpop.f32.mrf.mxu2  ;;  %v1279_v28 = vpop.f32.mrf.mxu0 }
 0x107   :  { %v1316_v26 = vpop.f32.mrf.mxu3  ;;  %v1304_v27 = vadd.f32 %v1303_v25, %v1291_v24  ;;  %v1292_v29 = vpop.f32.mrf.mxu1 }
 0x109   :  { %v1317_v30 = vadd.f32 %v1316_v26, %v1304_v27 }
 0x10b   :  { %v1320_v31 = vmax.f32 %v1317_v30, 0.0 }
 0x10d   :  { %v1321_v32 = vpack.c.bf16 %v1320_v31, %v1320_v31 }
 0x10e   :  { %v1305_v33 = vpop.f32.mrf.mxu2 }
 0x10f   :  { %v1318_v34 = vpop.f32.mrf.mxu3  ;;  %1398 = vmatmul.bf16.vlgmr.msra.gmra.mxu0 %v1321_v32 }
 0x18c   :  { %v1399_v36 = vpop.f32.mrf.mxu0 }
 0x18d   :  { %v1400_v37 = vadd.f32 %v2099_v35, %v1399_v36 }
 0x18f   :  { %1403 = vmax.xlane.f32.xlu0 %v1400_v37 }
 0x194   :  { %v1401_v38 = vpop.f32.mrf.mxu0 }
 0x202   :  { %v1404_v39 = vpop.xlane.xlu0 %1403 }
 0x203   :  { %v1405_v40 = vsub.f32 %v1400_v37, %v1404_v39 }
 0x205   :  { %v1406_v41 = vmul.f32 1.442695, %v1405_v40 }
 0x207   :  { %2100 = vpow2.f32 %v1406_v41 }
 0x20d   :  { %v2101_v42 = vpop.eup %2100 }
 0x20e   :  { %1408 = vadd.xlane.f32.xlu0 %v2101_v42 }
 0x281   :  { %v1409_v43 = vpop.xlane.xlu0 %1408 }
 0x282   :  { %2102 = vlog2.f32 %v1409_v43 }
 0x288   :  { %v2103_v44 = vpop.eup %2102 }
 0x289   :  { %v1411_v45 = vmul.f32 0.6931472, %v2103_v44 }
 0x28b   :  { %v1412_v46 = vsub.f32 %v1405_v40, %v1411_v45 }
 0x28d   :  { %1413 = vst [vmem:[%s2580_s5] sm:$0xff] %v1412_v46 }

</bundles_post_ra>
